<compile_context>
chip_gen: v7x
topology: tpu7x:2x2x1
jax: 0.10.0
libtpu: 0.0.40
codegen_flags: <defaults>
</compile_context>

<pallas_src>
import jax
import jax.numpy as jnp
from jax import lax
from jax.experimental import pallas as pl
from jax.experimental.pallas import tpu as pltpu

_VMEM_LIMIT = 32 * 1024 * 1024  # >= default scoped VMEM on v5e (16 MiB), safe on all gens


# ----------------------------------------------------------------------------
# Kernel 1: fused ResidualConvBlock (+ optional extra residual, optional 1x1
#           projection with CHW-flat output)
# ----------------------------------------------------------------------------
def _make_rcu_kernel(H, W, C, has_extra, has_proj):
    def kernel(*refs):
        it = iter(refs)
        x_ref = next(it)                              # (1, H, W, C) f32
        extra_ref = next(it) if has_extra else None   # (1, H, W, C) f32
        w1_ref = next(it)                             # (9C, C) compute dtype
        s1_ref = next(it)                             # (1, C) f32
        b1_ref = next(it)                             # (1, C) f32
        w2_ref = next(it)
        s2_ref = next(it)
        b2_ref = next(it)
        if has_proj:
            wp_ref = next(it)                         # (C, C) f32
            bp_ref = next(it)                         # (1, C) f32
        out_ref = next(it)                            # (1,H,W,C) or (1,C,H*W)
        pad_ref = next(it)                            # (H+2, W+2, C) scratch
        patch_ref = next(it)                          # (H*W, 9C)    scratch

        # Zero-padded, ReLU'd activation buffer (borders stay zero; ReLU(0)=0).
        pad_ref[...] = jnp.zeros(pad_ref.shape, pad_ref.dtype)

        def conv3x3_bn(w_ref, s_ref, b_ref):
            # im2col: pack the 9 shifted windows along the contraction dim and
            # do ONE (H*W, 9C) @ (9C, C) MXU matmul.
            for k in range(9):
                dy, dx = k // 3, k % 3
                patch_ref[:, k * C:(k + 1) * C] = (
                    pad_ref[dy:dy + H, dx:dx + W, :].reshape(H * W, C))
            y = jnp.dot(patch_ref[...], w_ref[...],
                        preferred_element_type=jnp.float32)
            return y * s_ref[...] + b_ref[...]        # folded BN (+conv bias), f32

        # conv block 1: ReLU (applied once) -> conv3x3 -> BN
        pad_ref[1:H + 1, 1:W + 1, :] = (
            jnp.maximum(x_ref[0], 0.0).astype(pad_ref.dtype))
        y1 = conv3x3_bn(w1_ref, s1_ref, b1_ref)

        # conv block 2: ReLU -> conv3x3 -> BN (y1 never leaves VMEM)
        pad_ref[1:H + 1, 1:W + 1, :] = (
            jnp.maximum(y1, 0.0).astype(pad_ref.dtype).reshape(H, W, C))
        y2 = conv3x3_bn(w2_ref, s2_ref, b2_ref)

        r = x_ref[0].reshape(H * W, C) + y2           # RCU residual, f32
        if has_extra:
            r = r + extra_ref[0].reshape(H * W, C)    # fusion-block residual

        if has_proj:
            # 1x1 projection (commutes exactly with the bilinear upsample);
            # emit CHW-flat so the upsample stage needs no transposes.
            p = jnp.dot(r, wp_ref[...],
                        preferred_element_type=jnp.float32) + bp_ref[...]
            out_ref[0] = p.T                          # (C, H*W)
        else:
            out_ref[0] = r.reshape(H, W, C)
    return kernel


def rcu_block(x, p, extra=None, proj=None, compute_dtype=jnp.bfloat16):
    """Fused ResidualConvBlock.  x, extra: (B,H,W,C) f32.
    proj=(wp (C,C), bp (C,)) additionally applies the 1x1 projection and
    returns a CHW-flat (B, C, H*W) tensor; otherwise returns (B,H,W,C)."""
    B, H, W, C = x.shape
    has_extra = extra is not None
    has_proj = proj is not None

    w1 = p["w1"].reshape(9 * C, C).astype(compute_dtype)
    w2 = p["w2"].reshape(9 * C, C).astype(compute_dtype)

    inputs = [x]
    in_specs = [pl.BlockSpec((1, H, W, C), lambda b: (b, 0, 0, 0))]
    if has_extra:
        inputs.append(extra)
        in_specs.append(pl.BlockSpec((1, H, W, C), lambda b: (b, 0, 0, 0)))
    inputs += [w1, p["s1"], p["b1"], w2, p["s2"], p["b2"]]
    in_specs += [
        pl.BlockSpec((9 * C, C), lambda b: (0, 0)),
        pl.BlockSpec((1, C), lambda b: (0, 0)),
        pl.BlockSpec((1, C), lambda b: (0, 0)),
        pl.BlockSpec((9 * C, C), lambda b: (0, 0)),
        pl.BlockSpec((1, C), lambda b: (0, 0)),
        pl.BlockSpec((1, C), lambda b: (0, 0)),
    ]
    if has_proj:
        wp, bp = proj
        inputs += [wp.astype(jnp.float32), bp.reshape(1, C).astype(jnp.float32)]
        in_specs += [pl.BlockSpec((C, C), lambda b: (0, 0)),
                     pl.BlockSpec((1, C), lambda b: (0, 0))]
        out_shape = jax.ShapeDtypeStruct((B, C, H * W), jnp.float32)
        out_spec = pl.BlockSpec((1, C, H * W), lambda b: (b, 0, 0))
    else:
        out_shape = jax.ShapeDtypeStruct((B, H, W, C), jnp.float32)
        out_spec = pl.BlockSpec((1, H, W, C), lambda b: (b, 0, 0, 0))

    return pl.pallas_call(
        _make_rcu_kernel(H, W, C, has_extra, has_proj),
        out_shape=out_shape,
        grid=(B,),
        in_specs=in_specs,
        out_specs=out_spec,
        scratch_shapes=[pltpu.VMEM((H + 2, W + 2, C), compute_dtype),
                        pltpu.VMEM((H * W, 9 * C), compute_dtype)],
        compiler_params=pltpu.CompilerParams(
            dimension_semantics=("parallel",),
            vmem_limit_bytes=_VMEM_LIMIT),
    )(*inputs)


# ----------------------------------------------------------------------------
# Kernel 2: bilinear x2 upsample (align_corners=True) on CHW-flat input.
# Two small interp matmuls per (batch, channel); output is NCHW directly.
# ----------------------------------------------------------------------------
def _upsample_kernel(x_ref, rxT_ref, ry_ref, out_ref):
    # x_ref: (1, H, W); rxT: (W, Wo); ry: (Ho, H); out_ref: (1, 1, Ho, Wo)
    u = jnp.dot(x_ref[0], rxT_ref[...], preferred_element_type=jnp.float32)
    out_ref[0, 0] = jnp.dot(ry_ref[...], u, preferred_element_type=jnp.float32)


def _bilinear_matrix(n_in, n_out):
    """PyTorch F.interpolate(..., mode='bilinear', align_corners=True) weights."""
    if n_in == 1:
        return jnp.ones((n_out, 1), jnp.float32)
    o = jnp.arange(n_out, dtype=jnp.float32)
    src = o * (n_in - 1) / (n_out - 1)
    i0 = jnp.clip(jnp.floor(src).astype(jnp.int32), 0, n_in - 2)
    frac = src - i0.astype(jnp.float32)
    m = (jax.nn.one_hot(i0, n_in) * (1.0 - frac)[:, None]
         + jax.nn.one_hot(i0 + 1, n_in) * frac[:, None])
    return m.astype(jnp.float32)


def upsample2x_chw(y_chw_flat, B, C, H, W):
    """y_chw_flat: (B, C*H, W) f32 (already projected) -> (B, C, 2H, 2W)."""
    Ho, Wo = 2 * H, 2 * W
    ry = _bilinear_matrix(H, Ho)            # (Ho, H)
    rxT = _bilinear_matrix(W, Wo).T         # (W, Wo)
    return pl.pallas_call(
        _upsample_kernel,
        out_shape=jax.ShapeDtypeStruct((B, C, Ho, Wo), jnp.float32),
        grid=(B, C),
        in_specs=[
            pl.BlockSpec((1, H, W), lambda b, c: (b, c, 0)),
            pl.BlockSpec((W, Wo), lambda b, c: (0, 0)),
            pl.BlockSpec((Ho, H), lambda b, c: (0, 0)),
        ],
        out_specs=pl.BlockSpec((1, 1, Ho, Wo), lambda b, c: (b, c, 0, 0)),
        compiler_params=pltpu.CompilerParams(
            dimension_semantics=("parallel", "parallel"),
            vmem_limit_bytes=_VMEM_LIMIT),
    )(y_chw_flat, rxT, ry)


# ----------------------------------------------------------------------------
# FusionBlock forward (wrapper / glue)
# ----------------------------------------------------------------------------
def fusion_block_forward(params, x_nchw, residual_nchw=None,
                         compute_dtype=jnp.bfloat16):
    x = jnp.transpose(x_nchw, (0, 2, 3, 1)).astype(jnp.float32)   # NCHW -> NHWC
    B, H, W, C = x.shape

    if residual_nchw is not None:
        res = jnp.transpose(residual_nchw, (0, 2, 3, 1)).astype(jnp.float32)
        x = rcu_block(x, params["rcu1"], extra=res,
                      compute_dtype=compute_dtype)                # rcu1(x) + residual
    y = rcu_block(x, params["rcu2"],
                  proj=(params["proj_w"], params["proj_b"]),
                  compute_dtype=compute_dtype)                    # rcu2 + 1x1 proj, (B, C, H*W)
    y = y.reshape(B, C * H, W)                                    # free reshape, CHW-flat
    return upsample2x_chw(y, B, C, H, W)                          # (B, C, 2H, 2W) NCHW


# ----------------------------------------------------------------------------
# Deterministic parameter init (shapes per FusionBlock.__init__)
# ----------------------------------------------------------------------------
def init_params(key, C):
    def conv_bn(k):
        kw, kb, kg, kbe, km, kv = jax.random.split(k, 6)
        w = 0.1 * jax.random.normal(kw, (3, 3, C, C), jnp.float32)      # HWIO
        b = 0.1 * jax.random.normal(kb, (C,), jnp.float32)
        gamma = 1.0 + 0.1 * jax.random.normal(kg, (C,), jnp.float32)
        beta = 0.1 * jax.random.normal(kbe, (C,), jnp.float32)
        mean = 0.1 * jax.random.normal(km, (C,), jnp.float32)
        var = 1.0 + 0.1 * jax.random.uniform(kv, (C,), jnp.float32)
        scale = gamma / jnp.sqrt(var + 1e-5)
        bias = (b - mean) * scale + beta
        return w, scale.reshape(1, C), bias.reshape(1, C)

    ks = jax.random.split(key, 6)

    def rcu_params(k1, k2):
        w1, s1, b1 = conv_bn(k1)
        w2, s2, b2 = conv_bn(k2)
        return {"w1": w1, "s1": s1, "b1": b1, "w2": w2, "s2": s2, "b2": b2}

    return {
        "rcu1": rcu_params(ks[0], ks[1]),
        "rcu2": rcu_params(ks[2], ks[3]),
        "proj_w": 0.1 * jax.random.normal(ks[4], (C, C), jnp.float32),   # [Cin, Cout]
        "proj_b": 0.1 * jax.random.normal(ks[5], (C,), jnp.float32),
    }


# ----------------------------------------------------------------------------
# Pure-JAX reference (all f32), matching PyTorch op order exactly.
# ----------------------------------------------------------------------------
def _ref_conv_bn(x, w, scale, bias):
    y = lax.conv_general_dilated(jax.nn.relu(x), w, (1, 1), "SAME",
                                 dimension_numbers=("NHWC", "HWIO", "NHWC"))
    return y * scale.reshape(1, 1, 1, -1) + bias.reshape(1, 1, 1, -1)


def reference_forward(params, x_nchw, residual_nchw=None):
    x = jnp.transpose(x_nchw, (0, 2, 3, 1)).astype(jnp.float32)

    def rcu(xin, p):
        y1 = _ref_conv_bn(xin, p["w1"], p["s1"], p["b1"])
        return xin + _ref_conv_bn(y1, p["w2"], p["s2"], p["b2"])

    if residual_nchw is not None:
        x = rcu(x, params["rcu1"]) + jnp.transpose(residual_nchw, (0, 2, 3, 1))
    x = rcu(x, params["rcu2"])
    B, H, W, C = x.shape
    ry = _bilinear_matrix(H, 2 * H)
    rx = _bilinear_matrix(W, 2 * W)
    up = jnp.einsum("oh,bhwc->bowc", ry, x)
    up = jnp.einsum("pw,bowc->bopc", rx, up)
    out = jnp.einsum("bhwc,ck->bhwk", up, params["proj_w"]) + params["proj_b"]
    return jnp.transpose(out, (0, 3, 1, 2))             # NHWC -> NCHW


if __name__ == "__main__":
    B, C, H, W = 2, 8, 16, 16
    key = jax.random.PRNGKey(0)
    kx, kr, kp = jax.random.split(key, 3)
    x = jax.random.normal(kx, (B, C, H, W), jnp.float32)
    residual = jax.random.normal(kr, (B, C, H, W), jnp.float32)
    params = init_params(kp, C)

    ref = reference_forward(params, x, residual)
    ref_nores = reference_forward(params, x, None)

    # 1) All-f32 kernel path: must match the reference tightly.
    out_f32 = jax.block_until_ready(
        fusion_block_forward(params, x, residual, compute_dtype=jnp.float32))
    assert out_f32.shape == (B, C, 2 * H, 2 * W), out_f32.shape
    assert bool(jnp.all(jnp.isfinite(out_f32)))
    assert bool(jnp.allclose(out_f32, ref, rtol=1e-4, atol=1e-4)), \
        float(jnp.max(jnp.abs(out_f32 - ref)))

    out_f32_nores = jax.block_until_ready(
        fusion_block_forward(params, x, None, compute_dtype=jnp.float32))
    assert bool(jnp.allclose(out_f32_nores, ref_nores, rtol=1e-4, atol=1e-4)), \
        float(jnp.max(jnp.abs(out_f32_nores - ref_nores)))

    # 2) bf16-matmul path (default): tolerance derived from the bf16 mantissa
    #    (~0.4% relative per operand, accumulated in f32 over K=9*C terms).
    out_bf16 = jax.block_until_ready(fusion_block_forward(params, x, residual))
    assert bool(jnp.all(jnp.isfinite(out_bf16)))
    assert bool(jnp.allclose(out_bf16, ref, rtol=2e-2, atol=5e-2)), \
        float(jnp.max(jnp.abs(out_bf16 - ref)))

    print("KERNEL_OK")
</pallas_src>

<mosaic_0001>
module attributes {stable_mosaic.version = 11 : i64} {
  func.func @kernel(%arg0: i32, %arg1: memref<1x16x16x8xf32, #tpu.memory_space<vmem>>, %arg2: memref<1x16x16x8xf32, #tpu.memory_space<vmem>>, %arg3: memref<72x8xf32, #tpu.memory_space<vmem>>, %arg4: memref<1x8xf32, #tpu.memory_space<vmem>>, %arg5: memref<1x8xf32, #tpu.memory_space<vmem>>, %arg6: memref<72x8xf32, #tpu.memory_space<vmem>>, %arg7: memref<1x8xf32, #tpu.memory_space<vmem>>, %arg8: memref<1x8xf32, #tpu.memory_space<vmem>>, %arg9: memref<1x16x16x8xf32, #tpu.memory_space<vmem>>, %arg10: memref<18x18x8xf32, #tpu.memory_space<vmem>>, %arg11: memref<256x72xf32, #tpu.memory_space<vmem>>) attributes {dimension_semantics = [#tpu.dimension_semantics<parallel>], iteration_bounds = array<i64: 2>, scalar_prefetch = 0 : i64, scratch_operands = 2 : i64, tpu.core_type = #tpu.core_type<tc>, window_params = [{transform_indices = @transform_0, window_bounds = array<i64: 1, 16, 16, 8>}, {transform_indices = @transform_1, window_bounds = array<i64: 1, 16, 16, 8>}, {pipeline_mode = #tpu.pipeline_mode<synchronous>, transform_indices = @transform_2, window_bounds = array<i64: 72, 8>}, {pipeline_mode = #tpu.pipeline_mode<synchronous>, transform_indices = @transform_3, window_bounds = array<i64: 1, 8>}, {pipeline_mode = #tpu.pipeline_mode<synchronous>, transform_indices = @transform_4, window_bounds = array<i64: 1, 8>}, {pipeline_mode = #tpu.pipeline_mode<synchronous>, transform_indices = @transform_5, window_bounds = array<i64: 72, 8>}, {pipeline_mode = #tpu.pipeline_mode<synchronous>, transform_indices = @transform_6, window_bounds = array<i64: 1, 8>}, {pipeline_mode = #tpu.pipeline_mode<synchronous>, transform_indices = @transform_7, window_bounds = array<i64: 1, 8>}, {transform_indices = @transform_8, window_bounds = array<i64: 1, 16, 16, 8>}]} {
    %cst = arith.constant 0.000000e+00 : f32
    %0 = vector.broadcast %cst : f32 to vector<18x18x8xf32>
    %c0 = arith.constant 0 : index
    %c0_0 = arith.constant 0 : index
    %c0_1 = arith.constant 0 : index
    %1 = vector.load %arg10[%c0, %c0_0, %c0_1] : memref<18x18x8xf32, #tpu.memory_space<vmem>>, vector<18x18x8xf32>
    tpu.vector_store %arg10[%c0, %c0_0, %c0_1], %0 {strides = array<i32>} : memref<18x18x8xf32, #tpu.memory_space<vmem>>, vector<18x18x8xf32>,
    %c0_2 = arith.constant 0 : index
    %c0_3 = arith.constant 0 : index
    %c0_4 = arith.constant 0 : index
    %c0_5 = arith.constant 0 : index
    %2 = vector.load %arg1[%c0_2, %c0_3, %c0_4, %c0_5] : memref<1x16x16x8xf32, #tpu.memory_space<vmem>>, vector<1x16x16x8xf32>
    %3 = vector.shape_cast %2 : vector<1x16x16x8xf32> to vector<16x16x8xf32>
    %cst_6 = arith.constant 0.000000e+00 : f32
    %4 = vector.broadcast %cst_6 : f32 to vector<16x16x8xf32>
    %5 = arith.maximumf %3, %4 : vector<16x16x8xf32>
    %c1 = arith.constant 1 : index
    %c1_7 = arith.constant 1 : index
    %c0_8 = arith.constant 0 : index
    %6 = vector.load %arg10[%c1, %c1_7, %c0_8] : memref<18x18x8xf32, #tpu.memory_space<vmem>>, vector<16x16x8xf32>
    tpu.vector_store %arg10[%c1, %c1_7, %c0_8], %5 {strides = array<i32>} : memref<18x18x8xf32, #tpu.memory_space<vmem>>, vector<16x16x8xf32>,
    %c0_9 = arith.constant 0 : index
    %c0_10 = arith.constant 0 : index
    %c0_11 = arith.constant 0 : index
    %7 = vector.load %arg10[%c0_9, %c0_10, %c0_11] : memref<18x18x8xf32, #tpu.memory_space<vmem>>, vector<16x16x8xf32>
    %8 = vector.shape_cast %7 : vector<16x16x8xf32> to vector<256x8xf32>
    %c0_12 = arith.constant 0 : index
    %c0_13 = arith.constant 0 : index
    %9 = vector.load %arg11[%c0_12, %c0_13] : memref<256x72xf32, #tpu.memory_space<vmem>>, vector<256x8xf32>
    tpu.vector_store %arg11[%c0_12, %c0_13], %8 {strides = array<i32>} : memref<256x72xf32, #tpu.memory_space<vmem>>, vector<256x8xf32>,
    %c0_14 = arith.constant 0 : index
    %c1_15 = arith.constant 1 : index
    %c0_16 = arith.constant 0 : index
    %10 = vector.load %arg10[%c0_14, %c1_15, %c0_16] : memref<18x18x8xf32, #tpu.memory_space<vmem>>, vector<16x16x8xf32>
    %11 = vector.shape_cast %10 : vector<16x16x8xf32> to vector<256x8xf32>
    %c0_17 = arith.constant 0 : index
    %c8 = arith.constant 8 : index
    %12 = vector.load %arg11[%c0_17, %c8] : memref<256x72xf32, #tpu.memory_space<vmem>>, vector<256x8xf32>
    tpu.vector_store %arg11[%c0_17, %c8], %11 {strides = array<i32>} : memref<256x72xf32, #tpu.memory_space<vmem>>, vector<256x8xf32>,
    %c0_18 = arith.constant 0 : index
    %c2 = arith.constant 2 : index
    %c0_19 = arith.constant 0 : index
    %13 = vector.load %arg10[%c0_18, %c2, %c0_19] : memref<18x18x8xf32, #tpu.memory_space<vmem>>, vector<16x16x8xf32>
    %14 = vector.shape_cast %13 : vector<16x16x8xf32> to vector<256x8xf32>
    %c0_20 = arith.constant 0 : index
    %c16 = arith.constant 16 : index
    %15 = vector.load %arg11[%c0_20, %c16] : memref<256x72xf32, #tpu.memory_space<vmem>>, vector<256x8xf32>
    tpu.vector_store %arg11[%c0_20, %c16], %14 {strides = array<i32>} : memref<256x72xf32, #tpu.memory_space<vmem>>, vector<256x8xf32>,
    %c1_21 = arith.constant 1 : index
    %c0_22 = arith.constant 0 : index
    %c0_23 = arith.constant 0 : index
    %16 = vector.load %arg10[%c1_21, %c0_22, %c0_23] : memref<18x18x8xf32, #tpu.memory_space<vmem>>, vector<16x16x8xf32>
    %17 = vector.shape_cast %16 : vector<16x16x8xf32> to vector<256x8xf32>
    %c0_24 = arith.constant 0 : index
    %c24 = arith.constant 24 : index
    %18 = vector.load %arg11[%c0_24, %c24] : memref<256x72xf32, #tpu.memory_space<vmem>>, vector<256x8xf32>
    tpu.vector_store %arg11[%c0_24, %c24], %17 {strides = array<i32>} : memref<256x72xf32, #tpu.memory_space<vmem>>, vector<256x8xf32>,
    %c1_25 = arith.constant 1 : index
    %c1_26 = arith.constant 1 : index
    %c0_27 = arith.constant 0 : index
    %19 = vector.load %arg10[%c1_25, %c1_26, %c0_27] : memref<18x18x8xf32, #tpu.memory_space<vmem>>, vector<16x16x8xf32>
    %20 = vector.shape_cast %19 : vector<16x16x8xf32> to vector<256x8xf32>
    %c0_28 = arith.constant 0 : index
    %c32 = arith.constant 32 : index
    %21 = vector.load %arg11[%c0_28, %c32] : memref<256x72xf32, #tpu.memory_space<vmem>>, vector<256x8xf32>
    tpu.vector_store %arg11[%c0_28, %c32], %20 {strides = array<i32>} : memref<256x72xf32, #tpu.memory_space<vmem>>, vector<256x8xf32>,
    %c1_29 = arith.constant 1 : index
    %c2_30 = arith.constant 2 : index
    %c0_31 = arith.constant 0 : index
    %22 = vector.load %arg10[%c1_29, %c2_30, %c0_31] : memref<18x18x8xf32, #tpu.memory_space<vmem>>, vector<16x16x8xf32>
    %23 = vector.shape_cast %22 : vector<16x16x8xf32> to vector<256x8xf32>
    %c0_32 = arith.constant 0 : index
    %c40 = arith.constant 40 : index
    %24 = vector.load %arg11[%c0_32, %c40] : memref<256x72xf32, #tpu.memory_space<vmem>>, vector<256x8xf32>
    tpu.vector_store %arg11[%c0_32, %c40], %23 {strides = array<i32>} : memref<256x72xf32, #tpu.memory_space<vmem>>, vector<256x8xf32>,
    %c2_33 = arith.constant 2 : index
    %c0_34 = arith.constant 0 : index
    %c0_35 = arith.constant 0 : index
    %25 = vector.load %arg10[%c2_33, %c0_34, %c0_35] : memref<18x18x8xf32, #tpu.memory_space<vmem>>, vector<16x16x8xf32>
    %26 = vector.shape_cast %25 : vector<16x16x8xf32> to vector<256x8xf32>
    %c0_36 = arith.constant 0 : index
    %c48 = arith.constant 48 : index
    %27 = vector.load %arg11[%c0_36, %c48] : memref<256x72xf32, #tpu.memory_space<vmem>>, vector<256x8xf32>
    tpu.vector_store %arg11[%c0_36, %c48], %26 {strides = array<i32>} : memref<256x72xf32, #tpu.memory_space<vmem>>, vector<256x8xf32>,
    %c2_37 = arith.constant 2 : index
    %c1_38 = arith.constant 1 : index
    %c0_39 = arith.constant 0 : index
    %28 = vector.load %arg10[%c2_37, %c1_38, %c0_39] : memref<18x18x8xf32, #tpu.memory_space<vmem>>, vector<16x16x8xf32>
    %29 = vector.shape_cast %28 : vector<16x16x8xf32> to vector<256x8xf32>
    %c0_40 = arith.constant 0 : index
    %c56 = arith.constant 56 : index
    %30 = vector.load %arg11[%c0_40, %c56] : memref<256x72xf32, #tpu.memory_space<vmem>>, vector<256x8xf32>
    tpu.vector_store %arg11[%c0_40, %c56], %29 {strides = array<i32>} : memref<256x72xf32, #tpu.memory_space<vmem>>, vector<256x8xf32>,
    %c2_41 = arith.constant 2 : index
    %c2_42 = arith.constant 2 : index
    %c0_43 = arith.constant 0 : index
    %31 = vector.load %arg10[%c2_41, %c2_42, %c0_43] : memref<18x18x8xf32, #tpu.memory_space<vmem>>, vector<16x16x8xf32>
    %32 = vector.shape_cast %31 : vector<16x16x8xf32> to vector<256x8xf32>
    %c0_44 = arith.constant 0 : index
    %c64 = arith.constant 64 : index
    %33 = vector.load %arg11[%c0_44, %c64] : memref<256x72xf32, #tpu.memory_space<vmem>>, vector<256x8xf32>
    tpu.vector_store %arg11[%c0_44, %c64], %32 {strides = array<i32>} : memref<256x72xf32, #tpu.memory_space<vmem>>, vector<256x8xf32>,
    %c0_45 = arith.constant 0 : index
    %c0_46 = arith.constant 0 : index
    %34 = vector.load %arg11[%c0_45, %c0_46] : memref<256x72xf32, #tpu.memory_space<vmem>>, vector<256x72xf32>
    %c0_47 = arith.constant 0 : index
    %c0_48 = arith.constant 0 : index
    %35 = vector.load %arg3[%c0_47, %c0_48] : memref<72x8xf32, #tpu.memory_space<vmem>>, vector<72x8xf32>
    %cst_49 = arith.constant dense<0.000000e+00> : vector<256x8xf32>
    %36 = tpu.matmul %34, %35, %cst_49 {dimension_numbers = #tpu.dot_dimension_numbers<[1], [0], [0], [1], [0, 0, 1, 1], [], []>} : vector<256x72xf32>, vector<72x8xf32>, vector<256x8xf32> -> vector<256x8xf32>
    %c0_50 = arith.constant 0 : index
    %c0_51 = arith.constant 0 : index
    %37 = vector.load %arg4[%c0_50, %c0_51] : memref<1x8xf32, #tpu.memory_space<vmem>>, vector<1x8xf32>
    %38 = vector.broadcast %37 : vector<1x8xf32> to vector<256x8xf32>
    %39 = arith.mulf %36, %38 : vector<256x8xf32>
    %c0_52 = arith.constant 0 : index
    %c0_53 = arith.constant 0 : index
    %40 = vector.load %arg5[%c0_52, %c0_53] : memref<1x8xf32, #tpu.memory_space<vmem>>, vector<1x8xf32>
    %41 = vector.broadcast %40 : vector<1x8xf32> to vector<256x8xf32>
    %42 = arith.addf %39, %41 : vector<256x8xf32>
    %cst_54 = arith.constant 0.000000e+00 : f32
    %43 = vector.broadcast %cst_54 : f32 to vector<256x8xf32>
    %44 = arith.maximumf %42, %43 : vector<256x8xf32>
    %45 = vector.shape_cast %44 : vector<256x8xf32> to vector<16x16x8xf32>
    %c1_55 = arith.constant 1 : index
    %c1_56 = arith.constant 1 : index
    %c0_57 = arith.constant 0 : index
    %46 = vector.load %arg10[%c1_55, %c1_56, %c0_57] : memref<18x18x8xf32, #tpu.memory_space<vmem>>, vector<16x16x8xf32>
    tpu.vector_store %arg10[%c1_55, %c1_56, %c0_57], %45 {strides = array<i32>} : memref<18x18x8xf32, #tpu.memory_space<vmem>>, vector<16x16x8xf32>,
    %c0_58 = arith.constant 0 : index
    %c0_59 = arith.constant 0 : index
    %c0_60 = arith.constant 0 : index
    %47 = vector.load %arg10[%c0_58, %c0_59, %c0_60] : memref<18x18x8xf32, #tpu.memory_space<vmem>>, vector<16x16x8xf32>
    %48 = vector.shape_cast %47 : vector<16x16x8xf32> to vector<256x8xf32>
    %c0_61 = arith.constant 0 : index
    %c0_62 = arith.constant 0 : index
    %49 = vector.load %arg11[%c0_61, %c0_62] : memref<256x72xf32, #tpu.memory_space<vmem>>, vector<256x8xf32>
    tpu.vector_store %arg11[%c0_61, %c0_62], %48 {strides = array<i32>} : memref<256x72xf32, #tpu.memory_space<vmem>>, vector<256x8xf32>,
    %c0_63 = arith.constant 0 : index
    %c1_64 = arith.constant 1 : index
    %c0_65 = arith.constant 0 : index
    %50 = vector.load %arg10[%c0_63, %c1_64, %c0_65] : memref<18x18x8xf32, #tpu.memory_space<vmem>>, vector<16x16x8xf32>
    %51 = vector.shape_cast %50 : vector<16x16x8xf32> to vector<256x8xf32>
    %c0_66 = arith.constant 0 : index
    %c8_67 = arith.constant 8 : index
    %52 = vector.load %arg11[%c0_66, %c8_67] : memref<256x72xf32, #tpu.memory_space<vmem>>, vector<256x8xf32>
    tpu.vector_store %arg11[%c0_66, %c8_67], %51 {strides = array<i32>} : memref<256x72xf32, #tpu.memory_space<vmem>>, vector<256x8xf32>,
    %c0_68 = arith.constant 0 : index
    %c2_69 = arith.constant 2 : index
    %c0_70 = arith.constant 0 : index
    %53 = vector.load %arg10[%c0_68, %c2_69, %c0_70] : memref<18x18x8xf32, #tpu.memory_space<vmem>>, vector<16x16x8xf32>
    %54 = vector.shape_cast %53 : vector<16x16x8xf32> to vector<256x8xf32>
    %c0_71 = arith.constant 0 : index
    %c16_72 = arith.constant 16 : index
    %55 = vector.load %arg11[%c0_71, %c16_72] : memref<256x72xf32, #tpu.memory_space<vmem>>, vector<256x8xf32>
    tpu.vector_store %arg11[%c0_71, %c16_72], %54 {strides = array<i32>} : memref<256x72xf32, #tpu.memory_space<vmem>>, vector<256x8xf32>,
    %c1_73 = arith.constant 1 : index
    %c0_74 = arith.constant 0 : index
    %c0_75 = arith.constant 0 : index
    %56 = vector.load %arg10[%c1_73, %c0_74, %c0_75] : memref<18x18x8xf32, #tpu.memory_space<vmem>>, vector<16x16x8xf32>
    %57 = vector.shape_cast %56 : vector<16x16x8xf32> to vector<256x8xf32>
    %c0_76 = arith.constant 0 : index
    %c24_77 = arith.constant 24 : index
    %58 = vector.load %arg11[%c0_76, %c24_77] : memref<256x72xf32, #tpu.memory_space<vmem>>, vector<256x8xf32>
    tpu.vector_store %arg11[%c0_76, %c24_77], %57 {strides = array<i32>} : memref<256x72xf32, #tpu.memory_space<vmem>>, vector<256x8xf32>,
    %c1_78 = arith.constant 1 : index
    %c1_79 = arith.constant 1 : index
    %c0_80 = arith.constant 0 : index
    %59 = vector.load %arg10[%c1_78, %c1_79, %c0_80] : memref<18x18x8xf32, #tpu.memory_space<vmem>>, vector<16x16x8xf32>
    %60 = vector.shape_cast %59 : vector<16x16x8xf32> to vector<256x8xf32>
    %c0_81 = arith.constant 0 : index
    %c32_82 = arith.constant 32 : index
    %61 = vector.load %arg11[%c0_81, %c32_82] : memref<256x72xf32, #tpu.memory_space<vmem>>, vector<256x8xf32>
    tpu.vector_store %arg11[%c0_81, %c32_82], %60 {strides = array<i32>} : memref<256x72xf32, #tpu.memory_space<vmem>>, vector<256x8xf32>,
    %c1_83 = arith.constant 1 : index
    %c2_84 = arith.constant 2 : index
    %c0_85 = arith.constant 0 : index
    %62 = vector.load %arg10[%c1_83, %c2_84, %c0_85] : memref<18x18x8xf32, #tpu.memory_space<vmem>>, vector<16x16x8xf32>
    %63 = vector.shape_cast %62 : vector<16x16x8xf32> to vector<256x8xf32>
    %c0_86 = arith.constant 0 : index
    %c40_87 = arith.constant 40 : index
    %64 = vector.load %arg11[%c0_86, %c40_87] : memref<256x72xf32, #tpu.memory_space<vmem>>, vector<256x8xf32>
    tpu.vector_store %arg11[%c0_86, %c40_87], %63 {strides = array<i32>} : memref<256x72xf32, #tpu.memory_space<vmem>>, vector<256x8xf32>,
    %c2_88 = arith.constant 2 : index
    %c0_89 = arith.constant 0 : index
    %c0_90 = arith.constant 0 : index
    %65 = vector.load %arg10[%c2_88, %c0_89, %c0_90] : memref<18x18x8xf32, #tpu.memory_space<vmem>>, vector<16x16x8xf32>
    %66 = vector.shape_cast %65 : vector<16x16x8xf32> to vector<256x8xf32>
    %c0_91 = arith.constant 0 : index
    %c48_92 = arith.constant 48 : index
    %67 = vector.load %arg11[%c0_91, %c48_92] : memref<256x72xf32, #tpu.memory_space<vmem>>, vector<256x8xf32>
    tpu.vector_store %arg11[%c0_91, %c48_92], %66 {strides = array<i32>} : memref<256x72xf32, #tpu.memory_space<vmem>>, vector<256x8xf32>,
    %c2_93 = arith.constant 2 : index
    %c1_94 = arith.constant 1 : index
    %c0_95 = arith.constant 0 : index
    %68 = vector.load %arg10[%c2_93, %c1_94, %c0_95] : memref<18x18x8xf32, #tpu.memory_space<vmem>>, vector<16x16x8xf32>
    %69 = vector.shape_cast %68 : vector<16x16x8xf32> to vector<256x8xf32>
    %c0_96 = arith.constant 0 : index
    %c56_97 = arith.constant 56 : index
    %70 = vector.load %arg11[%c0_96, %c56_97] : memref<256x72xf32, #tpu.memory_space<vmem>>, vector<256x8xf32>
    tpu.vector_store %arg11[%c0_96, %c56_97], %69 {strides = array<i32>} : memref<256x72xf32, #tpu.memory_space<vmem>>, vector<256x8xf32>,
    %c2_98 = arith.constant 2 : index
    %c2_99 = arith.constant 2 : index
    %c0_100 = arith.constant 0 : index
    %71 = vector.load %arg10[%c2_98, %c2_99, %c0_100] : memref<18x18x8xf32, #tpu.memory_space<vmem>>, vector<16x16x8xf32>
    %72 = vector.shape_cast %71 : vector<16x16x8xf32> to vector<256x8xf32>
    %c0_101 = arith.constant 0 : index
    %c64_102 = arith.constant 64 : index
    %73 = vector.load %arg11[%c0_101, %c64_102] : memref<256x72xf32, #tpu.memory_space<vmem>>, vector<256x8xf32>
    tpu.vector_store %arg11[%c0_101, %c64_102], %72 {strides = array<i32>} : memref<256x72xf32, #tpu.memory_space<vmem>>, vector<256x8xf32>,
    %c0_103 = arith.constant 0 : index
    %c0_104 = arith.constant 0 : index
    %74 = vector.load %arg11[%c0_103, %c0_104] : memref<256x72xf32, #tpu.memory_space<vmem>>, vector<256x72xf32>
    %c0_105 = arith.constant 0 : index
    %c0_106 = arith.constant 0 : index
    %75 = vector.load %arg6[%c0_105, %c0_106] : memref<72x8xf32, #tpu.memory_space<vmem>>, vector<72x8xf32>
    %cst_107 = arith.constant dense<0.000000e+00> : vector<256x8xf32>
    %76 = tpu.matmul %74, %75, %cst_107 {dimension_numbers = #tpu.dot_dimension_numbers<[1], [0], [0], [1], [0, 0, 1, 1], [], []>} : vector<256x72xf32>, vector<72x8xf32>, vector<256x8xf32> -> vector<256x8xf32>
    %c0_108 = arith.constant 0 : index
    %c0_109 = arith.constant 0 : index
    %77 = vector.load %arg7[%c0_108, %c0_109] : memref<1x8xf32, #tpu.memory_space<vmem>>, vector<1x8xf32>
    %78 = vector.broadcast %77 : vector<1x8xf32> to vector<256x8xf32>
    %79 = arith.mulf %76, %78 : vector<256x8xf32>
    %c0_110 = arith.constant 0 : index
    %c0_111 = arith.constant 0 : index
    %80 = vector.load %arg8[%c0_110, %c0_111] : memref<1x8xf32, #tpu.memory_space<vmem>>, vector<1x8xf32>
    %81 = vector.broadcast %80 : vector<1x8xf32> to vector<256x8xf32>
    %82 = arith.addf %79, %81 : vector<256x8xf32>
    %c0_112 = arith.constant 0 : index
    %c0_113 = arith.constant 0 : index
    %c0_114 = arith.constant 0 : index
    %c0_115 = arith.constant 0 : index
    %83 = vector.load %arg1[%c0_112, %c0_113, %c0_114, %c0_115] : memref<1x16x16x8xf32, #tpu.memory_space<vmem>>, vector<1x16x16x8xf32>
    %84 = vector.shape_cast %83 : vector<1x16x16x8xf32> to vector<16x16x8xf32>
    %85 = vector.shape_cast %84 : vector<16x16x8xf32> to vector<256x8xf32>
    %86 = arith.addf %85, %82 : vector<256x8xf32>
    %c0_116 = arith.constant 0 : index
    %c0_117 = arith.constant 0 : index
    %c0_118 = arith.constant 0 : index
    %c0_119 = arith.constant 0 : index
    %87 = vector.load %arg2[%c0_116, %c0_117, %c0_118, %c0_119] : memref<1x16x16x8xf32, #tpu.memory_space<vmem>>, vector<1x16x16x8xf32>
    %88 = vector.shape_cast %87 : vector<1x16x16x8xf32> to vector<16x16x8xf32>
    %89 = vector.shape_cast %88 : vector<16x16x8xf32> to vector<256x8xf32>
    %90 = arith.addf %86, %89 : vector<256x8xf32>
    %91 = vector.shape_cast %90 : vector<256x8xf32> to vector<16x16x8xf32>
    %c0_120 = arith.constant 0 : index
    %c0_121 = arith.constant 0 : index
    %c0_122 = arith.constant 0 : index
    %c0_123 = arith.constant 0 : index
    %92 = vector.load %arg9[%c0_120, %c0_121, %c0_122, %c0_123] : memref<1x16x16x8xf32, #tpu.memory_space<vmem>>, vector<1x16x16x8xf32>
    %93 = vector.shape_cast %92 : vector<1x16x16x8xf32> to vector<16x16x8xf32>
    %94 = vector.shape_cast %91 : vector<16x16x8xf32> to vector<1x16x16x8xf32>
    tpu.vector_store %arg9[%c0_120, %c0_121, %c0_122, %c0_123], %94 {strides = array<i32>} : memref<1x16x16x8xf32, #tpu.memory_space<vmem>>, vector<1x16x16x8xf32>,
    return
  }
  func.func @transform_0(%arg0: i32) -> (i32, i32, i32, i32) {
    %c0_i32 = arith.constant 0 : i32
    %c0_i32_0 = arith.constant 0 : i32
    %c0_i32_1 = arith.constant 0 : i32
    %c0_i32_2 = arith.constant 0 : i32
    return %arg0, %c0_i32, %c0_i32_0, %c0_i32_1 : i32, i32, i32, i32
  }
  func.func @transform_1(%arg0: i32) -> (i32, i32, i32, i32) {
    %c0_i32 = arith.constant 0 : i32
    %c0_i32_0 = arith.constant 0 : i32
    %c0_i32_1 = arith.constant 0 : i32
    %c0_i32_2 = arith.constant 0 : i32
    return %arg0, %c0_i32, %c0_i32_0, %c0_i32_1 : i32, i32, i32, i32
  }
  func.func @transform_2(%arg0: i32) -> (i32, i32) {
    %c0_i32 = arith.constant 0 : i32
    %c0_i32_0 = arith.constant 0 : i32
    %c0_i32_1 = arith.constant 0 : i32
    return %c0_i32, %c0_i32_0 : i32, i32
  }
  func.func @transform_3(%arg0: i32) -> (i32, i32) {
    %c0_i32 = arith.constant 0 : i32
    %c0_i32_0 = arith.constant 0 : i32
    %c0_i32_1 = arith.constant 0 : i32
    return %c0_i32, %c0_i32_0 : i32, i32
  }
  func.func @transform_4(%arg0: i32) -> (i32, i32) {
    %c0_i32 = arith.constant 0 : i32
    %c0_i32_0 = arith.constant 0 : i32
    %c0_i32_1 = arith.constant 0 : i32
    return %c0_i32, %c0_i32_0 : i32, i32
  }
  func.func @transform_5(%arg0: i32) -> (i32, i32) {
    %c0_i32 = arith.constant 0 : i32
    %c0_i32_0 = arith.constant 0 : i32
    %c0_i32_1 = arith.constant 0 : i32
    return %c0_i32, %c0_i32_0 : i32, i32
  }
  func.func @transform_6(%arg0: i32) -> (i32, i32) {
    %c0_i32 = arith.constant 0 : i32
    %c0_i32_0 = arith.constant 0 : i32
    %c0_i32_1 = arith.constant 0 : i32
    return %c0_i32, %c0_i32_0 : i32, i32
  }
  func.func @transform_7(%arg0: i32) -> (i32, i32) {
    %c0_i32 = arith.constant 0 : i32
    %c0_i32_0 = arith.constant 0 : i32
    %c0_i32_1 = arith.constant 0 : i32
    return %c0_i32, %c0_i32_0 : i32, i32
  }
  func.func @transform_8(%arg0: i32) -> (i32, i32, i32, i32) {
    %c0_i32 = arith.constant 0 : i32
    %c0_i32_0 = arith.constant 0 : i32
    %c0_i32_1 = arith.constant 0 : i32
    %c0_i32_2 = arith.constant 0 : i32
    return %arg0, %c0_i32, %c0_i32_0, %c0_i32_1 : i32, i32, i32, i32
  }
}

</mosaic_0001>

<bundles_post_ra>
// kernel: tpu_custom_call.1
= control target key start
LH: loop header
LB: loop body
LE: loop exit
PB: predicated region body
PF: predicated region fallthrough
CT: control target
= control target key end

     0   :  { %s5269_s27 = smov 0   ;;  %s7589_s0 = inlined_call_operand.vmem [shape: f32[2,16,16,8], index: 0, kind: input, shape index: {}]   ;;  %s7590_s1 = inlined_call_operand.vmem [shape: f32[2,16,16,8], index: 1, kind: input, shape index: {}]   ;;  %s7591_s2 = inlined_call_operand.vmem [shape: f32[72,8], index: 2, kind: input, shape index: {}]   ;;  %s7592_s3 = inlined_call_operand.vmem [shape: f32[1,8], index: 3, kind: input, shape index: {}]   ;;  %s7593_s4 = inlined_call_operand.vmem [shape: f32[1,8], index: 4, kind: input, shape index: {}]   ;;  %s7594_s5 = inlined_call_operand.vmem [shape: f32[72,8], index: 5, kind: input, shape index: {}]   ;;  %s7595_s6 = inlined_call_operand.vmem [shape: f32[1,8], index: 6, kind: input, shape index: {}]   ;;  %s7596_s7 = inlined_call_operand.vmem [shape: f32[1,8], index: 7, kind: input, shape index: {}]   ;;  %s7597_s8 = inlined_call_operand.vmem [shape: f32[2,16,16,8], index: 8, kind: output, shape index: {}]  }
   0x1 LB: > { %s4860_s28 = sadd.s32 4294967295, %s5213_s27   ;;  %p4864_p0 = scmp.ge.s32.totalorder %s5213_s27, 1  ;;  %s5213_s27 = sphi %s5269_s27, %s18_s27  }
   0x2   : > { %p272_p1 = scmp.lt.s32.totalorder %s5213_s27, 3 }
   0x4   : > { %p273_p2 = pnand %p4864_p0, %p272_p1 }
   0x6   : > { %276 = sbr.rel (%p273_p2) target bundleno = 1689 (0x699), region = 52 }
   0xd   : > { %vm326_vm0 = vcmask 64512   ;;  %p5279_p3 = scmp.lt.s32.totalorder %s4860_s28, 1  ;;  %vm329_vm1 = vcmask 58368   ;;  %v5215_v0 = vmov 0.0   ;;  %s5216_s12 = smov 8   ;;  %vm703_vm2 = vcmask 130112  }
   0xe   : > { %327 = vst.msk [vmem:[#allocation2] sm:$0xff] %vm326_vm0, %v5215_v0  ;;  %328 = vst.msk [vmem:[#allocation2 + $0x8] sm:$0xff] %vm326_vm0, %v5215_v0  ;;  %s5217_s13 = smov 16   ;;  %s5218_s14 = smov 24   ;;  %vm896_vm3 = vcmask 195712   ;;  %vm1089_vm4 = vcmask 261312  }
   0xf   : > { %331 = vst.msk [vmem:[#allocation2 + $0x18] sm:$0xff] %vm326_vm0, %v5215_v0  ;;  %332 = vst.msk [vmem:[#allocation2 + $0x20] sm:$0xff] %vm326_vm0, %v5215_v0  ;;  %s7690_s28 = smov (!%p5279_p3, %s4860_s28), 1  ;;  %s5219_s15 = smov 32   ;;  %vm1282_vm5 = vcmask 326912   ;;  %vm1475_vm6 = vcmask 392512  }
  0x10   : > { %334 = vst.msk [vmem:[#allocation2 + $0x30] sm:$0xff] %vm326_vm0, %v5215_v0  ;;  %335 = vst.msk [vmem:[#allocation2 + $0x38] sm:$0xff] %vm326_vm0, %v5215_v0  ;;  %s5341_s30 = sshll.u32 %s7690_s28, 8  ;;  %s5220_s16 = smov 40   ;;  %vm1669_vm7 = vcmask 458112   ;;  %vm1862_vm8 = vcmask 523712  }
  0x11   : > { %337 = vst.msk [vmem:[#allocation2 + $0x48] sm:$0xff] %vm326_vm0, %v5215_v0  ;;  %338 = vst.msk [vmem:[#allocation2 + $0x50] sm:$0xff] %vm326_vm0, %v5215_v0  ;;  %s5347_s11 = scalar_lea.vmem %s7589_s0, %s5341_s30  ;;  %s5221_s17 = smov 48   ;;  %vm2055_vm9 = vcmask 589312   ;;  %vm2129_vm10 = vcmask 588800  }
  0x12   : > { %340 = vst.msk [vmem:[#allocation2 + $0x60] sm:$0xff] %vm326_vm0, %v5215_v0  ;;  %341 = vst.msk [vmem:[#allocation2 + $0x68] sm:$0xff] %vm326_vm0, %v5215_v0  ;;  %v382_v1 = vld [vmem:[%s5347_s11] sm:$0xff]  ;;  %v383_v2 = vld [vmem:[%s5347_s11 + $0x8] sm:$0xff]  ;;  %s5222_s21 = smov 56   ;;  %s5223_s24 = smov 64  }
  0x13   : > { %343 = vst.msk [vmem:[#allocation2 + $0x78] sm:$0xff] %vm326_vm0, %v5215_v0  ;;  %344 = vst.msk [vmem:[#allocation2 + $0x80] sm:$0xff] %vm326_vm0, %v5215_v0  ;;  %v384_v3 = vld [vmem:[%s5347_s11 + $0x10] sm:$0xff]  ;;  %v414_v4 = vmax.f32 %v382_v1, 0.0  ;;  %v415_v5 = vmax.f32 %v383_v2, 0.0  ;;  %v385_v7 = vld [vmem:[%s5347_s11 + $0x18] sm:$0xff]  ;;  %s7322_s19 = scalar_lea.vmem %s7590_s1, %s5341_s30  ;;  %s7340_s23 = scalar_lea.vmem %s7597_s8, %s5341_s30 }
  0x14   : > { %346 = vst.msk [vmem:[#allocation2 + $0x90] sm:$0xff] %vm326_vm0, %v5215_v0  ;;  %347 = vst.msk [vmem:[#allocation2 + $0x98] sm:$0xff] %vm326_vm0, %v5215_v0  ;;  %v416_v6 = vmax.f32 %v384_v3, 0.0  ;;  %v386_v8 = vld [vmem:[%s5347_s11 + $0x20] sm:$0xff]  ;;  %v387_v9 = vld [vmem:[%s5347_s11 + $0x28] sm:$0xff]  ;;  %v417_v12 = vmax.f32 %v385_v7, 0.0 }
  0x15   : > { %349 = vst.msk [vmem:[#allocation2 + $0xa8] sm:$0xff] %vm326_vm0, %v5215_v0  ;;  %350 = vst.msk [vmem:[#allocation2 + $0xb0] sm:$0xff] %vm326_vm0, %v5215_v0  ;;  %v543_v10 = vld [vmem:[#allocation2 + $0x1] sm:$0xff]  ;;  %v418_v13 = vmax.f32 %v386_v8, 0.0  ;;  %v419_v14 = vmax.f32 %v387_v9, 0.0  ;;  %v388_v15 = vld [vmem:[%s5347_s11 + $0x30] sm:$0xff] }
  0x16   : > { %352 = vst.msk [vmem:[#allocation2 + $0xc0] sm:$0xff] %vm326_vm0, %v5215_v0  ;;  %353 = vst.msk [vmem:[#allocation2 + $0xc8] sm:$0xff] %vm326_vm0, %v5215_v0  ;;  %607 = vrot.lane.b32.xlu0 %v543_v10, %s5216_s12  ;;  %v420_v16 = vmax.f32 %v388_v15, 0.0  ;;  %v389_v17 = vld [vmem:[%s5347_s11 + $0x38] sm:$0xff]  ;;  %v390_v18 = vld [vmem:[%s5347_s11 + $0x40] sm:$0xff] }
  0x17   : > { %355 = vst.msk [vmem:[#allocation2 + $0xd8] sm:$0xff] %vm326_vm0, %v5215_v0  ;;  %356 = vst.msk [vmem:[#allocation2 + $0xe0] sm:$0xff] %vm326_vm0, %v5215_v0  ;;  %v391_v19 = vld [vmem:[%s5347_s11 + $0x48] sm:$0xff]  ;;  %v421_v20 = vmax.f32 %v389_v17, 0.0  ;;  %v422_v21 = vmax.f32 %v390_v18, 0.0  ;;  %v392_v23 = vld [vmem:[%s5347_s11 + $0x50] sm:$0xff] }
  0x18   : > { %358 = vst.msk [vmem:[#allocation2 + $0xf0] sm:$0xff] %vm326_vm0, %v5215_v0  ;;  %359 = vst.msk [vmem:[#allocation2 + $0xf8] sm:$0xff] %vm326_vm0, %v5215_v0  ;;  %v423_v22 = vmax.f32 %v391_v19, 0.0  ;;  %v393_v24 = vld [vmem:[%s5347_s11 + $0x58] sm:$0xff]  ;;  %v394_v25 = vld [vmem:[%s5347_s11 + $0x60] sm:$0xff]  ;;  %v424_v26 = vmax.f32 %v392_v23, 0.0 }
  0x19   : > { %361 = vst.msk [vmem:[#allocation2 + $0x108] sm:$0xff] %vm326_vm0, %v5215_v0  ;;  %362 = vst.msk [vmem:[#allocation2 + $0x110] sm:$0xff] %vm326_vm0, %v5215_v0  ;;  %v425_v27 = vmax.f32 %v393_v24, 0.0  ;;  %v426_v28 = vmax.f32 %v394_v25, 0.0  ;;  %v395_v29 = vld [vmem:[%s5347_s11 + $0x68] sm:$0xff]  ;;  %v396_v30 = vld [vmem:[%s5347_s11 + $0x70] sm:$0xff] }
  0x1a   : > { %364 = vst.msk [vmem:[#allocation2 + $0x120] sm:$0xff] %vm326_vm0, %v5215_v0  ;;  %365 = vst.msk [vmem:[#allocation2 + $0x128] sm:$0xff] %vm326_vm0, %v5215_v0  ;;  %v397_v31 = vld [vmem:[%s5347_s11 + $0x78] sm:$0xff]  ;;  %v427_v32 = vmax.f32 %v395_v29, 0.0  ;;  %v428_v33 = vmax.f32 %v396_v30, 0.0  ;;  %v398_v35 = vld [vmem:[%s5347_s11 + $0x80] sm:$0xff] }
  0x1b   : > { %367 = vst.msk [vmem:[#allocation2 + $0x138] sm:$0xff] %vm326_vm0, %v5215_v0  ;;  %368 = vst.msk [vmem:[#allocation2 + $0x140] sm:$0xff] %vm326_vm0, %v5215_v0  ;;  %v429_v34 = vmax.f32 %v397_v31, 0.0  ;;  %v399_v36 = vld [vmem:[%s5347_s11 + $0x88] sm:$0xff]  ;;  %v400_v37 = vld [vmem:[%s5347_s11 + $0x90] sm:$0xff]  ;;  %v430_v38 = vmax.f32 %v398_v35, 0.0 }
  0x1c   : > { %370 = vst.msk [vmem:[#allocation2 + $0x150] sm:$0xff] %vm326_vm0, %v5215_v0  ;;  %371 = vst.msk [vmem:[#allocation2 + $0x158] sm:$0xff] %vm326_vm0, %v5215_v0  ;;  %v431_v39 = vmax.f32 %v399_v36, 0.0  ;;  %v432_v40 = vmax.f32 %v400_v37, 0.0  ;;  %v401_v41 = vld [vmem:[%s5347_s11 + $0x98] sm:$0xff]  ;;  %v402_v42 = vld [vmem:[%s5347_s11 + $0xa0] sm:$0xff] }
  0x1d   : > { %373 = vst.msk [vmem:[#allocation2 + $0x168] sm:$0xff] %vm326_vm0, %v5215_v0  ;;  %374 = vst.msk [vmem:[#allocation2 + $0x170] sm:$0xff] %vm326_vm0, %v5215_v0  ;;  %v403_v43 = vld [vmem:[%s5347_s11 + $0xa8] sm:$0xff]  ;;  %v433_v44 = vmax.f32 %v401_v41, 0.0  ;;  %v434_v45 = vmax.f32 %v402_v42, 0.0  ;;  %v404_v47 = vld [vmem:[%s5347_s11 + $0xb0] sm:$0xff] }
  0x1e   : > { %376 = vst.msk [vmem:[#allocation2 + $0x180] sm:$0xff] %vm326_vm0, %v5215_v0  ;;  %377 = vst.msk [vmem:[#allocation2 + $0x188] sm:$0xff] %vm326_vm0, %v5215_v0  ;;  %v435_v46 = vmax.f32 %v403_v43, 0.0  ;;  %v405_v48 = vld [vmem:[%s5347_s11 + $0xb8] sm:$0xff]  ;;  %v406_v49 = vld [vmem:[%s5347_s11 + $0xc0] sm:$0xff]  ;;  %v436_v50 = vmax.f32 %v404_v47, 0.0 }
  0x1f   : > { %379 = vst.msk [vmem:[#allocation2 + $0x198] sm:$0xff] %vm326_vm0, %v5215_v0  ;;  %380 = vst.msk [vmem:[#allocation2 + $0x1a0] sm:$0xff] %vm326_vm0, %v5215_v0  ;;  %v437_v51 = vmax.f32 %v405_v48, 0.0  ;;  %v438_v52 = vmax.f32 %v406_v49, 0.0  ;;  %v407_v53 = vld [vmem:[%s5347_s11 + $0xc8] sm:$0xff]  ;;  %v408_v54 = vld [vmem:[%s5347_s11 + $0xd0] sm:$0xff] }
  0x20   : > { %330 = vst.msk [vmem:[#allocation2 + $0x10] sm:$0x3] %vm329_vm1, %v5215_v0  ;;  %333 = vst.msk [vmem:[#allocation2 + $0x28] sm:$0x3] %vm329_vm1, %v5215_v0  ;;  %v409_v55 = vld [vmem:[%s5347_s11 + $0xd8] sm:$0xff]  ;;  %v439_v58 = vmax.f32 %v407_v53, 0.0 }
  0x21   : > { %336 = vst.msk [vmem:[#allocation2 + $0x40] sm:$0x3] %vm329_vm1, %v5215_v0  ;;  %339 = vst.msk [vmem:[#allocation2 + $0x58] sm:$0x3] %vm329_vm1, %v5215_v0  ;;  %v440_v59 = vmax.f32 %v408_v54, 0.0  ;;  %v441_v60 = vmax.f32 %v409_v55, 0.0 }
  0x22   : > { %342 = vst.msk [vmem:[#allocation2 + $0x70] sm:$0x3] %vm329_vm1, %v5215_v0  ;;  %345 = vst.msk [vmem:[#allocation2 + $0x88] sm:$0x3] %vm329_vm1, %v5215_v0  ;;  %v410_v63 = vld [vmem:[%s5347_s11 + $0xe0] sm:$0xff] }
  0x23   : > { %348 = vst.msk [vmem:[#allocation2 + $0xa0] sm:$0x3] %vm329_vm1, %v5215_v0  ;;  %351 = vst.msk [vmem:[#allocation2 + $0xb8] sm:$0x3] %vm329_vm1, %v5215_v0  ;;  %v442_v1 = vmax.f32 %v410_v63, 0.0 }
  0x24   : > { %354 = vst.msk [vmem:[#allocation2 + $0xd0] sm:$0x3] %vm329_vm1, %v5215_v0  ;;  %357 = vst.msk [vmem:[#allocation2 + $0xe8] sm:$0x3] %vm329_vm1, %v5215_v0 }
  0x25   : > { %360 = vst.msk [vmem:[#allocation2 + $0x100] sm:$0x3] %vm329_vm1, %v5215_v0  ;;  %363 = vst.msk [vmem:[#allocation2 + $0x118] sm:$0x3] %vm329_vm1, %v5215_v0 }
  0x26   : > { %366 = vst.msk [vmem:[#allocation2 + $0x130] sm:$0x3] %vm329_vm1, %v5215_v0  ;;  %369 = vst.msk [vmem:[#allocation2 + $0x148] sm:$0x3] %vm329_vm1, %v5215_v0 }
  0x27   : > { %372 = vst.msk [vmem:[#allocation2 + $0x160] sm:$0x3] %vm329_vm1, %v5215_v0  ;;  %375 = vst.msk [vmem:[#allocation2 + $0x178] sm:$0x3] %vm329_vm1, %v5215_v0  ;;  %v544_v11 = vld [vmem:[#allocation2 + $0x9] sm:$0xff] }
  0x28   : > { %378 = vst.msk [vmem:[#allocation2 + $0x190] sm:$0x3] %vm329_vm1, %v5215_v0  ;;  %381 = vst.msk [vmem:[#allocation2 + $0x1a8] sm:$0x3] %vm329_vm1, %v5215_v0  ;;  %609 = vrot.lane.b32.xlu0 %v544_v11, %s5216_s12  ;;  %v411_v0 = vld [vmem:[%s5347_s11 + $0xe8] sm:$0xff]  ;;  %v479_v11 = vld [vmem:[#allocation2] sm:$0xff] }
  0x29   : > { %447 = vst.msk [vmem:[#allocation2 + $0x19] sm:$0xff] %vm326_vm0, %v414_v4  ;;  %448 = vst.msk [vmem:[#allocation2 + $0x21] sm:$0xff] %vm326_vm0, %v415_v5  ;;  %v443_v2 = vmax.f32 %v411_v0, 0.0 }
  0x2a   : > { %449 = vst.msk [vmem:[#allocation2 + $0x31] sm:$0xff] %vm326_vm0, %v416_v6  ;;  %450 = vst.msk [vmem:[#allocation2 + $0x39] sm:$0xff] %vm326_vm0, %v417_v12 }
  0x2b   : > { %451 = vst.msk [vmem:[#allocation2 + $0x49] sm:$0xff] %vm326_vm0, %v418_v13  ;;  %452 = vst.msk [vmem:[#allocation2 + $0x51] sm:$0xff] %vm326_vm0, %v419_v14  ;;  %v480_v13 = vld [vmem:[#allocation2 + $0x8] sm:$0xff] }
  0x2c   : > { %453 = vst.msk [vmem:[#allocation2 + $0x61] sm:$0xff] %vm326_vm0, %v420_v16  ;;  %454 = vst.msk [vmem:[#allocation2 + $0x69] sm:$0xff] %vm326_vm0, %v421_v20 }
  0x2d   : > { %455 = vst.msk [vmem:[#allocation2 + $0x79] sm:$0xff] %vm326_vm0, %v422_v21  ;;  %456 = vst.msk [vmem:[#allocation2 + $0x81] sm:$0xff] %vm326_vm0, %v423_v22 }
  0x2e   : > { %457 = vst.msk [vmem:[#allocation2 + $0x91] sm:$0xff] %vm326_vm0, %v424_v26  ;;  %458 = vst.msk [vmem:[#allocation2 + $0x99] sm:$0xff] %vm326_vm0, %v425_v27 }
  0x2f   : > { %459 = vst.msk [vmem:[#allocation2 + $0xa9] sm:$0xff] %vm326_vm0, %v426_v28  ;;  %460 = vst.msk [vmem:[#allocation2 + $0xb1] sm:$0xff] %vm326_vm0, %v427_v32 }
  0x30   : > { %461 = vst.msk [vmem:[#allocation2 + $0xc1] sm:$0xff] %vm326_vm0, %v428_v33  ;;  %462 = vst.msk [vmem:[#allocation2 + $0xc9] sm:$0xff] %vm326_vm0, %v429_v34  ;;  %v5398_v56 = vld [vmem:[#allocation2 + $0x19] sm:$0xff]  ;;  %v5407_v61 = vld [vmem:[#allocation2 + $0x21] sm:$0xff] }
  0x31   : > { %463 = vst.msk [vmem:[#allocation2 + $0xd9] sm:$0xff] %vm326_vm0, %v430_v38  ;;  %464 = vst.msk [vmem:[#allocation2 + $0xe1] sm:$0xff] %vm326_vm0, %v431_v39  ;;  %v5400_v57 = vld [vmem:[#allocation2 + $0x31] sm:$0xff]  ;;  %611 = vrot.lane.b32.xlu1 %v5398_v56, %s5216_s12  ;;  %v5427_v3 = vld [vmem:[#allocation2 + $0x39] sm:$0xff] }
  0x32   : > { %465 = vst.msk [vmem:[#allocation2 + $0xf1] sm:$0xff] %vm326_vm0, %v432_v40  ;;  %466 = vst.msk [vmem:[#allocation2 + $0xf9] sm:$0xff] %vm326_vm0, %v433_v44  ;;  %615 = vrot.lane.b32.xlu0 %v5400_v57, %s5216_s12  ;;  %v5414_v62 = vld [vmem:[#allocation2 + $0x49] sm:$0xff]  ;;  %v5435_v5 = vld [vmem:[#allocation2 + $0x51] sm:$0xff] }
  0x33   : > { %467 = vst.msk [vmem:[#allocation2 + $0x109] sm:$0xff] %vm326_vm0, %v434_v45  ;;  %468 = vst.msk [vmem:[#allocation2 + $0x111] sm:$0xff] %vm326_vm0, %v435_v46  ;;  %v5429_v4 = vld [vmem:[#allocation2 + $0x61] sm:$0xff]  ;;  %v5443_v7 = vld [vmem:[#allocation2 + $0x69] sm:$0xff] }
  0x34   : > { %469 = vst.msk [vmem:[#allocation2 + $0x121] sm:$0xff] %vm326_vm0, %v436_v50  ;;  %470 = vst.msk [vmem:[#allocation2 + $0x129] sm:$0xff] %vm326_vm0, %v437_v51  ;;  %v5437_v6 = vld [vmem:[#allocation2 + $0x79] sm:$0xff]  ;;  %v5451_v9 = vld [vmem:[#allocation2 + $0x81] sm:$0xff] }
  0x35   : > { %471 = vst.msk [vmem:[#allocation2 + $0x139] sm:$0xff] %vm326_vm0, %v438_v52  ;;  %472 = vst.msk [vmem:[#allocation2 + $0x141] sm:$0xff] %vm326_vm0, %v439_v58  ;;  %613 = vrot.lane.b32.xlu1 %v5407_v61, %s5216_s12  ;;  %v5445_v8 = vld [vmem:[#allocation2 + $0x91] sm:$0xff]  ;;  %v5462_v14 = vld [vmem:[#allocation2 + $0x99] sm:$0xff] }
  0x36   : > { %473 = vst.msk [vmem:[#allocation2 + $0x151] sm:$0xff] %vm326_vm0, %v440_v59  ;;  %474 = vst.msk [vmem:[#allocation2 + $0x159] sm:$0xff] %vm326_vm0, %v441_v60  ;;  %619 = vrot.lane.b32.xlu0 %v5414_v62, %s5216_s12  ;;  %v5453_v10 = vld [vmem:[#allocation2 + $0xa9] sm:$0xff]  ;;  %v5455_v12 = vld [vmem:[#allocation2 + $0x18] sm:$0xff] }
  0x37   : > { %475 = vst.msk [vmem:[#allocation2 + $0x169] sm:$0xff] %vm326_vm0, %v442_v1  ;;  %476 = vst.msk [vmem:[#allocation2 + $0x171] sm:$0xff] %vm326_vm0, %v443_v2  ;;  %v5467_v15 = vld [vmem:[#allocation2 + $0x20] sm:$0xff]  ;;  %v5473_v17 = vld [vmem:[#allocation2 + $0x30] sm:$0xff] }
  0x38   : > { %511 = vst.msk [vmem:[#allocation3] sm:$0xff] %vm326_vm0, %v479_v11  ;;  %513 = vst.msk [vmem:[#allocation3 + $0x10] sm:$0xff] %vm326_vm0, %v5455_v12  ;;  %v5469_v16 = vld [vmem:[#allocation2 + $0xc1] sm:$0xff]  ;;  %v5475_v18 = vld [vmem:[#allocation2 + $0x38] sm:$0xff] }
  0x39   : > { %617 = vrot.lane.b32.xlu1 %v5427_v3, %s5216_s12  ;;  %512 = vst.msk [vmem:[#allocation3 + $0x8] sm:$0xff] %vm326_vm0, %v480_v13  ;;  %514 = vst.msk [vmem:[#allocation3 + $0x18] sm:$0xff] %vm326_vm0, %v5467_v15  ;;  %v5481_v19 = vld [vmem:[#allocation2 + $0x48] sm:$0xff]  ;;  %v5483_v20 = vld [vmem:[#allocation2 + $0x50] sm:$0xff] }
  0x3a   : > { %623 = vrot.lane.b32.xlu0 %v5429_v4, %s5216_s12  ;;  %515 = vst.msk [vmem:[#allocation3 + $0x20] sm:$0xff] %vm326_vm0, %v5473_v17  ;;  %516 = vst.msk [vmem:[#allocation3 + $0x28] sm:$0xff] %vm326_vm0, %v5475_v18  ;;  %v5485_v21 = vld [vmem:[#allocation2 + $0xb1] sm:$0xff]  ;;  %v5487_v22 = vld [vmem:[#allocation2 + $0xd9] sm:$0xff] }
  0x3b   : > { %517 = vst.msk [vmem:[#allocation3 + $0x30] sm:$0xff] %vm326_vm0, %v5481_v19  ;;  %518 = vst.msk [vmem:[#allocation3 + $0x38] sm:$0xff] %vm326_vm0, %v5483_v20  ;;  %v5493_v23 = vld [vmem:[#allocation2 + $0x60] sm:$0xff]  ;;  %v5495_v24 = vld [vmem:[#allocation2 + $0x68] sm:$0xff] }
  0x3c   : > { %v5497_v25 = vld [vmem:[#allocation2 + $0x78] sm:$0xff]  ;;  %519 = vst.msk [vmem:[#allocation3 + $0x40] sm:$0xff] %vm326_vm0, %v5493_v23  ;;  %520 = vst.msk [vmem:[#allocation3 + $0x48] sm:$0xff] %vm326_vm0, %v5495_v24  ;;  %v5509_v26 = vld [vmem:[#allocation2 + $0x80] sm:$0xff] }
  0x3d   : > { %621 = vrot.lane.b32.xlu1 %v5435_v5, %s5216_s12  ;;  %521 = vst.msk [vmem:[#allocation3 + $0x50] sm:$0xff] %vm326_vm0, %v5497_v25  ;;  %v5511_v27 = vld [vmem:[#allocation2 + $0x90] sm:$0xff]  ;;  %v5513_v28 = vld [vmem:[#allocation2 + $0x98] sm:$0xff]  ;;  %522 = vst.msk [vmem:[#allocation3 + $0x58] sm:$0xff] %vm326_vm0, %v5509_v26 }
  0x3e   : > { %627 = vrot.lane.b32.xlu0 %v5437_v6, %s5216_s12  ;;  %523 = vst.msk [vmem:[#allocation3 + $0x60] sm:$0xff] %vm326_vm0, %v5511_v27  ;;  %524 = vst.msk [vmem:[#allocation3 + $0x68] sm:$0xff] %vm326_vm0, %v5513_v28  ;;  %v5521_v29 = vld [vmem:[#allocation2 + $0xa8] sm:$0xff]  ;;  %v5523_v30 = vld [vmem:[#allocation2 + $0xb0] sm:$0xff] }
  0x3f   : > { %v5525_v31 = vld [vmem:[#allocation2 + $0xc0] sm:$0xff]  ;;  %525 = vst.msk [vmem:[#allocation3 + $0x70] sm:$0xff] %vm326_vm0, %v5521_v29  ;;  %526 = vst.msk [vmem:[#allocation3 + $0x78] sm:$0xff] %vm326_vm0, %v5523_v30  ;;  %v5533_v32 = vld [vmem:[#allocation2 + $0xc8] sm:$0xff] }
  0x40   : > { %527 = vst.msk [vmem:[#allocation3 + $0x80] sm:$0xff] %vm326_vm0, %v5525_v31  ;;  %v5535_v33 = vld [vmem:[#allocation2 + $0xd8] sm:$0xff]  ;;  %v5537_v34 = vld [vmem:[#allocation2 + $0xe0] sm:$0xff]  ;;  %528 = vst.msk [vmem:[#allocation3 + $0x88] sm:$0xff] %vm326_vm0, %v5533_v32 }
  0x41   : > { %625 = vrot.lane.b32.xlu1 %v5443_v7, %s5216_s12  ;;  %529 = vst.msk [vmem:[#allocation3 + $0x90] sm:$0xff] %vm326_vm0, %v5535_v33  ;;  %530 = vst.msk [vmem:[#allocation3 + $0x98] sm:$0xff] %vm326_vm0, %v5537_v34  ;;  %v5545_v35 = vld [vmem:[#allocation2 + $0xf0] sm:$0xff]  ;;  %v5547_v36 = vld [vmem:[#allocation2 + $0xf8] sm:$0xff] }
  0x42   : > { %631 = vrot.lane.b32.xlu0 %v5445_v8, %s5216_s12  ;;  %531 = vst.msk [vmem:[#allocation3 + $0xa0] sm:$0xff] %vm326_vm0, %v5545_v35  ;;  %532 = vst.msk [vmem:[#allocation3 + $0xa8] sm:$0xff] %vm326_vm0, %v5547_v36  ;;  %v5557_v37 = vld [vmem:[#allocation2 + $0x108] sm:$0xff]  ;;  %v5559_v38 = vld [vmem:[#allocation2 + $0x110] sm:$0xff] }
  0x43   : > { %v5561_v39 = vld [vmem:[#allocation2 + $0xc9] sm:$0xff]  ;;  %v5563_v40 = vld [vmem:[#allocation2 + $0xf1] sm:$0xff]  ;;  %533 = vst.msk [vmem:[#allocation3 + $0xb0] sm:$0xff] %vm326_vm0, %v5557_v37  ;;  %534 = vst.msk [vmem:[#allocation3 + $0xb8] sm:$0xff] %vm326_vm0, %v5559_v38 }
  0x44   : > { %v5573_v41 = vld [vmem:[#allocation2 + $0x120] sm:$0xff]  ;;  %v5575_v42 = vld [vmem:[#allocation2 + $0x128] sm:$0xff]  ;;  %v5589_v45 = vld [vmem:[#allocation2 + $0x138] sm:$0xff] }
  0x45   : > { %629 = vrot.lane.b32.xlu1 %v5451_v9, %s5216_s12  ;;  %v5577_v43 = vld [vmem:[#allocation2 + $0xe1] sm:$0xff]  ;;  %v5579_v44 = vld [vmem:[#allocation2 + $0x109] sm:$0xff]  ;;  %535 = vst.msk [vmem:[#allocation3 + $0xc0] sm:$0xff] %vm326_vm0, %v5573_v41  ;;  %536 = vst.msk [vmem:[#allocation3 + $0xc8] sm:$0xff] %vm326_vm0, %v5575_v42 }
  0x46   : > { %635 = vrot.lane.b32.xlu0 %v5453_v10, %s5216_s12  ;;  %v5591_v46 = vld [vmem:[#allocation2 + $0x140] sm:$0xff]  ;;  %537 = vst.msk [vmem:[#allocation3 + $0xd0] sm:$0xff] %vm326_vm0, %v5589_v45  ;;  %v5605_v49 = vld [vmem:[#allocation2 + $0x150] sm:$0xff]  ;;  %v5607_v50 = vld [vmem:[#allocation2 + $0x158] sm:$0xff] }
  0x47   : > { %v5593_v47 = vld [vmem:[#allocation2 + $0xf9] sm:$0xff]  ;;  %v5595_v48 = vld [vmem:[#allocation2 + $0x121] sm:$0xff]  ;;  %538 = vst.msk [vmem:[#allocation3 + $0xd8] sm:$0xff] %vm326_vm0, %v5591_v46  ;;  %v5609_v51 = vld [vmem:[#allocation2 + $0x111] sm:$0xff] }
  0x48   : > { %v5611_v52 = vld [vmem:[#allocation2 + $0x139] sm:$0xff]  ;;  %539 = vst.msk [vmem:[#allocation3 + $0xe0] sm:$0xff] %vm326_vm0, %v5605_v49  ;;  %540 = vst.msk [vmem:[#allocation3 + $0xe8] sm:$0xff] %vm326_vm0, %v5607_v50  ;;  %v5621_v53 = vld [vmem:[#allocation2 + $0x168] sm:$0xff] }
  0x49   : > { %633 = vrot.lane.b32.xlu1 %v5462_v14, %s5216_s12  ;;  %v5623_v54 = vld [vmem:[#allocation2 + $0x170] sm:$0xff]  ;;  %541 = vst.msk [vmem:[#allocation3 + $0xf0] sm:$0xff] %vm326_vm0, %v5621_v53  ;;  %v5638_v60 = vld [vmem:[#allocation2 + $0x141] sm:$0xff]  ;;  %v413_v1 = vld [vmem:[%s5347_s11 + $0xf8] sm:$0xff] }
  0x4a   : > { %639 = vrot.lane.b32.xlu0 %v5469_v16, %s5216_s12  ;;  %v5625_v55 = vld [vmem:[#allocation2 + $0x129] sm:$0xff]  ;;  %v5627_v58 = vld [vmem:[#allocation2 + $0x151] sm:$0xff]  ;;  %542 = vst.msk [vmem:[#allocation3 + $0xf8] sm:$0xff] %vm326_vm0, %v5623_v54  ;;  %7629 = vst [vmem:[#allocation4_spill] sm:$0xff] %v5638_v60  ;;  %v445_v2 = vmax.f32 %v413_v1, 0.0 }
  0x4b   : > { %v412_v59 = vld [vmem:[%s5347_s11 + $0xf0] sm:$0xff]  ;;  %v5649_v11 = vld [vmem:[#allocation2 + $0x159] sm:$0xff]  ;;  %v736_v13 = vld [vmem:[#allocation2 + $0x2] sm:$0xff] }
  0x4c   : > { %v5640_v63 = vld [vmem:[#allocation2 + $0x169] sm:$0xff]  ;;  %v444_v0 = vmax.f32 %v412_v59, 0.0  ;;  %478 = vst.msk [vmem:[#allocation2 + $0x189] sm:$0xff] %vm326_vm0, %v445_v2  ;;  %7631 = vst [vmem:[#allocation6_spill] sm:$0xff] %v5649_v11  ;;  %v5654_v59 = vld [vmem:[#allocation2 + $0x171] sm:$0xff] }
  0x4d   : > { %637 = vrot.lane.b32.xlu1 %v5485_v21, %s5216_s12  ;;  %7630 = vst [vmem:[#allocation5_spill] sm:$0xff] %v5640_v63  ;;  %7632 = vst [vmem:[#allocation7_spill] sm:$0xff] %v5654_v59  ;;  %v737_v1 = vld [vmem:[#allocation2 + $0xa] sm:$0xff]  ;;  %v5662_v2 = vld [vmem:[#allocation2 + $0x32] sm:$0xff] }
  0x4e   : > { %643 = vrot.lane.b32.xlu0 %v5487_v22, %s5216_s12  ;;  %477 = vst.msk [vmem:[#allocation2 + $0x181] sm:$0xff] %vm326_vm0, %v444_v0  ;;  %v5656_v0 = vld [vmem:[#allocation2 + $0x1a] sm:$0xff]  ;;  %7634 = vst [vmem:[#allocation9_spill] sm:$0xff] %v5662_v2 }
  0x4f   : > { %7633 = vst [vmem:[#allocation8_spill] sm:$0xff] %v5656_v0 }
  0x51   : > { %641 = vrot.lane.b32.xlu1 %v5561_v39, %s5216_s12 }
  0x52   : > { %647 = vrot.lane.b32.xlu0 %v5563_v40, %s5216_s12 }
  0x55   : > { %645 = vrot.lane.b32.xlu1 %v5577_v43, %s5216_s12 }
  0x56   : > { %651 = vrot.lane.b32.xlu0 %v5579_v44, %s5216_s12 }
  0x59   : > { %649 = vrot.lane.b32.xlu1 %v5593_v47, %s5216_s12 }
  0x5a   : > { %655 = vrot.lane.b32.xlu0 %v5595_v48, %s5216_s12 }
  0x5d   : > { %653 = vrot.lane.b32.xlu1 %v5609_v51, %s5216_s12 }
  0x5e   : > { %659 = vrot.lane.b32.xlu0 %v5611_v52, %s5216_s12 }
  0x61   : > { %657 = vrot.lane.b32.xlu1 %v5625_v55, %s5216_s12 }
  0x62   : > { %663 = vrot.lane.b32.xlu0 %v5627_v58, %s5216_s12 }
  0x65   : > { %661 = vrot.lane.b32.xlu1 %v5638_v60, %s5216_s12 }
  0x66   : > { %667 = vrot.lane.b32.xlu0 %v5640_v63, %s5216_s12 }
  0x69   : > { %665 = vrot.lane.b32.xlu1 %v5649_v11, %s5216_s12  ;;  %v5667_v11 = vld [vmem:[#allocation2 + $0x22] sm:$0xff] }
  0x6a   : > { %800 = vrot.lane.b32.xlu0 %v736_v13, %s5217_s13  ;;  %7635 = vst [vmem:[#allocation10_spill] sm:$0xff] %v5667_v11  ;;  %v5669_v13 = vld [vmem:[#allocation2 + $0x4a] sm:$0xff] }
  0x6b   : > { %7636 = vst [vmem:[#allocation11_spill] sm:$0xff] %v5669_v13 }
  0x6d   : > { %669 = vrot.lane.b32.xlu1 %v5654_v59, %s5216_s12  ;;  %v5675_v59 = vld [vmem:[#allocation2 + $0x3a] sm:$0xff] }
  0x6e   : > { %804 = vrot.lane.b32.xlu0 %v5656_v0, %s5217_s13  ;;  %7637 = vst [vmem:[#allocation12_spill] sm:$0xff] %v5675_v59  ;;  %v5677_v0 = vld [vmem:[#allocation2 + $0x62] sm:$0xff] }
  0x6f   : > { %7638 = vst [vmem:[#allocation13_spill] sm:$0xff] %v5677_v0 }
  0x71   : > { %802 = vrot.lane.b32.xlu1 %v737_v1, %s5217_s13  ;;  %v5683_v1 = vld [vmem:[#allocation2 + $0x52] sm:$0xff] }
  0x72   : > { %808 = vrot.lane.b32.xlu0 %v5662_v2, %s5217_s13  ;;  %7639 = vst [vmem:[#allocation14_spill] sm:$0xff] %v5683_v1  ;;  %v5685_v2 = vld [vmem:[#allocation2 + $0x7a] sm:$0xff] }
  0x73   : > { %7640 = vst [vmem:[#allocation15_spill] sm:$0xff] %v5685_v2 }
  0x75   : > { %806 = vrot.lane.b32.xlu1 %v5667_v11, %s5217_s13  ;;  %v5693_v11 = vld [vmem:[#allocation2 + $0x92] sm:$0xff] }
  0x76   : > { %812 = vrot.lane.b32.xlu0 %v5669_v13, %s5217_s13  ;;  %v5691_v13 = vld [vmem:[#allocation2 + $0x6a] sm:$0xff]  ;;  %7642 = vst [vmem:[#allocation17_spill] sm:$0xff] %v5693_v11 }
  0x77   : > { %7641 = vst [vmem:[#allocation16_spill] sm:$0xff] %v5691_v13 }
  0x79   : > { %810 = vrot.lane.b32.xlu1 %v5675_v59, %s5217_s13  ;;  %v5701_v59 = vld [vmem:[#allocation2 + $0xaa] sm:$0xff] }
  0x7a   : > { %816 = vrot.lane.b32.xlu0 %v5677_v0, %s5217_s13  ;;  %v5699_v0 = vld [vmem:[#allocation2 + $0x82] sm:$0xff]  ;;  %7644 = vst [vmem:[#allocation19_spill] sm:$0xff] %v5701_v59 }
  0x7b   : > { %7643 = vst [vmem:[#allocation18_spill] sm:$0xff] %v5699_v0 }
  0x7d   : > { %814 = vrot.lane.b32.xlu1 %v5683_v1, %s5217_s13  ;;  %v5709_v1 = vld [vmem:[#allocation2 + $0xc2] sm:$0xff] }
  0x7e   : > { %820 = vrot.lane.b32.xlu0 %v5685_v2, %s5217_s13  ;;  %v5707_v2 = vld [vmem:[#allocation2 + $0x9a] sm:$0xff]  ;;  %7646 = vst [vmem:[#allocation21_spill] sm:$0xff] %v5709_v1 }
  0x7f   : > { %7645 = vst [vmem:[#allocation20_spill] sm:$0xff] %v5707_v2 }
  0x81   : > { %818 = vrot.lane.b32.xlu1 %v5691_v13, %s5217_s13  ;;  %v5717_v13 = vld [vmem:[#allocation2 + $0xda] sm:$0xff] }
  0x82   : > { %824 = vrot.lane.b32.xlu0 %v5693_v11, %s5217_s13  ;;  %v5715_v11 = vld [vmem:[#allocation2 + $0xb2] sm:$0xff]  ;;  %7648 = vst [vmem:[#allocation23_spill] sm:$0xff] %v5717_v13 }
  0x83   : > { %7647 = vst [vmem:[#allocation22_spill] sm:$0xff] %v5715_v11 }
  0x85   : > { %822 = vrot.lane.b32.xlu1 %v5699_v0, %s5217_s13  ;;  %v5725_v0 = vld [vmem:[#allocation2 + $0xf2] sm:$0xff] }
  0x86   : > { %828 = vrot.lane.b32.xlu0 %v5701_v59, %s5217_s13  ;;  %v5723_v59 = vld [vmem:[#allocation2 + $0xca] sm:$0xff]  ;;  %7650 = vst [vmem:[#allocation25_spill] sm:$0xff] %v5725_v0 }
  0x87   : > { %7649 = vst [vmem:[#allocation24_spill] sm:$0xff] %v5723_v59 }
  0x88   : > { %v608_v63 = vpop.permute.xlu0 %607 }
  0x89   : > { %826 = vrot.lane.b32.xlu1 %v5707_v2, %s5217_s13  ;;  %v5733_v2 = vld [vmem:[#allocation2 + $0x10a] sm:$0xff]  ;;  %704 = vst.msk [vmem:[#allocation3] sm:$0xff] %vm703_vm2, %v608_v63  ;;  %v5765_v63 = vld [vmem:[#allocation2 + $0x142] sm:$0xff] }
  0x8a   : > { %832 = vrot.lane.b32.xlu0 %v5709_v1, %s5217_s13  ;;  %v5731_v1 = vld [vmem:[#allocation2 + $0xe2] sm:$0xff]  ;;  %7652 = vst [vmem:[#allocation27_spill] sm:$0xff] %v5733_v2  ;;  %7658 = vst [vmem:[#allocation33_spill] sm:$0xff] %v5765_v63 }
  0x8b   : > { %7651 = vst [vmem:[#allocation26_spill] sm:$0xff] %v5731_v1 }
  0x8d   : > { %830 = vrot.lane.b32.xlu1 %v5715_v11, %s5217_s13  ;;  %v5741_v11 = vld [vmem:[#allocation2 + $0x122] sm:$0xff] }
  0x8e   : > { %836 = vrot.lane.b32.xlu0 %v5717_v13, %s5217_s13  ;;  %v5739_v13 = vld [vmem:[#allocation2 + $0xfa] sm:$0xff]  ;;  %7654 = vst [vmem:[#allocation29_spill] sm:$0xff] %v5741_v11 }
  0x8f   : > { %7653 = vst [vmem:[#allocation28_spill] sm:$0xff] %v5739_v13 }
  0x91   : > { %834 = vrot.lane.b32.xlu1 %v5723_v59, %s5217_s13  ;;  %v5749_v59 = vld [vmem:[#allocation2 + $0x13a] sm:$0xff] }
  0x92   : > { %840 = vrot.lane.b32.xlu0 %v5725_v0, %s5217_s13  ;;  %v5747_v0 = vld [vmem:[#allocation2 + $0x112] sm:$0xff] }
  0x93   : > { %7655 = vst [vmem:[#allocation30_spill] sm:$0xff] %v5747_v0 }
  0x95   : > { %838 = vrot.lane.b32.xlu1 %v5731_v1, %s5217_s13 }
  0x96   : > { %844 = vrot.lane.b32.xlu0 %v5733_v2, %s5217_s13  ;;  %v5756_v2 = vld [vmem:[#allocation2 + $0x12a] sm:$0xff] }
  0x97   : > { %7656 = vst [vmem:[#allocation31_spill] sm:$0xff] %v5756_v2 }
  0x99   : > { %842 = vrot.lane.b32.xlu1 %v5739_v13, %s5217_s13  ;;  %v5758_v13 = vld [vmem:[#allocation2 + $0x152] sm:$0xff] }
  0x9a   : > { %848 = vrot.lane.b32.xlu0 %v5741_v11, %s5217_s13  ;;  %7657 = vst [vmem:[#allocation32_spill] sm:$0xff] %v5758_v13  ;;  %v610_v1 = vpop.permute.xlu0 %609  ;;  %v5767_v11 = vld [vmem:[#allocation2 + $0x16a] sm:$0xff] }
  0x9b   : > { %705 = vst.msk [vmem:[#allocation3 + $0x8] sm:$0xff] %vm703_vm2, %v610_v1  ;;  %v5775_v1 = vld [vmem:[#allocation2 + $0x15a] sm:$0xff] }
  0x9d   : > { %846 = vrot.lane.b32.xlu1 %v5747_v0, %s5217_s13 }
  0x9e   : > { %852 = vrot.lane.b32.xlu0 %v5749_v59, %s5217_s13 }
  0xa1   : > { %850 = vrot.lane.b32.xlu1 %v5756_v2, %s5217_s13 }
  0xa2   : > { %856 = vrot.lane.b32.xlu0 %v5758_v13, %s5217_s13 }
  0xa3   : > { %v612_v0 = vpop.permute.xlu1 %611 }
  0xa4   : > { %v616_v60 = vpop.permute.xlu0 %615  ;;  %706 = vst.msk [vmem:[#allocation3 + $0x10] sm:$0xff] %vm703_vm2, %v612_v0 }
  0xa5   : > { %708 = vst.msk [vmem:[#allocation3 + $0x20] sm:$0xff] %vm703_vm2, %v616_v60  ;;  %854 = vrot.lane.b32.xlu1 %v5765_v63, %s5217_s13  ;;  %v5783_v60 = vld [vmem:[#allocation2 + $0x172] sm:$0xff] }
  0xa6   : > { %860 = vrot.lane.b32.xlu0 %v5767_v11, %s5217_s13 }
  0xa7   : > { %v614_v2 = vpop.permute.xlu1 %613 }
  0xa8   : > { %v620_v13 = vpop.permute.xlu0 %619  ;;  %707 = vst.msk [vmem:[#allocation3 + $0x18] sm:$0xff] %vm703_vm2, %v614_v2 }
  0xa9   : > { %710 = vst.msk [vmem:[#allocation3 + $0x30] sm:$0xff] %vm703_vm2, %v620_v13  ;;  %858 = vrot.lane.b32.xlu1 %v5775_v1, %s5217_s13 }
  0xaa   : > { %993 = vrot.lane.b32.xlu0 %v5455_v12, %s5218_s14 }
  0xab   : > { %v618_v0 = vpop.permute.xlu1 %617 }
  0xac   : > { %v624_v63 = vpop.permute.xlu0 %623  ;;  %709 = vst.msk [vmem:[#allocation3 + $0x28] sm:$0xff] %vm703_vm2, %v618_v0 }
  0xad   : > { %712 = vst.msk [vmem:[#allocation3 + $0x40] sm:$0xff] %vm703_vm2, %v624_v63  ;;  %862 = vrot.lane.b32.xlu1 %v5783_v60, %s5217_s13 }
  0xae   : > { %997 = vrot.lane.b32.xlu0 %v5473_v17, %s5218_s14 }
  0xaf   : > { %v622_v2 = vpop.permute.xlu1 %621 }
  0xb0   : > { %v628_v13 = vpop.permute.xlu0 %627  ;;  %711 = vst.msk [vmem:[#allocation3 + $0x38] sm:$0xff] %vm703_vm2, %v622_v2 }
  0xb1   : > { %714 = vst.msk [vmem:[#allocation3 + $0x50] sm:$0xff] %vm703_vm2, %v628_v13  ;;  %995 = vrot.lane.b32.xlu1 %v5467_v15, %s5218_s14 }
  0xb2   : > { %1001 = vrot.lane.b32.xlu0 %v5481_v19, %s5218_s14 }
  0xb3   : > { %v626_v12 = vpop.permute.xlu1 %625 }
  0xb4   : > { %v632_v63 = vpop.permute.xlu0 %631  ;;  %713 = vst.msk [vmem:[#allocation3 + $0x48] sm:$0xff] %vm703_vm2, %v626_v12 }
  0xb5   : > { %716 = vst.msk [vmem:[#allocation3 + $0x60] sm:$0xff] %vm703_vm2, %v632_v63  ;;  %999 = vrot.lane.b32.xlu1 %v5475_v18, %s5218_s14 }
  0xb6   : > { %1005 = vrot.lane.b32.xlu0 %v5493_v23, %s5218_s14 }
  0xb7   : > { %v630_v0 = vpop.permute.xlu1 %629 }
  0xb8   : > { %v636_v2 = vpop.permute.xlu0 %635  ;;  %715 = vst.msk [vmem:[#allocation3 + $0x58] sm:$0xff] %vm703_vm2, %v630_v0 }
  0xb9   : > { %718 = vst.msk [vmem:[#allocation3 + $0x70] sm:$0xff] %vm703_vm2, %v636_v2  ;;  %1003 = vrot.lane.b32.xlu1 %v5483_v20, %s5218_s14 }
  0xba   : > { %1009 = vrot.lane.b32.xlu0 %v5497_v25, %s5218_s14 }
  0xbb   : > { %v634_v15 = vpop.permute.xlu1 %633 }
  0xbc   : > { %v640_v13 = vpop.permute.xlu0 %639  ;;  %717 = vst.msk [vmem:[#allocation3 + $0x68] sm:$0xff] %vm703_vm2, %v634_v15 }
  0xbd   : > { %720 = vst.msk [vmem:[#allocation3 + $0x80] sm:$0xff] %vm703_vm2, %v640_v13  ;;  %1007 = vrot.lane.b32.xlu1 %v5495_v24, %s5218_s14 }
  0xbe   : > { %1013 = vrot.lane.b32.xlu0 %v5511_v27, %s5218_s14 }
  0xbf   : > { %v638_v12 = vpop.permute.xlu1 %637 }
  0xc0   : > { %v644_v63 = vpop.permute.xlu0 %643  ;;  %719 = vst.msk [vmem:[#allocation3 + $0x78] sm:$0xff] %vm703_vm2, %v638_v12 }
  0xc1   : > { %722 = vst.msk [vmem:[#allocation3 + $0x90] sm:$0xff] %vm703_vm2, %v644_v63  ;;  %1011 = vrot.lane.b32.xlu1 %v5509_v26, %s5218_s14 }
  0xc2   : > { %1017 = vrot.lane.b32.xlu0 %v5521_v29, %s5218_s14 }
  0xc3   : > { %v642_v0 = vpop.permute.xlu1 %641 }
  0xc4   : > { %v648_v2 = vpop.permute.xlu0 %647  ;;  %721 = vst.msk [vmem:[#allocation3 + $0x88] sm:$0xff] %vm703_vm2, %v642_v0 }
  0xc5   : > { %724 = vst.msk [vmem:[#allocation3 + $0xa0] sm:$0xff] %vm703_vm2, %v648_v2  ;;  %1015 = vrot.lane.b32.xlu1 %v5513_v28, %s5218_s14 }
  0xc6   : > { %1021 = vrot.lane.b32.xlu0 %v5525_v31, %s5218_s14 }
  0xc7   : > { %v646_v15 = vpop.permute.xlu1 %645 }
  0xc8   : > { %v652_v13 = vpop.permute.xlu0 %651  ;;  %723 = vst.msk [vmem:[#allocation3 + $0x98] sm:$0xff] %vm703_vm2, %v646_v15 }
  0xc9   : > { %726 = vst.msk [vmem:[#allocation3 + $0xb0] sm:$0xff] %vm703_vm2, %v652_v13  ;;  %1019 = vrot.lane.b32.xlu1 %v5523_v30, %s5218_s14 }
  0xca   : > { %1025 = vrot.lane.b32.xlu0 %v5535_v33, %s5218_s14 }
  0xcb   : > { %v650_v12 = vpop.permute.xlu1 %649 }
  0xcc   : > { %v656_v63 = vpop.permute.xlu0 %655  ;;  %725 = vst.msk [vmem:[#allocation3 + $0xa8] sm:$0xff] %vm703_vm2, %v650_v12 }
  0xcd   : > { %728 = vst.msk [vmem:[#allocation3 + $0xc0] sm:$0xff] %vm703_vm2, %v656_v63  ;;  %1023 = vrot.lane.b32.xlu1 %v5533_v32, %s5218_s14 }
  0xce   : > { %1029 = vrot.lane.b32.xlu0 %v5545_v35, %s5218_s14 }
  0xcf   : > { %v654_v0 = vpop.permute.xlu1 %653 }
  0xd0   : > { %v660_v2 = vpop.permute.xlu0 %659  ;;  %727 = vst.msk [vmem:[#allocation3 + $0xb8] sm:$0xff] %vm703_vm2, %v654_v0 }
  0xd1   : > { %730 = vst.msk [vmem:[#allocation3 + $0xd0] sm:$0xff] %vm703_vm2, %v660_v2  ;;  %1027 = vrot.lane.b32.xlu1 %v5537_v34, %s5218_s14 }
  0xd2   : > { %1033 = vrot.lane.b32.xlu0 %v5557_v37, %s5218_s14 }
  0xd3   : > { %v658_v15 = vpop.permute.xlu1 %657 }
  0xd4   : > { %v664_v13 = vpop.permute.xlu0 %663  ;;  %729 = vst.msk [vmem:[#allocation3 + $0xc8] sm:$0xff] %vm703_vm2, %v658_v15 }
  0xd5   : > { %732 = vst.msk [vmem:[#allocation3 + $0xe0] sm:$0xff] %vm703_vm2, %v664_v13  ;;  %1031 = vrot.lane.b32.xlu1 %v5547_v36, %s5218_s14 }
  0xd6   : > { %1037 = vrot.lane.b32.xlu0 %v5573_v41, %s5218_s14 }
  0xd7   : > { %v662_v12 = vpop.permute.xlu1 %661 }
  0xd8   : > { %v668_v63 = vpop.permute.xlu0 %667  ;;  %731 = vst.msk [vmem:[#allocation3 + $0xd8] sm:$0xff] %vm703_vm2, %v662_v12  ;;  %v959_v12 = vld [vmem:[#allocation2 + $0x180] sm:$0xff] }
  0xd9   : > { %734 = vst.msk [vmem:[#allocation3 + $0xf0] sm:$0xff] %vm703_vm2, %v668_v63  ;;  %1035 = vrot.lane.b32.xlu1 %v5559_v38, %s5218_s14 }
  0xda   : > { %1041 = vrot.lane.b32.xlu0 %v5589_v45, %s5218_s14 }
  0xdb   : > { %v666_v0 = vpop.permute.xlu1 %665 }
  0xdc   : > { %v801_v2 = vpop.permute.xlu0 %800  ;;  %733 = vst.msk [vmem:[#allocation3 + $0xe8] sm:$0xff] %vm703_vm2, %v666_v0 }
  0xdd   : > { %897 = vst.msk [vmem:[#allocation3] sm:$0xff] %vm896_vm3, %v801_v2  ;;  %1039 = vrot.lane.b32.xlu1 %v5575_v42, %s5218_s14 }
  0xde   : > { %1045 = vrot.lane.b32.xlu0 %v5605_v49, %s5218_s14 }
  0xdf   : > { %v670_v15 = vpop.permute.xlu1 %669 }
  0xe0   : > { %v805_v13 = vpop.permute.xlu0 %804  ;;  %735 = vst.msk [vmem:[#allocation3 + $0xf8] sm:$0xff] %vm703_vm2, %v670_v15 }
  0xe1   : > { %899 = vst.msk [vmem:[#allocation3 + $0x10] sm:$0xff] %vm896_vm3, %v805_v13  ;;  %1043 = vrot.lane.b32.xlu1 %v5591_v46, %s5218_s14  ;;  %v960_v13 = vld [vmem:[#allocation2 + $0x188] sm:$0xff] }
  0xe2   : > { %1049 = vrot.lane.b32.xlu0 %v5621_v53, %s5218_s14 }
  0xe3   : > { %v803_v63 = vpop.permute.xlu1 %802 }
  0xe4   : > { %v809_v0 = vpop.permute.xlu0 %808  ;;  %898 = vst.msk [vmem:[#allocation3 + $0x8] sm:$0xff] %vm896_vm3, %v803_v63 }
  0xe5   : > { %901 = vst.msk [vmem:[#allocation3 + $0x20] sm:$0xff] %vm896_vm3, %v809_v0  ;;  %1047 = vrot.lane.b32.xlu1 %v5607_v50, %s5218_s14 }
  0xe6   : > { %1053 = vrot.lane.b32.xlu0 %v959_v12, %s5218_s14 }
  0xe7   : > { %v807_v2 = vpop.permute.xlu1 %806 }
  0xe8   : > { %v813_v15 = vpop.permute.xlu0 %812  ;;  %900 = vst.msk [vmem:[#allocation3 + $0x18] sm:$0xff] %vm896_vm3, %v807_v2 }
  0xe9   : > { %903 = vst.msk [vmem:[#allocation3 + $0x30] sm:$0xff] %vm896_vm3, %v813_v15  ;;  %1051 = vrot.lane.b32.xlu1 %v5623_v54, %s5218_s14 }
  0xea   : > { %1186 = vrot.lane.b32.xlu0 %v5398_v56, %s5219_s15 }
  0xeb   : > { %v811_v63 = vpop.permute.xlu1 %810 }
  0xec   : > { %v817_v0 = vpop.permute.xlu0 %816  ;;  %902 = vst.msk [vmem:[#allocation3 + $0x28] sm:$0xff] %vm896_vm3, %v811_v63  ;;  %v5963_v63 = vld [vmem:[#allocation2 + $0x181] sm:$0xff] }
  0xed   : > { %905 = vst.msk [vmem:[#allocation3 + $0x40] sm:$0xff] %vm896_vm3, %v817_v0  ;;  %1055 = vrot.lane.b32.xlu1 %v960_v13, %s5218_s14 }
  0xee   : > { %1190 = vrot.lane.b32.xlu0 %v5400_v57, %s5219_s15 }
  0xef   : > { %v815_v12 = vpop.permute.xlu1 %814 }
  0xf0   : > { %v821_v2 = vpop.permute.xlu0 %820  ;;  %904 = vst.msk [vmem:[#allocation3 + $0x38] sm:$0xff] %vm896_vm3, %v815_v12 }
  0xf1   : > { %907 = vst.msk [vmem:[#allocation3 + $0x50] sm:$0xff] %vm896_vm3, %v821_v2  ;;  %1188 = vrot.lane.b32.xlu1 %v5407_v61, %s5219_s15 }
  0xf2   : > { %1194 = vrot.lane.b32.xlu0 %v5414_v62, %s5219_s15 }
  0xf3   : > { %v819_v56 = vpop.permute.xlu1 %818 }
  0xf4   : > { %v825_v15 = vpop.permute.xlu0 %824  ;;  %906 = vst.msk [vmem:[#allocation3 + $0x48] sm:$0xff] %vm896_vm3, %v819_v56  ;;  %v7662_v56 = vld [vmem:[#allocation7_spill] sm:$0xff] }
  0xf5   : > { %909 = vst.msk [vmem:[#allocation3 + $0x60] sm:$0xff] %vm896_vm3, %v825_v15  ;;  %1192 = vrot.lane.b32.xlu1 %v5427_v3, %s5219_s15  ;;  %v7663_v15 = vld [vmem:[#allocation8_spill] sm:$0xff] }
  0xf6   : > { %1198 = vrot.lane.b32.xlu0 %v5429_v4, %s5219_s15 }
  0xf7   : > { %v823_v57 = vpop.permute.xlu1 %822 }
  0xf8   : > { %v829_v13 = vpop.permute.xlu0 %828  ;;  %908 = vst.msk [vmem:[#allocation3 + $0x58] sm:$0xff] %vm896_vm3, %v823_v57  ;;  %v5977_v57 = vld [vmem:[#allocation2 + $0x189] sm:$0xff] }
  0xf9   : > { %911 = vst.msk [vmem:[#allocation3 + $0x70] sm:$0xff] %vm896_vm3, %v829_v13  ;;  %1196 = vrot.lane.b32.xlu1 %v5435_v5, %s5219_s15 }
  0xfa   : > { %1202 = vrot.lane.b32.xlu0 %v5437_v6, %s5219_s15 }
  0xfb   : > { %v827_v61 = vpop.permute.xlu1 %826 }
  0xfc   : > { %v833_v62 = vpop.permute.xlu0 %832  ;;  %910 = vst.msk [vmem:[#allocation3 + $0x68] sm:$0xff] %vm896_vm3, %v827_v61 }
  0xfd   : > { %913 = vst.msk [vmem:[#allocation3 + $0x80] sm:$0xff] %vm896_vm3, %v833_v62  ;;  %1200 = vrot.lane.b32.xlu1 %v5443_v7, %s5219_s15  ;;  %v7664_v62 = vld [vmem:[#allocation9_spill] sm:$0xff] }
  0xfe   : > { %1206 = vrot.lane.b32.xlu0 %v5445_v8, %s5219_s15 }
  0xff   : > { %v831_v3 = vpop.permute.xlu1 %830 }
 0x100   : > { %v837_v4 = vpop.permute.xlu0 %836  ;;  %912 = vst.msk [vmem:[#allocation3 + $0x78] sm:$0xff] %vm896_vm3, %v831_v3 }
 0x101   : > { %915 = vst.msk [vmem:[#allocation3 + $0x90] sm:$0xff] %vm896_vm3, %v837_v4  ;;  %1204 = vrot.lane.b32.xlu1 %v5451_v9, %s5219_s15 }
 0x102   : > { %1210 = vrot.lane.b32.xlu0 %v5453_v10, %s5219_s15 }
 0x103   : > { %v835_v5 = vpop.permute.xlu1 %834 }
 0x104   : > { %v841_v6 = vpop.permute.xlu0 %840  ;;  %914 = vst.msk [vmem:[#allocation3 + $0x88] sm:$0xff] %vm896_vm3, %v835_v5  ;;  %v7665_v5 = vld [vmem:[#allocation10_spill] sm:$0xff] }
 0x105   : > { %917 = vst.msk [vmem:[#allocation3 + $0xa0] sm:$0xff] %vm896_vm3, %v841_v6  ;;  %1208 = vrot.lane.b32.xlu1 %v5462_v14, %s5219_s15  ;;  %v7666_v6 = vld [vmem:[#allocation11_spill] sm:$0xff] }
 0x106   : > { %1214 = vrot.lane.b32.xlu0 %v5469_v16, %s5219_s15 }
 0x107   : > { %v839_v7 = vpop.permute.xlu1 %838 }
 0x108   : > { %v845_v8 = vpop.permute.xlu0 %844  ;;  %916 = vst.msk [vmem:[#allocation3 + $0x98] sm:$0xff] %vm896_vm3, %v839_v7 }
 0x109   : > { %919 = vst.msk [vmem:[#allocation3 + $0xb0] sm:$0xff] %vm896_vm3, %v845_v8  ;;  %1212 = vrot.lane.b32.xlu1 %v5485_v21, %s5219_s15 }
 0x10a   : > { %1218 = vrot.lane.b32.xlu0 %v5487_v22, %s5219_s15 }
 0x10b   : > { %v843_v9 = vpop.permute.xlu1 %842 }
 0x10c   : > { %v849_v10 = vpop.permute.xlu0 %848  ;;  %918 = vst.msk [vmem:[#allocation3 + $0xa8] sm:$0xff] %vm896_vm3, %v843_v9  ;;  %v7667_v9 = vld [vmem:[#allocation12_spill] sm:$0xff] }
 0x10d   : > { %921 = vst.msk [vmem:[#allocation3 + $0xc0] sm:$0xff] %vm896_vm3, %v849_v10  ;;  %1216 = vrot.lane.b32.xlu1 %v5561_v39, %s5219_s15  ;;  %v7668_v10 = vld [vmem:[#allocation13_spill] sm:$0xff] }
 0x10e   : > { %1222 = vrot.lane.b32.xlu0 %v5563_v40, %s5219_s15 }
 0x10f   : > { %v847_v14 = vpop.permute.xlu1 %846 }
 0x110   : > { %v853_v16 = vpop.permute.xlu0 %852  ;;  %920 = vst.msk [vmem:[#allocation3 + $0xb8] sm:$0xff] %vm896_vm3, %v847_v14 }
 0x111   : > { %923 = vst.msk [vmem:[#allocation3 + $0xd0] sm:$0xff] %vm896_vm3, %v853_v16  ;;  %1220 = vrot.lane.b32.xlu1 %v5577_v43, %s5219_s15 }
 0x112   : > { %1226 = vrot.lane.b32.xlu0 %v5579_v44, %s5219_s15 }
 0x113   : > { %v851_v21 = vpop.permute.xlu1 %850 }
 0x114   : > { %v857_v22 = vpop.permute.xlu0 %856  ;;  %922 = vst.msk [vmem:[#allocation3 + $0xc8] sm:$0xff] %vm896_vm3, %v851_v21  ;;  %v7669_v21 = vld [vmem:[#allocation14_spill] sm:$0xff] }
 0x115   : > { %925 = vst.msk [vmem:[#allocation3 + $0xe0] sm:$0xff] %vm896_vm3, %v857_v22  ;;  %1224 = vrot.lane.b32.xlu1 %v5593_v47, %s5219_s15  ;;  %v7670_v22 = vld [vmem:[#allocation15_spill] sm:$0xff] }
 0x116   : > { %1230 = vrot.lane.b32.xlu0 %v5595_v48, %s5219_s15 }
 0x117   : > { %v855_v39 = vpop.permute.xlu1 %854 }
 0x118   : > { %v861_v40 = vpop.permute.xlu0 %860  ;;  %924 = vst.msk [vmem:[#allocation3 + $0xd8] sm:$0xff] %vm896_vm3, %v855_v39 }
 0x119   : > { %927 = vst.msk [vmem:[#allocation3 + $0xf0] sm:$0xff] %vm896_vm3, %v861_v40  ;;  %1228 = vrot.lane.b32.xlu1 %v5609_v51, %s5219_s15  ;;  %v7659_v51 = vld [vmem:[#allocation4_spill] sm:$0xff] }
 0x11a   : > { %1234 = vrot.lane.b32.xlu0 %v5611_v52, %s5219_s15  ;;  %v7660_v52 = vld [vmem:[#allocation5_spill] sm:$0xff] }
 0x11b   : > { %v859_v43 = vpop.permute.xlu1 %858 }
 0x11c   : > { %v994_v44 = vpop.permute.xlu0 %993  ;;  %926 = vst.msk [vmem:[#allocation3 + $0xe8] sm:$0xff] %vm896_vm3, %v859_v43  ;;  %v7671_v43 = vld [vmem:[#allocation16_spill] sm:$0xff] }
 0x11d   : > { %1090 = vst.msk [vmem:[#allocation3] sm:$0xff] %vm1089_vm4, %v994_v44  ;;  %1232 = vrot.lane.b32.xlu1 %v5625_v55, %s5219_s15  ;;  %v7661_v55 = vld [vmem:[#allocation6_spill] sm:$0xff]  ;;  %v7672_v44 = vld [vmem:[#allocation17_spill] sm:$0xff] }
 0x11e   : > { %1238 = vrot.lane.b32.xlu0 %v5627_v58, %s5219_s15 }
 0x11f   : > { %v863_v47 = vpop.permute.xlu1 %862 }
 0x120   : > { %v998_v48 = vpop.permute.xlu0 %997  ;;  %928 = vst.msk [vmem:[#allocation3 + $0xf8] sm:$0xff] %vm896_vm3, %v863_v47 }
 0x121   : > { %1092 = vst.msk [vmem:[#allocation3 + $0x10] sm:$0xff] %vm1089_vm4, %v998_v48  ;;  %1236 = vrot.lane.b32.xlu1 %v7659_v51, %s5219_s15  ;;  %v7673_v51 = vld [vmem:[#allocation18_spill] sm:$0xff] }
 0x122   : > { %1242 = vrot.lane.b32.xlu0 %v7660_v52, %s5219_s15  ;;  %v7674_v52 = vld [vmem:[#allocation19_spill] sm:$0xff] }
 0x123   : > { %v996_v0 = vpop.permute.xlu1 %995 }
 0x124   : > { %v1002_v12 = vpop.permute.xlu0 %1001  ;;  %1091 = vst.msk [vmem:[#allocation3 + $0x8] sm:$0xff] %vm1089_vm4, %v996_v0 }
 0x125   : > { %1094 = vst.msk [vmem:[#allocation3 + $0x20] sm:$0xff] %vm1089_vm4, %v1002_v12  ;;  %1240 = vrot.lane.b32.xlu1 %v7661_v55, %s5219_s15  ;;  %v7675_v55 = vld [vmem:[#allocation20_spill] sm:$0xff] }
 0x126   : > { %1246 = vrot.lane.b32.xlu0 %v5963_v63, %s5219_s15 }
 0x127   : > { %v1000_v58 = vpop.permute.xlu1 %999 }
 0x128   : > { %v1006_v2 = vpop.permute.xlu0 %1005  ;;  %1093 = vst.msk [vmem:[#allocation3 + $0x18] sm:$0xff] %vm1089_vm4, %v1000_v58  ;;  %v7676_v58 = vld [vmem:[#allocation21_spill] sm:$0xff] }
 0x129   : > { %1096 = vst.msk [vmem:[#allocation3 + $0x30] sm:$0xff] %vm1089_vm4, %v1006_v2  ;;  %1244 = vrot.lane.b32.xlu1 %v7662_v56, %s5219_s15 }
 0x12a   : > { %1379 = vrot.lane.b32.xlu0 %v7663_v15, %s5220_s16  ;;  %v7677_v15 = vld [vmem:[#allocation22_spill] sm:$0xff] }
 0x12b   : > { %v1004_v13 = vpop.permute.xlu1 %1003 }
 0x12c   : > { %v1010_v61 = vpop.permute.xlu0 %1009  ;;  %1095 = vst.msk [vmem:[#allocation3 + $0x28] sm:$0xff] %vm1089_vm4, %v1004_v13  ;;  %v7678_v13 = vld [vmem:[#allocation23_spill] sm:$0xff] }
 0x12d   : > { %1098 = vst.msk [vmem:[#allocation3 + $0x40] sm:$0xff] %vm1089_vm4, %v1010_v61  ;;  %1248 = vrot.lane.b32.xlu1 %v5977_v57, %s5219_s15 }
 0x12e   : > { %1383 = vrot.lane.b32.xlu0 %v7664_v62, %s5220_s16 }
 0x12f   : > { %v1008_v3 = vpop.permute.xlu1 %1007 }
 0x130   : > { %v1014_v4 = vpop.permute.xlu0 %1013  ;;  %1097 = vst.msk [vmem:[#allocation3 + $0x38] sm:$0xff] %vm1089_vm4, %v1008_v3  ;;  %v7679_v3 = vld [vmem:[#allocation24_spill] sm:$0xff] }
 0x131   : > { %1100 = vst.msk [vmem:[#allocation3 + $0x50] sm:$0xff] %vm1089_vm4, %v1014_v4  ;;  %1381 = vrot.lane.b32.xlu1 %v7665_v5, %s5220_s16  ;;  %v7680_v4 = vld [vmem:[#allocation25_spill] sm:$0xff] }
 0x132   : > { %1387 = vrot.lane.b32.xlu0 %v7666_v6, %s5220_s16 }
 0x133   : > { %v1012_v7 = vpop.permute.xlu1 %1011 }
 0x134   : > { %v1018_v8 = vpop.permute.xlu0 %1017  ;;  %1099 = vst.msk [vmem:[#allocation3 + $0x48] sm:$0xff] %vm1089_vm4, %v1012_v7  ;;  %v7681_v7 = vld [vmem:[#allocation26_spill] sm:$0xff] }
 0x135   : > { %1102 = vst.msk [vmem:[#allocation3 + $0x60] sm:$0xff] %vm1089_vm4, %v1018_v8  ;;  %1385 = vrot.lane.b32.xlu1 %v7667_v9, %s5220_s16  ;;  %v7682_v8 = vld [vmem:[#allocation27_spill] sm:$0xff] }
 0x136   : > { %1391 = vrot.lane.b32.xlu0 %v7668_v10, %s5220_s16 }
 0x137   : > { %v1016_v14 = vpop.permute.xlu1 %1015 }
 0x138   : > { %v1022_v16 = vpop.permute.xlu0 %1021  ;;  %1101 = vst.msk [vmem:[#allocation3 + $0x58] sm:$0xff] %vm1089_vm4, %v1016_v14  ;;  %v7683_v14 = vld [vmem:[#allocation28_spill] sm:$0xff] }
 0x139   : > { %1104 = vst.msk [vmem:[#allocation3 + $0x70] sm:$0xff] %vm1089_vm4, %v1022_v16  ;;  %1389 = vrot.lane.b32.xlu1 %v7669_v21, %s5220_s16  ;;  %v7684_v16 = vld [vmem:[#allocation29_spill] sm:$0xff] }
 0x13a   : > { %1395 = vrot.lane.b32.xlu0 %v7670_v22, %s5220_s16 }
 0x13b   : > { %v1020_v39 = vpop.permute.xlu1 %1019 }
 0x13c   : > { %v1026_v40 = vpop.permute.xlu0 %1025  ;;  %1103 = vst.msk [vmem:[#allocation3 + $0x68] sm:$0xff] %vm1089_vm4, %v1020_v39  ;;  %v7685_v39 = vld [vmem:[#allocation30_spill] sm:$0xff] }
 0x13d   : > { %1106 = vst.msk [vmem:[#allocation3 + $0x80] sm:$0xff] %vm1089_vm4, %v1026_v40  ;;  %1393 = vrot.lane.b32.xlu1 %v7671_v43, %s5220_s16 }
 0x13e   : > { %1399 = vrot.lane.b32.xlu0 %v7672_v44, %s5220_s16  ;;  %v7686_v44 = vld [vmem:[#allocation31_spill] sm:$0xff] }
 0x13f   : > { %v1024_v47 = vpop.permute.xlu1 %1023 }
 0x140   : > { %v1030_v48 = vpop.permute.xlu0 %1029  ;;  %1105 = vst.msk [vmem:[#allocation3 + $0x78] sm:$0xff] %vm1089_vm4, %v1024_v47  ;;  %v7687_v47 = vld [vmem:[#allocation32_spill] sm:$0xff] }
 0x141   : > { %1108 = vst.msk [vmem:[#allocation3 + $0x90] sm:$0xff] %vm1089_vm4, %v1030_v48  ;;  %1397 = vrot.lane.b32.xlu1 %v7673_v51, %s5220_s16 }
 0x142   : > { %1403 = vrot.lane.b32.xlu0 %v7674_v52, %s5220_s16  ;;  %v6063_v52 = vld [vmem:[#allocation2 + $0x182] sm:$0xff] }
 0x143   : > { %v1028_v0 = vpop.permute.xlu1 %1027 }
 0x144   : > { %v1034_v12 = vpop.permute.xlu0 %1033  ;;  %1107 = vst.msk [vmem:[#allocation3 + $0x88] sm:$0xff] %vm1089_vm4, %v1028_v0 }
 0x145   : > { %1110 = vst.msk [vmem:[#allocation3 + $0xa0] sm:$0xff] %vm1089_vm4, %v1034_v12  ;;  %1401 = vrot.lane.b32.xlu1 %v7675_v55, %s5220_s16 }
 0x146   : > { %1407 = vrot.lane.b32.xlu0 %v7676_v58, %s5220_s16 }
 0x147   : > { %v1032_v2 = vpop.permute.xlu1 %1031 }
 0x148   : > { %v1038_v56 = vpop.permute.xlu0 %1037  ;;  %1109 = vst.msk [vmem:[#allocation3 + $0x98] sm:$0xff] %vm1089_vm4, %v1032_v2 }
 0x149   : > { %1112 = vst.msk [vmem:[#allocation3 + $0xb0] sm:$0xff] %vm1089_vm4, %v1038_v56  ;;  %1405 = vrot.lane.b32.xlu1 %v7677_v15, %s5220_s16 }
 0x14a   : > { %1411 = vrot.lane.b32.xlu0 %v7678_v13, %s5220_s16 }
 0x14b   : > { %v1036_v61 = vpop.permute.xlu1 %1035 }
 0x14c   : > { %v1042_v62 = vpop.permute.xlu0 %1041  ;;  %1111 = vst.msk [vmem:[#allocation3 + $0xa8] sm:$0xff] %vm1089_vm4, %v1036_v61 }
 0x14d   : > { %1114 = vst.msk [vmem:[#allocation3 + $0xc0] sm:$0xff] %vm1089_vm4, %v1042_v62  ;;  %1409 = vrot.lane.b32.xlu1 %v7679_v3, %s5220_s16  ;;  %v2122_v62 = vld [vmem:[%s7591_s2 + $0x10] sm:$0xff]  ;;  %v2123_v3 = vld [vmem:[%s7591_s2 + $0x18] sm:$0xff] }
 0x14e   : > { %1415 = vrot.lane.b32.xlu0 %v7680_v4, %s5220_s16 }
 0x14f   : > { %v1040_v5 = vpop.permute.xlu1 %1039 }
 0x150   : > { %v1046_v6 = vpop.permute.xlu0 %1045  ;;  %1113 = vst.msk [vmem:[#allocation3 + $0xb8] sm:$0xff] %vm1089_vm4, %v1040_v5  ;;  %v2124_v5 = vld [vmem:[%s7591_s2 + $0x20] sm:$0xff] }
 0x151   : > { %1116 = vst.msk [vmem:[#allocation3 + $0xd0] sm:$0xff] %vm1089_vm4, %v1046_v6  ;;  %1413 = vrot.lane.b32.xlu1 %v7681_v7, %s5220_s16  ;;  %v2125_v6 = vld [vmem:[%s7591_s2 + $0x28] sm:$0xff] }
 0x152   : > { %1419 = vrot.lane.b32.xlu0 %v7682_v8, %s5220_s16 }
 0x153   : > { %v1044_v9 = vpop.permute.xlu1 %1043 }
 0x154   : > { %v1050_v10 = vpop.permute.xlu0 %1049  ;;  %1115 = vst.msk [vmem:[#allocation3 + $0xc8] sm:$0xff] %vm1089_vm4, %v1044_v9  ;;  %v2126_v9 = vld [vmem:[%s7591_s2 + $0x30] sm:$0xff] }
 0x155   : > { %1118 = vst.msk [vmem:[#allocation3 + $0xe0] sm:$0xff] %vm1089_vm4, %v1050_v10  ;;  %1417 = vrot.lane.b32.xlu1 %v7683_v14, %s5220_s16  ;;  %v2127_v10 = vld [vmem:[%s7591_s2 + $0x38] sm:$0xff] }
 0x156   : > { %1423 = vrot.lane.b32.xlu0 %v7684_v16, %s5220_s16 }
 0x157   : > { %v1048_v21 = vpop.permute.xlu1 %1047 }
 0x158   : > { %v1054_v22 = vpop.permute.xlu0 %1053  ;;  %1117 = vst.msk [vmem:[#allocation3 + $0xd8] sm:$0xff] %vm1089_vm4, %v1048_v21  ;;  %v2128_v21 = vld [vmem:[%s7591_s2 + $0x40] sm:$0xff] }
 0x159   : > { %1120 = vst.msk [vmem:[#allocation3 + $0xf0] sm:$0xff] %vm1089_vm4, %v1054_v22  ;;  %1421 = vrot.lane.b32.xlu1 %v7685_v39, %s5220_s16  ;;  %v1704_v22 = vld [vmem:[#allocation2 + $0x49] sm:$0xff] }
 0x15a   : > { %1427 = vrot.lane.b32.xlu0 %v5749_v59, %s5220_s16  ;;  %v7688_v59 = vld [vmem:[#allocation33_spill] sm:$0xff] }
 0x15b   : > { %v1052_v40 = vpop.permute.xlu1 %1051 }
 0x15c   : > { %v1187_v43 = vpop.permute.xlu0 %1186  ;;  %1119 = vst.msk [vmem:[#allocation3 + $0xe8] sm:$0xff] %vm1089_vm4, %v1052_v40 }
 0x15d   : > { %1283 = vst.msk [vmem:[#allocation3] sm:$0xff] %vm1282_vm5, %v1187_v43  ;;  %1425 = vrot.lane.b32.xlu1 %v7686_v44, %s5220_s16  ;;  %v1896_v43 = vld [vmem:[#allocation2 + $0x3a] sm:$0xff]  ;;  %v1897_v44 = vld [vmem:[#allocation2 + $0x4a] sm:$0xff] }
 0x15e   : > { %1431 = vrot.lane.b32.xlu0 %v7687_v47, %s5220_s16 }
 0x15f   : > { %v1056_v48 = vpop.permute.xlu1 %1055 }
 0x160   : > { %v1191_v51 = vpop.permute.xlu0 %1190  ;;  %1121 = vst.msk [vmem:[#allocation3 + $0xf8] sm:$0xff] %vm1089_vm4, %v1056_v48  ;;  %v1705_v48 = vld [vmem:[#allocation2 + $0x51] sm:$0xff] }
 0x161   : > { %1285 = vst.msk [vmem:[#allocation3 + $0x10] sm:$0xff] %vm1282_vm5, %v1191_v51  ;;  %1429 = vrot.lane.b32.xlu1 %v7688_v59, %s5220_s16  ;;  %v1706_v51 = vld [vmem:[#allocation2 + $0x61] sm:$0xff] }
 0x162   : > { %1435 = vrot.lane.b32.xlu0 %v5767_v11, %s5220_s16  ;;  %v6077_v11 = vld [vmem:[#allocation2 + $0x18a] sm:$0xff] }
 0x163   : > { %v1189_v0 = vpop.permute.xlu1 %1188 }
 0x164   : > { %v1195_v12 = vpop.permute.xlu0 %1194  ;;  %1284 = vst.msk [vmem:[#allocation3 + $0x8] sm:$0xff] %vm1282_vm5, %v1189_v0 }
 0x165   : > { %1287 = vst.msk [vmem:[#allocation3 + $0x20] sm:$0xff] %vm1282_vm5, %v1195_v12  ;;  %1433 = vrot.lane.b32.xlu1 %v5775_v1, %s5220_s16  ;;  %v1898_v12 = vld [vmem:[#allocation2 + $0x52] sm:$0xff] }
 0x166   : > { %1439 = vrot.lane.b32.xlu0 %v6063_v52, %s5220_s16 }
 0x167   : > { %v1193_v55 = vpop.permute.xlu1 %1192 }
 0x168   : > { %v1199_v58 = vpop.permute.xlu0 %1198  ;;  %1286 = vst.msk [vmem:[#allocation3 + $0x18] sm:$0xff] %vm1282_vm5, %v1193_v55  ;;  %v1899_v55 = vld [vmem:[#allocation2 + $0x62] sm:$0xff] }
 0x169   : > { %1289 = vst.msk [vmem:[#allocation3 + $0x30] sm:$0xff] %vm1282_vm5, %v1199_v58  ;;  %1437 = vrot.lane.b32.xlu1 %v5783_v60, %s5220_s16 }
 0x16a   : > { %1573 = vrot.lane.b32.xlu0 %v5473_v17, %s5221_s17 }
 0x16b   : > { %v1197_v2 = vpop.permute.xlu1 %1196 }
 0x16c   : > { %v1203_v1 = vpop.permute.xlu0 %1202  ;;  %1288 = vst.msk [vmem:[#allocation3 + $0x28] sm:$0xff] %vm1282_vm5, %v1197_v2 }
 0x16d   : > { %1291 = vst.msk [vmem:[#allocation3 + $0x40] sm:$0xff] %vm1282_vm5, %v1203_v1  ;;  %1441 = vrot.lane.b32.xlu1 %v6077_v11, %s5220_s16  ;;  %v1707_v1 = vld [vmem:[#allocation2 + $0x69] sm:$0xff] }
 0x16e   : > { %1577 = vrot.lane.b32.xlu0 %v5481_v19, %s5221_s17 }
 0x16f   : > { %v1201_v56 = vpop.permute.xlu1 %1200 }
 0x170   : > { %v1207_v60 = vpop.permute.xlu0 %1206  ;;  %1290 = vst.msk [vmem:[#allocation3 + $0x38] sm:$0xff] %vm1282_vm5, %v1201_v56  ;;  %v1708_v56 = vld [vmem:[#allocation2 + $0x79] sm:$0xff] }
 0x171   : > { %1293 = vst.msk [vmem:[#allocation3 + $0x50] sm:$0xff] %vm1282_vm5, %v1207_v60  ;;  %1575 = vrot.lane.b32.xlu1 %v5475_v18, %s5221_s17 }
 0x172   : > { %1581 = vrot.lane.b32.xlu0 %v5493_v23, %s5221_s17 }
 0x173   : > { %v1205_v17 = vpop.permute.xlu1 %1204 }
 0x174   : > { %v1211_v15 = vpop.permute.xlu0 %1210  ;;  %1292 = vst.msk [vmem:[#allocation3 + $0x48] sm:$0xff] %vm1282_vm5, %v1205_v17 }
 0x175   : > { %1295 = vst.msk [vmem:[#allocation3 + $0x60] sm:$0xff] %vm1282_vm5, %v1211_v15  ;;  %1579 = vrot.lane.b32.xlu1 %v5483_v20, %s5221_s17  ;;  %v1900_v15 = vld [vmem:[#allocation2 + $0x6a] sm:$0xff] }
 0x176   : > { %1585 = vrot.lane.b32.xlu0 %v5497_v25, %s5221_s17 }
 0x177   : > { %v1209_v19 = vpop.permute.xlu1 %1208 }
 0x178   : > { %v1215_v13 = vpop.permute.xlu0 %1214  ;;  %1294 = vst.msk [vmem:[#allocation3 + $0x58] sm:$0xff] %vm1282_vm5, %v1209_v19  ;;  %v1901_v19 = vld [vmem:[#allocation2 + $0x7a] sm:$0xff] }
 0x179   : > { %1297 = vst.msk [vmem:[#allocation3 + $0x70] sm:$0xff] %vm1282_vm5, %v1215_v13  ;;  %1583 = vrot.lane.b32.xlu1 %v5495_v24, %s5221_s17 }
 0x17a   : > { %1589 = vrot.lane.b32.xlu0 %v5511_v27, %s5221_s17 }
 0x17b   : > { %v1213_v18 = vpop.permute.xlu1 %1212 }
 0x17c   : > { %v1219_v23 = vpop.permute.xlu0 %1218  ;;  %1296 = vst.msk [vmem:[#allocation3 + $0x68] sm:$0xff] %vm1282_vm5, %v1213_v18 }
 0x17d   : > { %1299 = vst.msk [vmem:[#allocation3 + $0x80] sm:$0xff] %vm1282_vm5, %v1219_v23  ;;  %1587 = vrot.lane.b32.xlu1 %v5509_v26, %s5221_s17  ;;  %v1709_v23 = vld [vmem:[#allocation2 + $0x81] sm:$0xff] }
 0x17e   : > { %1593 = vrot.lane.b32.xlu0 %v5521_v29, %s5221_s17 }
 0x17f   : > { %v1217_v20 = vpop.permute.xlu1 %1216 }
 0x180   : > { %v1223_v25 = vpop.permute.xlu0 %1222  ;;  %1298 = vst.msk [vmem:[#allocation3 + $0x78] sm:$0xff] %vm1282_vm5, %v1217_v20  ;;  %v1710_v20 = vld [vmem:[#allocation2 + $0x91] sm:$0xff] }
 0x181   : > { %1301 = vst.msk [vmem:[#allocation3 + $0x90] sm:$0xff] %vm1282_vm5, %v1223_v25  ;;  %1591 = vrot.lane.b32.xlu1 %v5513_v28, %s5221_s17 }
 0x182   : > { %1597 = vrot.lane.b32.xlu0 %v5525_v31, %s5221_s17 }
 0x183   : > { %v1221_v24 = vpop.permute.xlu1 %1220 }
 0x184   : > { %v1227_v27 = vpop.permute.xlu0 %1226  ;;  %1300 = vst.msk [vmem:[#allocation3 + $0x88] sm:$0xff] %vm1282_vm5, %v1221_v24 }
 0x185   : > { %1303 = vst.msk [vmem:[#allocation3 + $0xa0] sm:$0xff] %vm1282_vm5, %v1227_v27  ;;  %1595 = vrot.lane.b32.xlu1 %v5523_v30, %s5221_s17  ;;  %v1902_v27 = vld [vmem:[#allocation2 + $0x82] sm:$0xff] }
 0x186   : > { %1601 = vrot.lane.b32.xlu0 %v5535_v33, %s5221_s17 }
 0x187   : > { %v1225_v26 = vpop.permute.xlu1 %1224 }
 0x188   : > { %v1231_v29 = vpop.permute.xlu0 %1230  ;;  %1302 = vst.msk [vmem:[#allocation3 + $0x98] sm:$0xff] %vm1282_vm5, %v1225_v26  ;;  %v1903_v26 = vld [vmem:[#allocation2 + $0x92] sm:$0xff] }
 0x189   : > { %1305 = vst.msk [vmem:[#allocation3 + $0xb0] sm:$0xff] %vm1282_vm5, %v1231_v29  ;;  %1599 = vrot.lane.b32.xlu1 %v5533_v32, %s5221_s17 }
 0x18a   : > { %1605 = vrot.lane.b32.xlu0 %v5545_v35, %s5221_s17 }
 0x18b   : > { %v1229_v28 = vpop.permute.xlu1 %1228 }
 0x18c   : > { %v1235_v31 = vpop.permute.xlu0 %1234  ;;  %1304 = vst.msk [vmem:[#allocation3 + $0xa8] sm:$0xff] %vm1282_vm5, %v1229_v28 }
 0x18d   : > { %1307 = vst.msk [vmem:[#allocation3 + $0xc0] sm:$0xff] %vm1282_vm5, %v1235_v31  ;;  %1603 = vrot.lane.b32.xlu1 %v5537_v34, %s5221_s17  ;;  %v2120_v34 = vld [vmem:[%s7591_s2] sm:$0xff] }
 0x18e   : > { %1609 = vrot.lane.b32.xlu0 %v5557_v37, %s5221_s17  ;;  %v2121_v37 = vld [vmem:[%s7591_s2 + $0x8] sm:$0xff]  ;;  %v1711_v31 = vld [vmem:[#allocation2 + $0x99] sm:$0xff] }
 0x18f   : > { %v1233_v30 = vpop.permute.xlu1 %1232  ;;  %v5158_v61 = vpack.c.bf16 %v2121_v37, %v2120_v34  ;;  %v1905_v34 = vld [vmem:[#allocation2 + $0xaa] sm:$0xff] }
 0x190   : > { %v1239_v33 = vpop.permute.xlu0 %1238  ;;  %1306 = vst.msk [vmem:[#allocation3 + $0xb8] sm:$0xff] %vm1282_vm5, %v1233_v30  ;;  %v1712_v30 = vld [vmem:[#allocation2 + $0xa9] sm:$0xff] }
 0x191   : > { %1309 = vst.msk [vmem:[#allocation3 + $0xd0] sm:$0xff] %vm1282_vm5, %v1239_v33  ;;  %1607 = vrot.lane.b32.xlu1 %v5547_v36, %s5221_s17  ;;  %5159 = vmatprep.subr.bf16.mxu0 %v5158_v61 }
 0x192   : > { %1613 = vrot.lane.b32.xlu0 %v5573_v41, %s5221_s17  ;;  %5161 = vmatpush3.bf16.msra.mxu0 %v5158_v61 }
 0x193   : > { %v1237_v32 = vpop.permute.xlu1 %1236 }
 0x194   : > { %v1243_v35 = vpop.permute.xlu0 %1242  ;;  %1308 = vst.msk [vmem:[#allocation3 + $0xc8] sm:$0xff] %vm1282_vm5, %v1237_v32 }
 0x195   : > { %1311 = vst.msk [vmem:[#allocation3 + $0xe0] sm:$0xff] %vm1282_vm5, %v1243_v35  ;;  %1611 = vrot.lane.b32.xlu1 %v5559_v38, %s5221_s17  ;;  %v5162_v38 = vpack.c.bf16 %v2123_v3, %v2122_v62  ;;  %v1904_v35 = vld [vmem:[#allocation2 + $0x9a] sm:$0xff] }
 0x196   : > { %1617 = vrot.lane.b32.xlu0 %v5589_v45, %s5221_s17 }
 0x197   : > { %v1241_v36 = vpop.permute.xlu1 %1240  ;;  %5163 = vmatprep.subr.bf16.mxu0 %v5162_v38 }
 0x198   : > { %v1247_v41 = vpop.permute.xlu0 %1246  ;;  %1310 = vst.msk [vmem:[#allocation3 + $0xd8] sm:$0xff] %vm1282_vm5, %v1241_v36  ;;  %5165 = vmatpush3.bf16.msra.mxu0 %v5162_v38  ;;  %v1713_v36 = vld [vmem:[#allocation2 + $0xb1] sm:$0xff] }
 0x199   : > { %1313 = vst.msk [vmem:[#allocation3 + $0xf0] sm:$0xff] %vm1282_vm5, %v1247_v41  ;;  %1615 = vrot.lane.b32.xlu1 %v5575_v42, %s5221_s17  ;;  %v5166_v42 = vpack.c.bf16 %v2125_v6, %v2124_v5  ;;  %v1714_v41 = vld [vmem:[#allocation2 + $0xc1] sm:$0xff]  ;;  %v1906_v38 = vld [vmem:[#allocation2 + $0xb2] sm:$0xff]  ;;  %v1715_v6 = vld [vmem:[#allocation2 + $0xc9] sm:$0xff] }
 0x19a   : > { %1621 = vrot.lane.b32.xlu0 %v5605_v49, %s5221_s17  ;;  %v1702_v49 = vld [vmem:[#allocation2 + $0x31] sm:$0xff] }
 0x19b   : > { %v1245_v45 = vpop.permute.xlu1 %1244  ;;  %5167 = vmatprep.subr.bf16.mxu0 %v5166_v42 }
 0x19c   : > { %v1380_v4 = vpop.permute.xlu0 %1379  ;;  %1312 = vst.msk [vmem:[#allocation3 + $0xe8] sm:$0xff] %vm1282_vm5, %v1245_v45  ;;  %5169 = vmatpush3.bf16.msra.mxu0 %v5166_v42  ;;  %v1907_v45 = vld [vmem:[#allocation2 + $0xc2] sm:$0xff]  ;;  %v1716_v42 = vld [vmem:[#allocation2 + $0xd9] sm:$0xff] }
 0x19d   : > { %1476 = vst.msk [vmem:[#allocation3] sm:$0xff] %vm1475_vm6, %v1380_v4  ;;  %1619 = vrot.lane.b32.xlu1 %v5591_v46, %s5221_s17  ;;  %v5170_v46 = vpack.c.bf16 %v2127_v10, %v2126_v9  ;;  %v1909_v9 = vld [vmem:[#allocation2 + $0xda] sm:$0xff] }
 0x19e   : > { %1625 = vrot.lane.b32.xlu0 %v5621_v53, %s5221_s17  ;;  %v1895_v53 = vld [vmem:[#allocation2 + $0x32] sm:$0xff] }
 0x19f   : > { %v1249_v7 = vpop.permute.xlu1 %1248  ;;  %5171 = vmatprep.subr.bf16.mxu0 %v5170_v46 }
 0x1a0   : > { %v1384_v8 = vpop.permute.xlu0 %1383  ;;  %1314 = vst.msk [vmem:[#allocation3 + $0xf8] sm:$0xff] %vm1282_vm5, %v1249_v7  ;;  %5173 = vmatpush3.bf16.msra.mxu0 %v5170_v46 }
 0x1a1   : > { %1478 = vst.msk [vmem:[#allocation3 + $0x10] sm:$0xff] %vm1475_vm6, %v1384_v8  ;;  %1623 = vrot.lane.b32.xlu1 %v5607_v50, %s5221_s17  ;;  %v1703_v50 = vld [vmem:[#allocation2 + $0x39] sm:$0xff]  ;;  %5042 = vmatprep.subr.mxu0 %v2128_v21  ;;  %v1908_v8 = vld [vmem:[#allocation2 + $0xca] sm:$0xff] }
 0x1a2   : > { %1766 = vrot.lane.b32.xlu0 %v1702_v49, %s5222_s21 }
 0x1a3   : > { %v1382_v14 = vpop.permute.xlu1 %1381 }
 0x1a4   : > { %v1388_v16 = vpop.permute.xlu0 %1387  ;;  %1477 = vst.msk [vmem:[#allocation3 + $0x8] sm:$0xff] %vm1475_vm6, %v1382_v14  ;;  %5043 = vmatpush3.msra.mxu0 %v2128_v21  ;;  %v1718_v14 = vld [vmem:[#allocation2 + $0xf1] sm:$0xff] }
 0x1a5   : > { %1480 = vst.msk [vmem:[#allocation3 + $0x20] sm:$0xff] %vm1475_vm6, %v1388_v16  ;;  %1627 = vrot.lane.b32.xlu1 %v5623_v54, %s5221_s17 }
 0x1a6   : > { %1959 = vrot.lane.b32.xlu0 %v1895_v53, %s5223_s24  ;;  %v1717_v53 = vld [vmem:[#allocation2 + $0xe1] sm:$0xff] }
 0x1a7   : > { %v1386_v39 = vpop.permute.xlu1 %1385 }
 0x1a8   : > { %v1392_v40 = vpop.permute.xlu0 %1391  ;;  %1479 = vst.msk [vmem:[#allocation3 + $0x18] sm:$0xff] %vm1475_vm6, %v1386_v39 }
 0x1a9   : > { %1482 = vst.msk [vmem:[#allocation3 + $0x30] sm:$0xff] %vm1475_vm6, %v1392_v40  ;;  %1768 = vrot.lane.b32.xlu1 %v1703_v50, %s5222_s21  ;;  %v1910_v50 = vld [vmem:[#allocation2 + $0xe2] sm:$0xff] }
 0x1aa   : > { %1770 = vrot.lane.b32.xlu0 %v1704_v22, %s5222_s21  ;;  %v1911_v22 = vld [vmem:[#allocation2 + $0xf2] sm:$0xff] }
 0x1ab   : > { %v1390_v54 = vpop.permute.xlu1 %1389 }
 0x1ac   : > { %v1396_v47 = vpop.permute.xlu0 %1395  ;;  %1481 = vst.msk [vmem:[#allocation3 + $0x28] sm:$0xff] %vm1475_vm6, %v1390_v54 }
 0x1ad   : > { %1484 = vst.msk [vmem:[#allocation3 + $0x40] sm:$0xff] %vm1475_vm6, %v1396_v47  ;;  %1961 = vrot.lane.b32.xlu1 %v1896_v43, %s5223_s24  ;;  %v1719_v43 = vld [vmem:[#allocation2 + $0xf9] sm:$0xff] }
 0x1ae   : > { %1963 = vrot.lane.b32.xlu0 %v1897_v44, %s5223_s24  ;;  %v1720_v44 = vld [vmem:[#allocation2 + $0x109] sm:$0xff] }
 0x1af   : > { %v1394_v59 = vpop.permute.xlu1 %1393 }
 0x1b0   : > { %v1400_v0 = vpop.permute.xlu0 %1399  ;;  %1483 = vst.msk [vmem:[#allocation3 + $0x38] sm:$0xff] %vm1475_vm6, %v1394_v59 }
 0x1b1   : > { %1486 = vst.msk [vmem:[#allocation3 + $0x50] sm:$0xff] %vm1475_vm6, %v1400_v0  ;;  %1772 = vrot.lane.b32.xlu1 %v1705_v48, %s5222_s21  ;;  %v1912_v48 = vld [vmem:[#allocation2 + $0xfa] sm:$0xff] }
 0x1b2   : > { %1774 = vrot.lane.b32.xlu0 %v1706_v51, %s5222_s21  ;;  %v1913_v51 = vld [vmem:[#allocation2 + $0x10a] sm:$0xff] }
 0x1b3   : > { %v1398_v58 = vpop.permute.xlu1 %1397 }
 0x1b4   : > { %v1404_v2 = vpop.permute.xlu0 %1403  ;;  %1485 = vst.msk [vmem:[#allocation3 + $0x48] sm:$0xff] %vm1475_vm6, %v1398_v58 }
 0x1b5   : > { %1488 = vst.msk [vmem:[#allocation3 + $0x60] sm:$0xff] %vm1475_vm6, %v1404_v2  ;;  %1965 = vrot.lane.b32.xlu1 %v1898_v12, %s5223_s24  ;;  %v1721_v12 = vld [vmem:[#allocation2 + $0x111] sm:$0xff] }
 0x1b6   : > { %1967 = vrot.lane.b32.xlu0 %v1899_v55, %s5223_s24  ;;  %v1722_v55 = vld [vmem:[#allocation2 + $0x121] sm:$0xff] }
 0x1b7   : > { %v1402_v60 = vpop.permute.xlu1 %1401 }
 0x1b8   : > { %v1408_v17 = vpop.permute.xlu0 %1407  ;;  %1487 = vst.msk [vmem:[#allocation3 + $0x58] sm:$0xff] %vm1475_vm6, %v1402_v60 }
 0x1b9   : > { %1490 = vst.msk [vmem:[#allocation3 + $0x70] sm:$0xff] %vm1475_vm6, %v1408_v17  ;;  %1776 = vrot.lane.b32.xlu1 %v1707_v1, %s5222_s21  ;;  %v1914_v1 = vld [vmem:[#allocation2 + $0x112] sm:$0xff] }
 0x1ba   : > { %1778 = vrot.lane.b32.xlu0 %v1708_v56, %s5222_s21  ;;  %v1915_v56 = vld [vmem:[#allocation2 + $0x122] sm:$0xff] }
 0x1bb   : > { %v1406_v13 = vpop.permute.xlu1 %1405 }
 0x1bc   : > { %v1412_v18 = vpop.permute.xlu0 %1411  ;;  %1489 = vst.msk [vmem:[#allocation3 + $0x68] sm:$0xff] %vm1475_vm6, %v1406_v13 }
 0x1bd   : > { %1492 = vst.msk [vmem:[#allocation3 + $0x80] sm:$0xff] %vm1475_vm6, %v1412_v18  ;;  %1969 = vrot.lane.b32.xlu1 %v1900_v15, %s5223_s24  ;;  %v1723_v15 = vld [vmem:[#allocation2 + $0x129] sm:$0xff] }
 0x1be   : > { %1971 = vrot.lane.b32.xlu0 %v1901_v19, %s5223_s24  ;;  %v1724_v19 = vld [vmem:[#allocation2 + $0x139] sm:$0xff] }
 0x1bf   : > { %v1410_v25 = vpop.permute.xlu1 %1409 }
 0x1c0   : > { %v1416_v24 = vpop.permute.xlu0 %1415  ;;  %1491 = vst.msk [vmem:[#allocation3 + $0x78] sm:$0xff] %vm1475_vm6, %v1410_v25 }
 0x1c1   : > { %1494 = vst.msk [vmem:[#allocation3 + $0x90] sm:$0xff] %vm1475_vm6, %v1416_v24  ;;  %1780 = vrot.lane.b32.xlu1 %v1709_v23, %s5222_s21  ;;  %v1916_v23 = vld [vmem:[#allocation2 + $0x12a] sm:$0xff] }
 0x1c2   : > { %1782 = vrot.lane.b32.xlu0 %v1710_v20, %s5222_s21  ;;  %v1917_v20 = vld [vmem:[#allocation2 + $0x13a] sm:$0xff] }
 0x1c3   : > { %v1414_v29 = vpop.permute.xlu1 %1413 }
 0x1c4   : > { %v1420_v28 = vpop.permute.xlu0 %1419  ;;  %1493 = vst.msk [vmem:[#allocation3 + $0x88] sm:$0xff] %vm1475_vm6, %v1414_v29 }
 0x1c5   : > { %1496 = vst.msk [vmem:[#allocation3 + $0xa0] sm:$0xff] %vm1475_vm6, %v1420_v28  ;;  %1973 = vrot.lane.b32.xlu1 %v1902_v27, %s5223_s24  ;;  %v1725_v27 = vld [vmem:[#allocation2 + $0x141] sm:$0xff] }
 0x1c6   : > { %1975 = vrot.lane.b32.xlu0 %v1903_v26, %s5223_s24  ;;  %v1726_v26 = vld [vmem:[#allocation2 + $0x151] sm:$0xff] }
 0x1c7   : > { %v1418_v33 = vpop.permute.xlu1 %1417 }
 0x1c8   : > { %v1424_v32 = vpop.permute.xlu0 %1423  ;;  %1495 = vst.msk [vmem:[#allocation3 + $0x98] sm:$0xff] %vm1475_vm6, %v1418_v33 }
 0x1c9   : > { %1498 = vst.msk [vmem:[#allocation3 + $0xb0] sm:$0xff] %vm1475_vm6, %v1424_v32  ;;  %1784 = vrot.lane.b32.xlu1 %v1711_v31, %s5222_s21  ;;  %v1918_v31 = vld [vmem:[#allocation2 + $0x142] sm:$0xff] }
 0x1ca   : > { %1786 = vrot.lane.b32.xlu0 %v1712_v30, %s5222_s21  ;;  %v1919_v30 = vld [vmem:[#allocation2 + $0x152] sm:$0xff] }
 0x1cb   : > { %v1422_v37 = vpop.permute.xlu1 %1421 }
 0x1cc   : > { %v1428_v61 = vpop.permute.xlu0 %1427  ;;  %1497 = vst.msk [vmem:[#allocation3 + $0xa8] sm:$0xff] %vm1475_vm6, %v1422_v37 }
 0x1cd   : > { %1500 = vst.msk [vmem:[#allocation3 + $0xc0] sm:$0xff] %vm1475_vm6, %v1428_v61  ;;  %1977 = vrot.lane.b32.xlu1 %v1904_v35, %s5223_s24  ;;  %v1727_v35 = vld [vmem:[#allocation2 + $0x159] sm:$0xff] }
 0x1ce   : > { %1979 = vrot.lane.b32.xlu0 %v1905_v34, %s5223_s24  ;;  %v1728_v34 = vld [vmem:[#allocation2 + $0x169] sm:$0xff] }
 0x1cf   : > { %v1426_v62 = vpop.permute.xlu1 %1425 }
 0x1d0   : > { %v1432_v3 = vpop.permute.xlu0 %1431  ;;  %1499 = vst.msk [vmem:[#allocation3 + $0xb8] sm:$0xff] %vm1475_vm6, %v1426_v62 }
 0x1d1   : > { %1502 = vst.msk [vmem:[#allocation3 + $0xd0] sm:$0xff] %vm1475_vm6, %v1432_v3  ;;  %1788 = vrot.lane.b32.xlu1 %v1713_v36, %s5222_s21  ;;  %v1920_v36 = vld [vmem:[#allocation2 + $0x15a] sm:$0xff] }
 0x1d2   : > { %1790 = vrot.lane.b32.xlu0 %v1714_v41, %s5222_s21  ;;  %v1921_v41 = vld [vmem:[#allocation2 + $0x16a] sm:$0xff] }
 0x1d3   : > { %v1430_v4 = vpop.permute.xlu1 %1429 }
 0x1d4   : > { %v1436_v5 = vpop.permute.xlu0 %1435  ;;  %1501 = vst.msk [vmem:[#allocation3 + $0xc8] sm:$0xff] %vm1475_vm6, %v1430_v4 }
 0x1d5   : > { %1504 = vst.msk [vmem:[#allocation3 + $0xe0] sm:$0xff] %vm1475_vm6, %v1436_v5  ;;  %1981 = vrot.lane.b32.xlu1 %v1906_v38, %s5223_s24  ;;  %v1729_v38 = vld [vmem:[#allocation2 + $0x171] sm:$0xff] }
 0x1d6   : > { %1983 = vrot.lane.b32.xlu0 %v1907_v45, %s5223_s24  ;;  %v1537_v45 = vld [vmem:[#allocation2 + $0x180] sm:$0xff] }
 0x1d7   : > { %v1434_v49 = vpop.permute.xlu1 %1433 }
 0x1d8   : > { %v1440_v7 = vpop.permute.xlu0 %1439  ;;  %1503 = vst.msk [vmem:[#allocation3 + $0xd8] sm:$0xff] %vm1475_vm6, %v1434_v49 }
 0x1d9   : > { %1506 = vst.msk [vmem:[#allocation3 + $0xf0] sm:$0xff] %vm1475_vm6, %v1440_v7  ;;  %1792 = vrot.lane.b32.xlu1 %v1715_v6, %s5222_s21  ;;  %v1922_v6 = vld [vmem:[#allocation2 + $0x172] sm:$0xff]  ;;  %v1538_v7 = vld [vmem:[#allocation2 + $0x188] sm:$0xff] }
 0x1da   : > { %1794 = vrot.lane.b32.xlu0 %v1716_v42, %s5222_s21 }
 0x1db   : > { %v1438_v10 = vpop.permute.xlu1 %1437 }
 0x1dc   : > { %v1574_v46 = vpop.permute.xlu0 %1573  ;;  %1505 = vst.msk [vmem:[#allocation3 + $0xe8] sm:$0xff] %vm1475_vm6, %v1438_v10 }
 0x1dd   : > { %1670 = vst.msk [vmem:[#allocation3] sm:$0xff] %vm1669_vm7, %v1574_v46  ;;  %1985 = vrot.lane.b32.xlu1 %v1908_v8, %s5223_s24 }
 0x1de   : > { %1987 = vrot.lane.b32.xlu0 %v1909_v9, %s5223_s24 }
 0x1df   : > { %v1442_v16 = vpop.permute.xlu1 %1441 }
 0x1e0   : > { %v1578_v21 = vpop.permute.xlu0 %1577  ;;  %1507 = vst.msk [vmem:[#allocation3 + $0xf8] sm:$0xff] %vm1475_vm6, %v1442_v16 }
 0x1e1   : > { %1672 = vst.msk [vmem:[#allocation3 + $0x10] sm:$0xff] %vm1669_vm7, %v1578_v21  ;;  %1796 = vrot.lane.b32.xlu1 %v1717_v53, %s5222_s21 }
 0x1e2   : > { %1798 = vrot.lane.b32.xlu0 %v1718_v14, %s5222_s21 }
 0x1e3   : > { %v1576_v39 = vpop.permute.xlu1 %1575 }
 0x1e4   : > { %v1582_v40 = vpop.permute.xlu0 %1581  ;;  %1671 = vst.msk [vmem:[#allocation3 + $0x8] sm:$0xff] %vm1669_vm7, %v1576_v39 }
 0x1e5   : > { %1674 = vst.msk [vmem:[#allocation3 + $0x20] sm:$0xff] %vm1669_vm7, %v1582_v40  ;;  %1989 = vrot.lane.b32.xlu1 %v1910_v50, %s5223_s24 }
 0x1e6   : > { %1991 = vrot.lane.b32.xlu0 %v1911_v22, %s5223_s24 }
 0x1e7   : > { %v1580_v54 = vpop.permute.xlu1 %1579 }
 0x1e8   : > { %v1586_v47 = vpop.permute.xlu0 %1585  ;;  %1673 = vst.msk [vmem:[#allocation3 + $0x18] sm:$0xff] %vm1669_vm7, %v1580_v54 }
 0x1e9   : > { %1676 = vst.msk [vmem:[#allocation3 + $0x30] sm:$0xff] %vm1669_vm7, %v1586_v47  ;;  %1800 = vrot.lane.b32.xlu1 %v1719_v43, %s5222_s21 }
 0x1ea   : > { %1802 = vrot.lane.b32.xlu0 %v1720_v44, %s5222_s21 }
 0x1eb   : > { %v1584_v59 = vpop.permute.xlu1 %1583 }
 0x1ec   : > { %v1590_v0 = vpop.permute.xlu0 %1589  ;;  %1675 = vst.msk [vmem:[#allocation3 + $0x28] sm:$0xff] %vm1669_vm7, %v1584_v59 }
 0x1ed   : > { %1678 = vst.msk [vmem:[#allocation3 + $0x40] sm:$0xff] %vm1669_vm7, %v1590_v0  ;;  %1993 = vrot.lane.b32.xlu1 %v1912_v48, %s5223_s24 }
 0x1ee   : > { %1995 = vrot.lane.b32.xlu0 %v1913_v51, %s5223_s24 }
 0x1ef   : > { %v1588_v58 = vpop.permute.xlu1 %1587 }
 0x1f0   : > { %v1594_v2 = vpop.permute.xlu0 %1593  ;;  %1677 = vst.msk [vmem:[#allocation3 + $0x38] sm:$0xff] %vm1669_vm7, %v1588_v58 }
 0x1f1   : > { %1680 = vst.msk [vmem:[#allocation3 + $0x50] sm:$0xff] %vm1669_vm7, %v1594_v2  ;;  %1804 = vrot.lane.b32.xlu1 %v1721_v12, %s5222_s21 }
 0x1f2   : > { %1806 = vrot.lane.b32.xlu0 %v1722_v55, %s5222_s21 }
 0x1f3   : > { %v1592_v60 = vpop.permute.xlu1 %1591 }
 0x1f4   : > { %v1598_v17 = vpop.permute.xlu0 %1597  ;;  %1679 = vst.msk [vmem:[#allocation3 + $0x48] sm:$0xff] %vm1669_vm7, %v1592_v60 }
 0x1f5   : > { %1682 = vst.msk [vmem:[#allocation3 + $0x60] sm:$0xff] %vm1669_vm7, %v1598_v17  ;;  %1997 = vrot.lane.b32.xlu1 %v1914_v1, %s5223_s24 }
 0x1f6   : > { %1999 = vrot.lane.b32.xlu0 %v1915_v56, %s5223_s24 }
 0x1f7   : > { %v1596_v13 = vpop.permute.xlu1 %1595 }
 0x1f8   : > { %v1602_v18 = vpop.permute.xlu0 %1601  ;;  %1681 = vst.msk [vmem:[#allocation3 + $0x58] sm:$0xff] %vm1669_vm7, %v1596_v13 }
 0x1f9   : > { %1684 = vst.msk [vmem:[#allocation3 + $0x70] sm:$0xff] %vm1669_vm7, %v1602_v18  ;;  %1808 = vrot.lane.b32.xlu1 %v1723_v15, %s5222_s21 }
 0x1fa   : > { %1810 = vrot.lane.b32.xlu0 %v1724_v19, %s5222_s21 }
 0x1fb   : > { %v1600_v25 = vpop.permute.xlu1 %1599 }
 0x1fc   : > { %v1606_v24 = vpop.permute.xlu0 %1605  ;;  %1683 = vst.msk [vmem:[#allocation3 + $0x68] sm:$0xff] %vm1669_vm7, %v1600_v25 }
 0x1fd   : > { %1686 = vst.msk [vmem:[#allocation3 + $0x80] sm:$0xff] %vm1669_vm7, %v1606_v24  ;;  %2001 = vrot.lane.b32.xlu1 %v1916_v23, %s5223_s24 }
 0x1fe   : > { %2003 = vrot.lane.b32.xlu0 %v1917_v20, %s5223_s24 }
 0x1ff   : > { %v1604_v29 = vpop.permute.xlu1 %1603 }
 0x200   : > { %v1610_v28 = vpop.permute.xlu0 %1609  ;;  %1685 = vst.msk [vmem:[#allocation3 + $0x78] sm:$0xff] %vm1669_vm7, %v1604_v29 }
 0x201   : > { %1688 = vst.msk [vmem:[#allocation3 + $0x90] sm:$0xff] %vm1669_vm7, %v1610_v28  ;;  %1812 = vrot.lane.b32.xlu1 %v1725_v27, %s5222_s21 }
 0x202   : > { %1814 = vrot.lane.b32.xlu0 %v1726_v26, %s5222_s21 }
 0x203   : > { %v1608_v33 = vpop.permute.xlu1 %1607 }
 0x204   : > { %v1614_v32 = vpop.permute.xlu0 %1613  ;;  %1687 = vst.msk [vmem:[#allocation3 + $0x88] sm:$0xff] %vm1669_vm7, %v1608_v33 }
 0x205   : > { %1690 = vst.msk [vmem:[#allocation3 + $0xa0] sm:$0xff] %vm1669_vm7, %v1614_v32  ;;  %2005 = vrot.lane.b32.xlu1 %v1918_v31, %s5223_s24 }
 0x206   : > { %2007 = vrot.lane.b32.xlu0 %v1919_v30, %s5223_s24 }
 0x207   : > { %v1612_v37 = vpop.permute.xlu1 %1611 }
 0x208   : > { %v1618_v61 = vpop.permute.xlu0 %1617  ;;  %1689 = vst.msk [vmem:[#allocation3 + $0x98] sm:$0xff] %vm1669_vm7, %v1612_v37 }
 0x209   : > { %1692 = vst.msk [vmem:[#allocation3 + $0xb0] sm:$0xff] %vm1669_vm7, %v1618_v61  ;;  %1816 = vrot.lane.b32.xlu1 %v1727_v35, %s5222_s21 }
 0x20a   : > { %1818 = vrot.lane.b32.xlu0 %v1728_v34, %s5222_s21 }
 0x20b   : > { %v1616_v62 = vpop.permute.xlu1 %1615 }
 0x20c   : > { %v1622_v3 = vpop.permute.xlu0 %1621  ;;  %1691 = vst.msk [vmem:[#allocation3 + $0xa8] sm:$0xff] %vm1669_vm7, %v1616_v62 }
 0x20d   : > { %1694 = vst.msk [vmem:[#allocation3 + $0xc0] sm:$0xff] %vm1669_vm7, %v1622_v3  ;;  %2009 = vrot.lane.b32.xlu1 %v1920_v36, %s5223_s24 }
 0x20e   : > { %2011 = vrot.lane.b32.xlu0 %v1921_v41, %s5223_s24 }
 0x20f   : > { %v1620_v4 = vpop.permute.xlu1 %1619 }
 0x210   : > { %v1626_v5 = vpop.permute.xlu0 %1625  ;;  %1693 = vst.msk [vmem:[#allocation3 + $0xb8] sm:$0xff] %vm1669_vm7, %v1620_v4 }
 0x211   : > { %1696 = vst.msk [vmem:[#allocation3 + $0xd0] sm:$0xff] %vm1669_vm7, %v1626_v5  ;;  %1820 = vrot.lane.b32.xlu1 %v1729_v38, %s5222_s21 }
 0x212   : > { %1629 = vrot.lane.b32.xlu0 %v1537_v45, %s5221_s17 }
 0x213   : > { %v1624_v42 = vpop.permute.xlu1 %1623 }
 0x214   : > { %v1767_v49 = vpop.permute.xlu0 %1766  ;;  %1695 = vst.msk [vmem:[#allocation3 + $0xc8] sm:$0xff] %vm1669_vm7, %v1624_v42 }
 0x215   : > { %1863 = vst.msk [vmem:[#allocation3] sm:$0xff] %vm1862_vm8, %v1767_v49  ;;  %2013 = vrot.lane.b32.xlu1 %v1922_v6, %s5223_s24 }
 0x216   : > { %1822 = vrot.lane.b32.xlu0 %v5963_v63, %s5222_s21  ;;  %v1539_v63 = vld [vmem:[#allocation2 + $0x198] sm:$0xff] }
 0x217   : > { %v1628_v8 = vpop.permute.xlu1 %1627 }
 0x218   : > { %v1960_v9 = vpop.permute.xlu0 %1959  ;;  %1697 = vst.msk [vmem:[#allocation3 + $0xd8] sm:$0xff] %vm1669_vm7, %v1628_v8 }
 0x219   : > { %2056 = vst.msk [vmem:[#allocation3] sm:$0xff] %vm2055_vm9, %v1960_v9  ;;  %1631 = vrot.lane.b32.xlu1 %v1538_v7, %s5221_s17 }
 0x21a   : > { %2015 = vrot.lane.b32.xlu0 %v6063_v52, %s5223_s24  ;;  %v1540_v52 = vld [vmem:[#allocation2 + $0x1a0] sm:$0xff] }
 0x21b   : > { %v1769_v10 = vpop.permute.xlu1 %1768 }
 0x21c   : > { %v1771_v46 = vpop.permute.xlu0 %1770  ;;  %1864 = vst.msk [vmem:[#allocation3 + $0x8] sm:$0xff] %vm1862_vm8, %v1769_v10 }
 0x21d   : > { %1865 = vst.msk [vmem:[#allocation3 + $0x10] sm:$0xff] %vm1862_vm8, %v1771_v46  ;;  %1824 = vrot.lane.b32.xlu1 %v5977_v57, %s5222_s21 }
 0x21e   : > { %1633 = vrot.lane.b32.xlu0 %v1539_v63, %s5221_s17 }
 0x21f   : > { %v1962_v53 = vpop.permute.xlu1 %1961 }
 0x220   : > { %v1964_v14 = vpop.permute.xlu0 %1963  ;;  %v2088_v16 = vld [vmem:[#allocation3] sm:$0xff]  ;;  %2057 = vst.msk [vmem:[#allocation3 + $0x8] sm:$0xff] %vm2055_vm9, %v1962_v53 }
 0x221   : > { %2058 = vst.msk [vmem:[#allocation3 + $0x10] sm:$0xff] %vm2055_vm9, %v1964_v14  ;;  %5044 = vmatprep.mubr.msk.f32.mxu0 %vm2129_vm10, %v2088_v16  ;;  %2017 = vrot.lane.b32.xlu1 %v6077_v11, %s5223_s24 }
 0x223   : > { %v1773_v21 = vpop.permute.xlu1 %1772 }
 0x224   : > { %v1775_v50 = vpop.permute.xlu0 %1774  ;;  %1866 = vst.msk [vmem:[#allocation3 + $0x18] sm:$0xff] %vm1862_vm8, %v1773_v21 }
 0x225   : > { %1867 = vst.msk [vmem:[#allocation3 + $0x20] sm:$0xff] %vm1862_vm8, %v1775_v50  ;;  %1635 = vrot.lane.b32.xlu1 %v1540_v52, %s5221_s17 }
 0x227   : > { %v1966_v57 = vpop.permute.xlu1 %1965  ;;  %v2089_v22 = vld [vmem:[#allocation3 + $0x8] sm:$0xff] }
 0x228   : > { %v1968_v39 = vpop.permute.xlu0 %1967  ;;  %v2090_v40 = vld [vmem:[#allocation3 + $0x10] sm:$0xff]  ;;  %2059 = vst.msk [vmem:[#allocation3 + $0x18] sm:$0xff] %vm2055_vm9, %v1966_v57  ;;  %5045 = vmatmul.mubr.msk.f32.vlgmr.msra.gmra.mrb[0].mxu0 %vm2129_vm10, %v2089_v22 }
 0x229   : > { %2060 = vst.msk [vmem:[#allocation3 + $0x20] sm:$0xff] %vm2055_vm9, %v1968_v39  ;;  %5047 = vmatprep.mubr.msk.f32.mxu0 %vm2129_vm10, %v2090_v40  ;;  %v1733_v39 = vld [vmem:[#allocation2 + $0x1a1] sm:$0xff]  ;;  %v1732_v40 = vld [vmem:[#allocation2 + $0x199] sm:$0xff] }
 0x22a   : > { %1828 = vrot.lane.b32.xlu1 %v1733_v39, %s5222_s21  ;;  %1826 = vrot.lane.b32.xlu0 %v1732_v40, %s5222_s21 }
 0x22b   : > { %v1777_v11 = vpop.permute.xlu1 %1776 }
 0x22c   : > { %v1779_v43 = vpop.permute.xlu0 %1778  ;;  %1868 = vst.msk [vmem:[#allocation3 + $0x28] sm:$0xff] %vm1862_vm8, %v1777_v11 }
 0x22d   : > { %1869 = vst.msk [vmem:[#allocation3 + $0x30] sm:$0xff] %vm1862_vm8, %v1779_v43 }
 0x22f   : > { %v1970_v44 = vpop.permute.xlu1 %1969  ;;  %v2091_v54 = vld [vmem:[#allocation3 + $0x18] sm:$0xff] }
 0x230   : > { %v1972_v47 = vpop.permute.xlu0 %1971  ;;  %v2092_v48 = vld [vmem:[#allocation3 + $0x20] sm:$0xff]  ;;  %2061 = vst.msk [vmem:[#allocation3 + $0x28] sm:$0xff] %vm2055_vm9, %v1970_v44  ;;  %5048 = vmatmul.mubr.msk.f32.gmra.mrb[2].mxu0 %vm2129_vm10, %v2091_v54 }
 0x231   : > { %2062 = vst.msk [vmem:[#allocation3 + $0x30] sm:$0xff] %vm2055_vm9, %v1972_v47  ;;  %5050 = vmatprep.mubr.msk.f32.mxu0 %vm2129_vm10, %v2092_v48  ;;  %v1926_v47 = vld [vmem:[#allocation2 + $0x1a2] sm:$0xff]  ;;  %v1925_v48 = vld [vmem:[#allocation2 + $0x19a] sm:$0xff] }
 0x232   : > { %2021 = vrot.lane.b32.xlu1 %v1926_v47, %s5223_s24  ;;  %2019 = vrot.lane.b32.xlu0 %v1925_v48, %s5223_s24 }
 0x233   : > { %v1781_v51 = vpop.permute.xlu1 %1780 }
 0x234   : > { %v1783_v59 = vpop.permute.xlu0 %1782  ;;  %1870 = vst.msk [vmem:[#allocation3 + $0x38] sm:$0xff] %vm1862_vm8, %v1781_v51 }
 0x235   : > { %1871 = vst.msk [vmem:[#allocation3 + $0x40] sm:$0xff] %vm1862_vm8, %v1783_v59 }
 0x237   : > { %v1974_v0 = vpop.permute.xlu1 %1973  ;;  %v2093_v12 = vld [vmem:[#allocation3 + $0x28] sm:$0xff] }
 0x238   : > { %v1976_v55 = vpop.permute.xlu0 %1975  ;;  %v2094_v58 = vld [vmem:[#allocation3 + $0x30] sm:$0xff]  ;;  %2063 = vst.msk [vmem:[#allocation3 + $0x38] sm:$0xff] %vm2055_vm9, %v1974_v0  ;;  %5051 = vmatmul.mubr.msk.f32.gmra.mrb[4].mxu0 %vm2129_vm10, %v2093_v12  ;;  %v2658_v0 = vld [vmem:[#allocation2 + $0x9] sm:$0xff] }
 0x239   : > { %2064 = vst.msk [vmem:[#allocation3 + $0x40] sm:$0xff] %vm2055_vm9, %v1976_v55  ;;  %5053 = vmatprep.mubr.msk.f32.mxu0 %vm2129_vm10, %v2094_v58  ;;  %2723 = vrot.lane.b32.xlu1 %v2658_v0, %s5216_s12  ;;  %v2657_v12 = vld [vmem:[#allocation2 + $0x1] sm:$0xff] }
 0x23a   : > { %2721 = vrot.lane.b32.xlu0 %v2657_v12, %s5216_s12 }
 0x23b   : > { %v1785_v2 = vpop.permute.xlu1 %1784 }
 0x23c   : > { %v1787_v1 = vpop.permute.xlu0 %1786  ;;  %1872 = vst.msk [vmem:[#allocation3 + $0x48] sm:$0xff] %vm1862_vm8, %v1785_v2 }
 0x23d   : > { %1873 = vst.msk [vmem:[#allocation3 + $0x50] sm:$0xff] %vm1862_vm8, %v1787_v1 }
 0x23f   : > { %v1978_v56 = vpop.permute.xlu1 %1977  ;;  %v2095_v60 = vld [vmem:[#allocation3 + $0x38] sm:$0xff] }
 0x240   : > { %v1980_v17 = vpop.permute.xlu0 %1979  ;;  %v2096_v15 = vld [vmem:[#allocation3 + $0x40] sm:$0xff]  ;;  %2065 = vst.msk [vmem:[#allocation3 + $0x48] sm:$0xff] %vm2055_vm9, %v1978_v56  ;;  %5054 = vmatmul.mubr.msk.f32.gmra.mrb[6].mxu0 %vm2129_vm10, %v2095_v60 }
 0x241   : > { %2066 = vst.msk [vmem:[#allocation3 + $0x50] sm:$0xff] %vm2055_vm9, %v1980_v17  ;;  %5056 = vmatprep.mubr.msk.f32.mxu0 %vm2129_vm10, %v2096_v15 }
 0x243   : > { %v1789_v19 = vpop.permute.xlu1 %1788 }
 0x244   : > { %v1791_v13 = vpop.permute.xlu0 %1790  ;;  %1874 = vst.msk [vmem:[#allocation3 + $0x58] sm:$0xff] %vm1862_vm8, %v1789_v19 }
 0x245   : > { %1875 = vst.msk [vmem:[#allocation3 + $0x60] sm:$0xff] %vm1862_vm8, %v1791_v13 }
 0x247   : > { %v1982_v18 = vpop.permute.xlu1 %1981  ;;  %v2097_v23 = vld [vmem:[#allocation3 + $0x48] sm:$0xff] }
 0x248   : > { %v1984_v20 = vpop.permute.xlu0 %1983  ;;  %v2098_v25 = vld [vmem:[#allocation3 + $0x50] sm:$0xff]  ;;  %2067 = vst.msk [vmem:[#allocation3 + $0x58] sm:$0xff] %vm2055_vm9, %v1982_v18  ;;  %5057 = vmatmul.mubr.msk.f32.gmra.mrb[8].mxu0 %vm2129_vm10, %v2097_v23 }
 0x249   : > { %2068 = vst.msk [vmem:[#allocation3 + $0x60] sm:$0xff] %vm2055_vm9, %v1984_v20  ;;  %5059 = vmatprep.mubr.msk.f32.mxu0 %vm2129_vm10, %v2098_v25 }
 0x24b   : > { %v1793_v24 = vpop.permute.xlu1 %1792 }
 0x24c   : > { %v1795_v27 = vpop.permute.xlu0 %1794  ;;  %1876 = vst.msk [vmem:[#allocation3 + $0x68] sm:$0xff] %vm1862_vm8, %v1793_v24 }
 0x24d   : > { %1877 = vst.msk [vmem:[#allocation3 + $0x70] sm:$0xff] %vm1862_vm8, %v1795_v27 }
 0x24f   : > { %v1986_v26 = vpop.permute.xlu1 %1985  ;;  %v2099_v29 = vld [vmem:[#allocation3 + $0x58] sm:$0xff] }
 0x250   : > { %v1988_v28 = vpop.permute.xlu0 %1987  ;;  %v2100_v31 = vld [vmem:[#allocation3 + $0x60] sm:$0xff]  ;;  %2069 = vst.msk [vmem:[#allocation3 + $0x68] sm:$0xff] %vm2055_vm9, %v1986_v26  ;;  %5060 = vmatmul.mubr.msk.f32.gmra.mrb[10].mxu0 %vm2129_vm10, %v2099_v29  ;;  %v2594_v29 = vld [vmem:[#allocation2 + $0x8] sm:$0xff] }
 0x251   : > { %2070 = vst.msk [vmem:[#allocation3 + $0x70] sm:$0xff] %vm2055_vm9, %v1988_v28  ;;  %5062 = vmatprep.mubr.msk.f32.mxu0 %vm2129_vm10, %v2100_v31  ;;  %v2593_v28 = vld [vmem:[#allocation2] sm:$0xff] }
 0x252   : > { %2626 = vst.msk [vmem:[#allocation3 + $0x8] sm:$0xff] %vm326_vm0, %v2594_v29  ;;  %2625 = vst.msk [vmem:[#allocation3] sm:$0xff] %vm326_vm0, %v2593_v28 }
 0x253   : > { %v1797_v30 = vpop.permute.xlu1 %1796 }
 0x254   : > { %v1799_v33 = vpop.permute.xlu0 %1798  ;;  %1878 = vst.msk [vmem:[#allocation3 + $0x78] sm:$0xff] %vm1862_vm8, %v1797_v30  ;;  %v6425_v30 = vld [vmem:[%s7592_s3] ss:$0 sm:$0xff] }
 0x255   : > { %1879 = vst.msk [vmem:[#allocation3 + $0x80] sm:$0xff] %vm1862_vm8, %v1799_v33 }
 0x257   : > { %v1990_v32 = vpop.permute.xlu1 %1989  ;;  %v2101_v35 = vld [vmem:[#allocation3 + $0x68] sm:$0xff] }
 0x258   : > { %v1992_v34 = vpop.permute.xlu0 %1991  ;;  %v2102_v37 = vld [vmem:[#allocation3 + $0x70] sm:$0xff]  ;;  %2071 = vst.msk [vmem:[#allocation3 + $0x78] sm:$0xff] %vm2055_vm9, %v1990_v32  ;;  %5063 = vmatmul.mubr.msk.f32.gmra.mrb[12].mxu0 %vm2129_vm10, %v2101_v35 }
 0x259   : > { %2072 = vst.msk [vmem:[#allocation3 + $0x80] sm:$0xff] %vm2055_vm9, %v1992_v34  ;;  %5065 = vmatprep.mubr.msk.f32.mxu0 %vm2129_vm10, %v2102_v37  ;;  %v6432_v35 = vld [vmem:[%s7593_s4] ss:$0 sm:$0xff] }
 0x25b   : > { %v1801_v61 = vpop.permute.xlu1 %1800 }
 0x25c   : > { %v1803_v36 = vpop.permute.xlu0 %1802  ;;  %1880 = vst.msk [vmem:[#allocation3 + $0x88] sm:$0xff] %vm1862_vm8, %v1801_v61 }
 0x25d   : > { %1881 = vst.msk [vmem:[#allocation3 + $0x90] sm:$0xff] %vm1862_vm8, %v1803_v36 }
 0x25f   : > { %v1994_v41 = vpop.permute.xlu1 %1993  ;;  %v2103_v62 = vld [vmem:[#allocation3 + $0x78] sm:$0xff] }
 0x260   : > { %v1996_v3 = vpop.permute.xlu0 %1995  ;;  %v2104_v38 = vld [vmem:[#allocation3 + $0x80] sm:$0xff]  ;;  %2073 = vst.msk [vmem:[#allocation3 + $0x88] sm:$0xff] %vm2055_vm9, %v1994_v41  ;;  %5066 = vmatmul.mubr.msk.f32.gmra.mrb[14].mxu0 %vm2129_vm10, %v2103_v62 }
 0x261   : > { %2074 = vst.msk [vmem:[#allocation3 + $0x90] sm:$0xff] %vm2055_vm9, %v1996_v3  ;;  %5068 = vmatprep.mubr.msk.f32.mxu0 %vm2129_vm10, %v2104_v38 }
 0x263   : > { %v1805_v45 = vpop.permute.xlu1 %1804 }
 0x264   : > { %v1807_v4 = vpop.permute.xlu0 %1806  ;;  %1882 = vst.msk [vmem:[#allocation3 + $0x98] sm:$0xff] %vm1862_vm8, %v1805_v45 }
 0x265   : > { %1883 = vst.msk [vmem:[#allocation3 + $0xa0] sm:$0xff] %vm1862_vm8, %v1807_v4 }
 0x267   : > { %v1998_v5 = vpop.permute.xlu1 %1997  ;;  %v2105_v6 = vld [vmem:[#allocation3 + $0x88] sm:$0xff] }
 0x268   : > { %v2000_v42 = vpop.permute.xlu0 %1999  ;;  %v2106_v49 = vld [vmem:[#allocation3 + $0x90] sm:$0xff]  ;;  %2075 = vst.msk [vmem:[#allocation3 + $0x98] sm:$0xff] %vm2055_vm9, %v1998_v5  ;;  %5069 = vmatmul.mubr.msk.f32.gmra.mrb[16].mxu0 %vm2129_vm10, %v2105_v6 }
 0x269   : > { %2076 = vst.msk [vmem:[#allocation3 + $0xa0] sm:$0xff] %vm2055_vm9, %v2000_v42  ;;  %5071 = vmatprep.mubr.msk.f32.mxu0 %vm2129_vm10, %v2106_v49 }
 0x26b   : > { %v1809_v7 = vpop.permute.xlu1 %1808 }
 0x26c   : > { %v1811_v8 = vpop.permute.xlu0 %1810  ;;  %1884 = vst.msk [vmem:[#allocation3 + $0xa8] sm:$0xff] %vm1862_vm8, %v1809_v7 }
 0x26d   : > { %1885 = vst.msk [vmem:[#allocation3 + $0xb0] sm:$0xff] %vm1862_vm8, %v1811_v8 }
 0x26f   : > { %v2002_v9 = vpop.permute.xlu1 %2001  ;;  %v2107_v10 = vld [vmem:[#allocation3 + $0x98] sm:$0xff] }
 0x270   : > { %v2004_v46 = vpop.permute.xlu0 %2003  ;;  %v2108_v63 = vld [vmem:[#allocation3 + $0xa0] sm:$0xff]  ;;  %2077 = vst.msk [vmem:[#allocation3 + $0xa8] sm:$0xff] %vm2055_vm9, %v2002_v9  ;;  %5072 = vmatmul.mubr.msk.f32.gmra.mrb[18].mxu0 %vm2129_vm10, %v2107_v10 }
 0x271   : > { %2078 = vst.msk [vmem:[#allocation3 + $0xb0] sm:$0xff] %vm2055_vm9, %v2004_v46  ;;  %5074 = vmatprep.mubr.msk.f32.mxu0 %vm2129_vm10, %v2108_v63 }
 0x273   : > { %v1813_v53 = vpop.permute.xlu1 %1812 }
 0x274   : > { %v1815_v14 = vpop.permute.xlu0 %1814  ;;  %1886 = vst.msk [vmem:[#allocation3 + $0xb8] sm:$0xff] %vm1862_vm8, %v1813_v53 }
 0x275   : > { %1887 = vst.msk [vmem:[#allocation3 + $0xc0] sm:$0xff] %vm1862_vm8, %v1815_v14 }
 0x277   : > { %v2006_v16 = vpop.permute.xlu1 %2005  ;;  %v2109_v52 = vld [vmem:[#allocation3 + $0xa8] sm:$0xff] }
 0x278   : > { %v2008_v21 = vpop.permute.xlu0 %2007  ;;  %v2110_v50 = vld [vmem:[#allocation3 + $0xb0] sm:$0xff]  ;;  %2079 = vst.msk [vmem:[#allocation3 + $0xb8] sm:$0xff] %vm2055_vm9, %v2006_v16  ;;  %5075 = vmatmul.mubr.msk.f32.gmra.mrb[20].mxu0 %vm2129_vm10, %v2109_v52 }
 0x279   : > { %2080 = vst.msk [vmem:[#allocation3 + $0xc0] sm:$0xff] %vm2055_vm9, %v2008_v21  ;;  %5077 = vmatprep.mubr.msk.f32.mxu0 %vm2129_vm10, %v2110_v50 }
 0x27b   : > { %v1817_v57 = vpop.permute.xlu1 %1816 }
 0x27c   : > { %v1819_v22 = vpop.permute.xlu0 %1818  ;;  %1888 = vst.msk [vmem:[#allocation3 + $0xc8] sm:$0xff] %vm1862_vm8, %v1817_v57 }
 0x27d   : > { %1889 = vst.msk [vmem:[#allocation3 + $0xd0] sm:$0xff] %vm1862_vm8, %v1819_v22 }
 0x27f   : > { %v2010_v11 = vpop.permute.xlu1 %2009  ;;  %v2111_v43 = vld [vmem:[#allocation3 + $0xb8] sm:$0xff] }
 0x280   : > { %v2012_v44 = vpop.permute.xlu0 %2011  ;;  %v2112_v54 = vld [vmem:[#allocation3 + $0xc0] sm:$0xff]  ;;  %2081 = vst.msk [vmem:[#allocation3 + $0xc8] sm:$0xff] %vm2055_vm9, %v2010_v11  ;;  %5078 = vmatmul.mubr.msk.f32.gmra.mrb[22].mxu0 %vm2129_vm10, %v2111_v43 }
 0x281   : > { %2082 = vst.msk [vmem:[#allocation3 + $0xd0] sm:$0xff] %vm2055_vm9, %v2012_v44  ;;  %5080 = vmatprep.mubr.msk.f32.mxu0 %vm2129_vm10, %v2112_v54 }
 0x283   : > { %v1821_v51 = vpop.permute.xlu1 %1820 }
 0x284   : > { %v1630_v59 = vpop.permute.xlu0 %1629  ;;  %1890 = vst.msk [vmem:[#allocation3 + $0xd8] sm:$0xff] %vm1862_vm8, %v1821_v51 }
 0x285   : > { %1698 = vst.msk [vmem:[#allocation3 + $0xe0] sm:$0xff] %vm1669_vm7, %v1630_v59 }
 0x287   : > { %v2014_v55 = vpop.permute.xlu1 %2013  ;;  %v2113_v58 = vld [vmem:[#allocation3 + $0xc8] sm:$0xff] }
 0x288   : > { %v1823_v2 = vpop.permute.xlu0 %1822  ;;  %v2114_v1 = vld [vmem:[#allocation3 + $0xd0] sm:$0xff]  ;;  %2083 = vst.msk [vmem:[#allocation3 + $0xd8] sm:$0xff] %vm2055_vm9, %v2014_v55  ;;  %5081 = vmatmul.mubr.msk.f32.gmra.mrb[24].mxu0 %vm2129_vm10, %v2113_v58 }
 0x289   : > { %1891 = vst.msk [vmem:[#allocation3 + $0xe0] sm:$0xff] %vm1862_vm8, %v1823_v2  ;;  %5083 = vmatprep.mubr.msk.f32.mxu0 %vm2129_vm10, %v2114_v1 }
 0x28b   : > { %v1632_v56 = vpop.permute.xlu1 %1631 }
 0x28c   : > { %v2016_v60 = vpop.permute.xlu0 %2015  ;;  %1699 = vst.msk [vmem:[#allocation3 + $0xe8] sm:$0xff] %vm1669_vm7, %v1632_v56 }
 0x28d   : > { %2084 = vst.msk [vmem:[#allocation3 + $0xe0] sm:$0xff] %vm2055_vm9, %v2016_v60 }
 0x28f   : > { %v1825_v17 = vpop.permute.xlu1 %1824  ;;  %v2115_v15 = vld [vmem:[#allocation3 + $0xd8] sm:$0xff] }
 0x290   : > { %1892 = vst.msk [vmem:[#allocation3 + $0xe8] sm:$0xff] %vm1862_vm8, %v1825_v17  ;;  %5084 = vmatmul.mubr.msk.f32.gmra.mrb[26].mxu0 %vm2129_vm10, %v2115_v15  ;;  %v1634_v20 = vpop.permute.xlu0 %1633 }
 0x291   : > { %1700 = vst.msk [vmem:[#allocation3 + $0xf0] sm:$0xff] %vm1669_vm7, %v1634_v20 }
 0x293   : > { %v2018_v19 = vpop.permute.xlu1 %2017 }
 0x294   : > { %v2116_v13 = vld [vmem:[#allocation3 + $0xe0] sm:$0xff]  ;;  %2085 = vst.msk [vmem:[#allocation3 + $0xe8] sm:$0xff] %vm2055_vm9, %v2018_v19 }
 0x295   : > { %5086 = vmatprep.mubr.msk.f32.mxu0 %vm2129_vm10, %v2116_v13 }
 0x297   : > { %v1636_v23 = vpop.permute.xlu1 %1635 }
 0x298   : > { %1701 = vst.msk [vmem:[#allocation3 + $0xf8] sm:$0xff] %vm1669_vm7, %v1636_v23 }
 0x29b   : > { %v2117_v18 = vld [vmem:[#allocation3 + $0xe8] sm:$0xff] }
 0x29c   : > { %5087 = vmatmul.mubr.msk.f32.gmra.mrb[28].mxu0 %vm2129_vm10, %v2117_v18  ;;  %v1829_v25 = vpop.permute.xlu1 %1828  ;;  %v1827_v24 = vpop.permute.xlu0 %1826 }
 0x29d   : > { %1894 = vst.msk [vmem:[#allocation3 + $0xf8] sm:$0xff] %vm1862_vm8, %v1829_v25  ;;  %1893 = vst.msk [vmem:[#allocation3 + $0xf0] sm:$0xff] %vm1862_vm8, %v1827_v24 }
 0x2a4   : > { %v2022_v27 = vpop.permute.xlu1 %2021  ;;  %v2020_v26 = vpop.permute.xlu0 %2019 }
 0x2a5   : > { %2087 = vst.msk [vmem:[#allocation3 + $0xf8] sm:$0xff] %vm2055_vm9, %v2022_v27  ;;  %2086 = vst.msk [vmem:[#allocation3 + $0xf0] sm:$0xff] %vm2055_vm9, %v2020_v26 }
 0x2ab   : > { %v2724_v31 = vpop.permute.xlu1 %2723 }
 0x2ac   : > { %2818 = vst.msk [vmem:[#allocation3 + $0x8] sm:$0xff] %vm703_vm2, %v2724_v31  ;;  %v2722_v33 = vpop.permute.xlu0 %2721  ;;  %v2118_v62 = vld [vmem:[#allocation3 + $0xf0] sm:$0xff]  ;;  %v2119_v38 = vld [vmem:[#allocation3 + $0xf8] sm:$0xff] }
 0x2ad   : > { %2817 = vst.msk [vmem:[#allocation3] sm:$0xff] %vm703_vm2, %v2722_v33  ;;  %5089 = vmatprep.mubr.msk.f32.mxu0 %vm2129_vm10, %v2118_v62 }
 0x2ae   : > { %5090 = vmatmul.mubr.msk.f32.gmra.mrb[30].mxu0 %vm2129_vm10, %v2119_v38 }
 0x2fb   : > { %v5046_v32 = vpop.f32.mrb[0].mxu0 }
 0x2fc   : > { %v2459_v34 = vmul.f32 %v5046_v32, %v6425_v30  ;;  %v2292_v37 = vpop.f32.mrb[1].mxu0 }
 0x2fd   : > { %v2458_v61 = vmul.f32 %v6425_v30, %v2292_v37 }
 0x2fe   : > { %v2498_v36 = vadd.f32 %v6432_v35, %v2459_v34 }
 0x2ff   : > { %v2497_v41 = vadd.f32 %v6432_v35, %v2458_v61 }
 0x300   : > { %v2530_v3 = vmax.f32 %v2498_v36, 0.0 }
 0x301   : > { %v2529_v45 = vmax.f32 %v2497_v41, 0.0 }
 0x302   : > { %2562 = vst.msk [vmem:[#allocation2 + $0x21] sm:$0xff] %vm326_vm0, %v2530_v3 }
 0x303   : > { %2561 = vst.msk [vmem:[#allocation2 + $0x19] sm:$0xff] %vm326_vm0, %v2529_v45  ;;  %v5049_v4 = vpop.f32.mrb[2].mxu0 }
 0x304   : > { %v2461_v5 = vmul.f32 %v5049_v4, %v6425_v30  ;;  %v2302_v6 = vpop.f32.mrb[3].mxu0 }
 0x305   : > { %v2460_v42 = vmul.f32 %v6425_v30, %v2302_v6 }
 0x306   : > { %v2500_v49 = vadd.f32 %v6432_v35, %v2461_v5 }
 0x307   : > { %v2499_v7 = vadd.f32 %v6432_v35, %v2460_v42 }
 0x308   : > { %v2532_v8 = vmax.f32 %v2500_v49, 0.0 }
 0x309   : > { %v2531_v9 = vmax.f32 %v2499_v7, 0.0  ;;  %v6446_v10 = vld [vmem:[#allocation2 + $0x21] sm:$0xff] }
 0x30a   : > { %2564 = vst.msk [vmem:[#allocation2 + $0x39] sm:$0xff] %vm326_vm0, %v2532_v8  ;;  %2727 = vrot.lane.b32.xlu1 %v6446_v10, %s5216_s12  ;;  %v6451_v46 = vld [vmem:[#allocation2 + $0x19] sm:$0xff] }
 0x30b   : > { %v6453_v63 = vld [vmem:[#allocation2 + $0x20] sm:$0xff]  ;;  %v6455_v53 = vld [vmem:[#allocation2 + $0x18] sm:$0xff]  ;;  %2563 = vst.msk [vmem:[#allocation2 + $0x31] sm:$0xff] %vm326_vm0, %v2531_v9  ;;  %2725 = vrot.lane.b32.xlu0 %v6451_v46, %s5216_s12  ;;  %v5052_v14 = vpop.f32.mrb[4].mxu0 }
 0x30c   : > { %2628 = vst.msk [vmem:[#allocation3 + $0x18] sm:$0xff] %vm326_vm0, %v6453_v63  ;;  %2627 = vst.msk [vmem:[#allocation3 + $0x10] sm:$0xff] %vm326_vm0, %v6455_v53  ;;  %v2463_v16 = vmul.f32 %v5052_v14, %v6425_v30  ;;  %v2312_v52 = vpop.f32.mrb[5].mxu0 }
 0x30d   : > { %v2462_v21 = vmul.f32 %v6425_v30, %v2312_v52 }
 0x30e   : > { %v2502_v50 = vadd.f32 %v6432_v35, %v2463_v16 }
 0x30f   : > { %v2501_v57 = vadd.f32 %v6432_v35, %v2462_v21 }
 0x310   : > { %v2534_v22 = vmax.f32 %v2502_v50, 0.0 }
 0x311   : > { %v2533_v39 = vmax.f32 %v2501_v57, 0.0  ;;  %v6468_v40 = vld [vmem:[#allocation2 + $0x39] sm:$0xff] }
 0x312   : > { %2566 = vst.msk [vmem:[#allocation2 + $0x51] sm:$0xff] %vm326_vm0, %v2534_v22  ;;  %2731 = vrot.lane.b32.xlu1 %v6468_v40, %s5216_s12  ;;  %v6473_v11 = vld [vmem:[#allocation2 + $0x31] sm:$0xff] }
 0x313   : > { %v6475_v43 = vld [vmem:[#allocation2 + $0x38] sm:$0xff]  ;;  %v6477_v44 = vld [vmem:[#allocation2 + $0x30] sm:$0xff]  ;;  %2565 = vst.msk [vmem:[#allocation2 + $0x49] sm:$0xff] %vm326_vm0, %v2533_v39  ;;  %2729 = vrot.lane.b32.xlu0 %v6473_v11, %s5216_s12  ;;  %v5055_v54 = vpop.f32.mrb[6].mxu0 }
 0x314   : > { %2630 = vst.msk [vmem:[#allocation3 + $0x28] sm:$0xff] %vm326_vm0, %v6475_v43  ;;  %2629 = vst.msk [vmem:[#allocation3 + $0x20] sm:$0xff] %vm326_vm0, %v6477_v44  ;;  %v2465_v47 = vmul.f32 %v5055_v54, %v6425_v30  ;;  %v2322_v48 = vpop.f32.mrb[7].mxu0 }
 0x315   : > { %v2464_v51 = vmul.f32 %v6425_v30, %v2322_v48 }
 0x316   : > { %v2504_v59 = vadd.f32 %v6432_v35, %v2465_v47 }
 0x317   : > { %v2503_v0 = vadd.f32 %v6432_v35, %v2464_v51 }
 0x318   : > { %v2536_v12 = vmax.f32 %v2504_v59, 0.0 }
 0x319   : > { %v2535_v55 = vmax.f32 %v2503_v0, 0.0  ;;  %v6490_v58 = vld [vmem:[#allocation2 + $0x51] sm:$0xff] }
 0x31a   : > { %2568 = vst.msk [vmem:[#allocation2 + $0x69] sm:$0xff] %vm326_vm0, %v2536_v12  ;;  %2735 = vrot.lane.b32.xlu1 %v6490_v58, %s5216_s12  ;;  %v6495_v2 = vld [vmem:[#allocation2 + $0x49] sm:$0xff] }
 0x31b   : > { %v6497_v1 = vld [vmem:[#allocation2 + $0x50] sm:$0xff]  ;;  %v6499_v56 = vld [vmem:[#allocation2 + $0x48] sm:$0xff]  ;;  %2567 = vst.msk [vmem:[#allocation2 + $0x61] sm:$0xff] %vm326_vm0, %v2535_v55  ;;  %2733 = vrot.lane.b32.xlu0 %v6495_v2, %s5216_s12  ;;  %v5058_v60 = vpop.f32.mrb[8].mxu0 }
 0x31c   : > { %2632 = vst.msk [vmem:[#allocation3 + $0x38] sm:$0xff] %vm326_vm0, %v6497_v1  ;;  %2631 = vst.msk [vmem:[#allocation3 + $0x30] sm:$0xff] %vm326_vm0, %v6499_v56  ;;  %v2467_v17 = vmul.f32 %v5058_v60, %v6425_v30  ;;  %v2332_v15 = vpop.f32.mrb[9].mxu0 }
 0x31d   : > { %v2466_v19 = vmul.f32 %v6425_v30, %v2332_v15 }
 0x31e   : > { %v2506_v13 = vadd.f32 %v6432_v35, %v2467_v17 }
 0x31f   : > { %v2505_v18 = vadd.f32 %v6432_v35, %v2466_v19 }
 0x320   : > { %v2538_v23 = vmax.f32 %v2506_v13, 0.0 }
 0x321   : > { %v2537_v20 = vmax.f32 %v2505_v18, 0.0  ;;  %v6512_v25 = vld [vmem:[#allocation2 + $0x69] sm:$0xff] }
 0x322   : > { %2570 = vst.msk [vmem:[#allocation2 + $0x81] sm:$0xff] %vm326_vm0, %v2538_v23  ;;  %2739 = vrot.lane.b32.xlu1 %v6512_v25, %s5216_s12  ;;  %v6517_v24 = vld [vmem:[#allocation2 + $0x61] sm:$0xff] }
 0x323   : > { %v6519_v27 = vld [vmem:[#allocation2 + $0x68] sm:$0xff]  ;;  %2569 = vst.msk [vmem:[#allocation2 + $0x79] sm:$0xff] %vm326_vm0, %v2537_v20  ;;  %2737 = vrot.lane.b32.xlu0 %v6517_v24, %s5216_s12  ;;  %v5061_v26 = vpop.f32.mrb[10].mxu0  ;;  %v6526_v29 = vld [vmem:[#allocation2 + $0x60] sm:$0xff] }
 0x324   : > { %2634 = vst.msk [vmem:[#allocation3 + $0x48] sm:$0xff] %vm326_vm0, %v6519_v27  ;;  %v2469_v28 = vmul.f32 %v5061_v26, %v6425_v30  ;;  %v2342_v31 = vpop.f32.mrb[11].mxu0  ;;  %2633 = vst.msk [vmem:[#allocation3 + $0x40] sm:$0xff] %vm326_vm0, %v6526_v29 }
 0x325   : > { %v2468_v33 = vmul.f32 %v6425_v30, %v2342_v31 }
 0x326   : > { %v2508_v32 = vadd.f32 %v6432_v35, %v2469_v28 }
 0x327   : > { %v2507_v34 = vadd.f32 %v6432_v35, %v2468_v33 }
 0x328   : > { %v2540_v37 = vmax.f32 %v2508_v32, 0.0 }
 0x329   : > { %v2539_v61 = vmax.f32 %v2507_v34, 0.0  ;;  %v6534_v36 = vld [vmem:[#allocation2 + $0x81] sm:$0xff] }
 0x32a   : > { %2572 = vst.msk [vmem:[#allocation2 + $0x99] sm:$0xff] %vm326_vm0, %v2540_v37  ;;  %2743 = vrot.lane.b32.xlu1 %v6534_v36, %s5216_s12  ;;  %v6539_v41 = vld [vmem:[#allocation2 + $0x79] sm:$0xff] }
 0x32b   : > { %v6541_v62 = vld [vmem:[#allocation2 + $0x80] sm:$0xff]  ;;  %2571 = vst.msk [vmem:[#allocation2 + $0x91] sm:$0xff] %vm326_vm0, %v2539_v61  ;;  %2741 = vrot.lane.b32.xlu0 %v6539_v41, %s5216_s12  ;;  %v5064_v3 = vpop.f32.mrb[12].mxu0  ;;  %v6548_v38 = vld [vmem:[#allocation2 + $0x78] sm:$0xff] }
 0x32c   : > { %2636 = vst.msk [vmem:[#allocation3 + $0x58] sm:$0xff] %vm326_vm0, %v6541_v62  ;;  %v2471_v45 = vmul.f32 %v5064_v3, %v6425_v30  ;;  %v2352_v4 = vpop.f32.mrb[13].mxu0  ;;  %2635 = vst.msk [vmem:[#allocation3 + $0x50] sm:$0xff] %vm326_vm0, %v6548_v38 }
 0x32d   : > { %v2470_v5 = vmul.f32 %v6425_v30, %v2352_v4 }
 0x32e   : > { %v2510_v6 = vadd.f32 %v6432_v35, %v2471_v45 }
 0x32f   : > { %v2509_v42 = vadd.f32 %v6432_v35, %v2470_v5 }
 0x330   : > { %v2542_v49 = vmax.f32 %v2510_v6, 0.0 }
 0x331   : > { %v2541_v7 = vmax.f32 %v2509_v42, 0.0  ;;  %v2670_v8 = vld [vmem:[#allocation2 + $0x99] sm:$0xff] }
 0x332   : > { %2574 = vst.msk [vmem:[#allocation2 + $0xb1] sm:$0xff] %vm326_vm0, %v2542_v49  ;;  %2747 = vrot.lane.b32.xlu1 %v2670_v8, %s5216_s12  ;;  %v2669_v9 = vld [vmem:[#allocation2 + $0x91] sm:$0xff] }
 0x333   : > { %v6558_v14 = vld [vmem:[#allocation2 + $0x98] sm:$0xff]  ;;  %2573 = vst.msk [vmem:[#allocation2 + $0xa9] sm:$0xff] %vm326_vm0, %v2541_v7  ;;  %2745 = vrot.lane.b32.xlu0 %v2669_v9, %s5216_s12  ;;  %v5067_v16 = vpop.f32.mrb[14].mxu0  ;;  %v6564_v52 = vld [vmem:[#allocation2 + $0x90] sm:$0xff] }
 0x334   : > { %2638 = vst.msk [vmem:[#allocation3 + $0x68] sm:$0xff] %vm326_vm0, %v6558_v14  ;;  %v2473_v21 = vmul.f32 %v5067_v16, %v6425_v30  ;;  %v2362_v50 = vpop.f32.mrb[15].mxu0  ;;  %2637 = vst.msk [vmem:[#allocation3 + $0x60] sm:$0xff] %vm326_vm0, %v6564_v52 }
 0x335   : > { %v2472_v57 = vmul.f32 %v6425_v30, %v2362_v50 }
 0x336   : > { %v2512_v22 = vadd.f32 %v6432_v35, %v2473_v21 }
 0x337   : > { %v2511_v39 = vadd.f32 %v6432_v35, %v2472_v57 }
 0x338   : > { %v2544_v54 = vmax.f32 %v2512_v22, 0.0 }
 0x339   : > { %v2543_v47 = vmax.f32 %v2511_v39, 0.0  ;;  %v2672_v48 = vld [vmem:[#allocation2 + $0xb1] sm:$0xff] }
 0x33a   : > { %2576 = vst.msk [vmem:[#allocation2 + $0xc9] sm:$0xff] %vm326_vm0, %v2544_v54  ;;  %2751 = vrot.lane.b32.xlu1 %v2672_v48, %s5216_s12  ;;  %v2671_v51 = vld [vmem:[#allocation2 + $0xa9] sm:$0xff] }
 0x33b   : > { %v6574_v59 = vld [vmem:[#allocation2 + $0xb0] sm:$0xff]  ;;  %2575 = vst.msk [vmem:[#allocation2 + $0xc1] sm:$0xff] %vm326_vm0, %v2543_v47  ;;  %2749 = vrot.lane.b32.xlu0 %v2671_v51, %s5216_s12  ;;  %v5070_v0 = vpop.f32.mrb[16].mxu0  ;;  %v6580_v12 = vld [vmem:[#allocation2 + $0xa8] sm:$0xff] }
 0x33c   : > { %2640 = vst.msk [vmem:[#allocation3 + $0x78] sm:$0xff] %vm326_vm0, %v6574_v59  ;;  %v2475_v55 = vmul.f32 %v5070_v0, %v6425_v30  ;;  %v2372_v60 = vpop.f32.mrb[17].mxu0  ;;  %2639 = vst.msk [vmem:[#allocation3 + $0x70] sm:$0xff] %vm326_vm0, %v6580_v12 }
 0x33d   : > { %v2474_v17 = vmul.f32 %v6425_v30, %v2372_v60 }
 0x33e   : > { %v2514_v15 = vadd.f32 %v6432_v35, %v2475_v55 }
 0x33f   : > { %v2513_v19 = vadd.f32 %v6432_v35, %v2474_v17 }
 0x340   : > { %v2546_v13 = vmax.f32 %v2514_v15, 0.0 }
 0x341   : > { %v2545_v18 = vmax.f32 %v2513_v19, 0.0  ;;  %v2674_v23 = vld [vmem:[#allocation2 + $0xc9] sm:$0xff] }
 0x342   : > { %2578 = vst.msk [vmem:[#allocation2 + $0xe1] sm:$0xff] %vm326_vm0, %v2546_v13  ;;  %2755 = vrot.lane.b32.xlu1 %v2674_v23, %s5216_s12  ;;  %v2673_v20 = vld [vmem:[#allocation2 + $0xc1] sm:$0xff] }
 0x343   : > { %v6590_v26 = vld [vmem:[#allocation2 + $0xc8] sm:$0xff]  ;;  %2577 = vst.msk [vmem:[#allocation2 + $0xd9] sm:$0xff] %vm326_vm0, %v2545_v18  ;;  %2753 = vrot.lane.b32.xlu0 %v2673_v20, %s5216_s12  ;;  %v5073_v28 = vpop.f32.mrb[18].mxu0  ;;  %v6596_v31 = vld [vmem:[#allocation2 + $0xc0] sm:$0xff] }
 0x344   : > { %2642 = vst.msk [vmem:[#allocation3 + $0x88] sm:$0xff] %vm326_vm0, %v6590_v26  ;;  %v2477_v33 = vmul.f32 %v5073_v28, %v6425_v30  ;;  %v2382_v32 = vpop.f32.mrb[19].mxu0  ;;  %2641 = vst.msk [vmem:[#allocation3 + $0x80] sm:$0xff] %vm326_vm0, %v6596_v31 }
 0x345   : > { %v2476_v34 = vmul.f32 %v6425_v30, %v2382_v32 }
 0x346   : > { %v2516_v37 = vadd.f32 %v6432_v35, %v2477_v33 }
 0x347   : > { %v2515_v61 = vadd.f32 %v6432_v35, %v2476_v34 }
 0x348   : > { %v2548_v3 = vmax.f32 %v2516_v37, 0.0 }
 0x349   : > { %v2547_v45 = vmax.f32 %v2515_v61, 0.0  ;;  %v2676_v4 = vld [vmem:[#allocation2 + $0xe1] sm:$0xff] }
 0x34a   : > { %2580 = vst.msk [vmem:[#allocation2 + $0xf9] sm:$0xff] %vm326_vm0, %v2548_v3  ;;  %2759 = vrot.lane.b32.xlu1 %v2676_v4, %s5216_s12  ;;  %v2675_v5 = vld [vmem:[#allocation2 + $0xd9] sm:$0xff] }
 0x34b   : > { %v6606_v6 = vld [vmem:[#allocation2 + $0xe0] sm:$0xff]  ;;  %2579 = vst.msk [vmem:[#allocation2 + $0xf1] sm:$0xff] %vm326_vm0, %v2547_v45  ;;  %2757 = vrot.lane.b32.xlu0 %v2675_v5, %s5216_s12  ;;  %v5076_v42 = vpop.f32.mrb[20].mxu0  ;;  %v6612_v49 = vld [vmem:[#allocation2 + $0xd8] sm:$0xff] }
 0x34c   : > { %2644 = vst.msk [vmem:[#allocation3 + $0x98] sm:$0xff] %vm326_vm0, %v6606_v6  ;;  %v2479_v7 = vmul.f32 %v5076_v42, %v6425_v30  ;;  %v2392_v8 = vpop.f32.mrb[21].mxu0  ;;  %2643 = vst.msk [vmem:[#allocation3 + $0x90] sm:$0xff] %vm326_vm0, %v6612_v49 }
 0x34d   : > { %v2478_v9 = vmul.f32 %v6425_v30, %v2392_v8 }
 0x34e   : > { %v2518_v16 = vadd.f32 %v6432_v35, %v2479_v7 }
 0x34f   : > { %v2517_v21 = vadd.f32 %v6432_v35, %v2478_v9 }
 0x350   : > { %v2550_v50 = vmax.f32 %v2518_v16, 0.0 }
 0x351   : > { %v2549_v57 = vmax.f32 %v2517_v21, 0.0  ;;  %v2678_v22 = vld [vmem:[#allocation2 + $0xf9] sm:$0xff] }
 0x352   : > { %2582 = vst.msk [vmem:[#allocation2 + $0x111] sm:$0xff] %vm326_vm0, %v2550_v50  ;;  %2763 = vrot.lane.b32.xlu1 %v2678_v22, %s5216_s12  ;;  %v2677_v39 = vld [vmem:[#allocation2 + $0xf1] sm:$0xff] }
 0x353   : > { %v6622_v54 = vld [vmem:[#allocation2 + $0xf8] sm:$0xff]  ;;  %2581 = vst.msk [vmem:[#allocation2 + $0x109] sm:$0xff] %vm326_vm0, %v2549_v57  ;;  %2761 = vrot.lane.b32.xlu0 %v2677_v39, %s5216_s12  ;;  %v5079_v47 = vpop.f32.mrb[22].mxu0  ;;  %v6628_v48 = vld [vmem:[#allocation2 + $0xf0] sm:$0xff] }
 0x354   : > { %2646 = vst.msk [vmem:[#allocation3 + $0xa8] sm:$0xff] %vm326_vm0, %v6622_v54  ;;  %v2481_v51 = vmul.f32 %v5079_v47, %v6425_v30  ;;  %v2402_v0 = vpop.f32.mrb[23].mxu0  ;;  %2645 = vst.msk [vmem:[#allocation3 + $0xa0] sm:$0xff] %vm326_vm0, %v6628_v48 }
 0x355   : > { %v2480_v55 = vmul.f32 %v6425_v30, %v2402_v0 }
 0x356   : > { %v2520_v60 = vadd.f32 %v6432_v35, %v2481_v51 }
 0x357   : > { %v2519_v17 = vadd.f32 %v6432_v35, %v2480_v55 }
 0x358   : > { %v2552_v15 = vmax.f32 %v2520_v60, 0.0 }
 0x359   : > { %v2551_v19 = vmax.f32 %v2519_v17, 0.0  ;;  %v2680_v13 = vld [vmem:[#allocation2 + $0x111] sm:$0xff] }
 0x35a   : > { %2584 = vst.msk [vmem:[#allocation2 + $0x129] sm:$0xff] %vm326_vm0, %v2552_v15  ;;  %2767 = vrot.lane.b32.xlu1 %v2680_v13, %s5216_s12  ;;  %v2679_v18 = vld [vmem:[#allocation2 + $0x109] sm:$0xff] }
 0x35b   : > { %v6638_v23 = vld [vmem:[#allocation2 + $0x110] sm:$0xff]  ;;  %2583 = vst.msk [vmem:[#allocation2 + $0x121] sm:$0xff] %vm326_vm0, %v2551_v19  ;;  %2765 = vrot.lane.b32.xlu0 %v2679_v18, %s5216_s12  ;;  %v5082_v20 = vpop.f32.mrb[24].mxu0  ;;  %v6644_v28 = vld [vmem:[#allocation2 + $0x108] sm:$0xff] }
 0x35c   : > { %2648 = vst.msk [vmem:[#allocation3 + $0xb8] sm:$0xff] %vm326_vm0, %v6638_v23  ;;  %v2483_v33 = vmul.f32 %v5082_v20, %v6425_v30  ;;  %v2412_v32 = vpop.f32.mrb[25].mxu0  ;;  %2647 = vst.msk [vmem:[#allocation3 + $0xb0] sm:$0xff] %vm326_vm0, %v6644_v28 }
 0x35d   : > { %v2482_v34 = vmul.f32 %v6425_v30, %v2412_v32 }
 0x35e   : > { %v2522_v37 = vadd.f32 %v6432_v35, %v2483_v33 }
 0x35f   : > { %v2521_v61 = vadd.f32 %v6432_v35, %v2482_v34 }
 0x360   : > { %v2554_v3 = vmax.f32 %v2522_v37, 0.0 }
 0x361   : > { %v2553_v45 = vmax.f32 %v2521_v61, 0.0  ;;  %v2682_v4 = vld [vmem:[#allocation2 + $0x129] sm:$0xff] }
 0x362   : > { %2586 = vst.msk [vmem:[#allocation2 + $0x141] sm:$0xff] %vm326_vm0, %v2554_v3  ;;  %2771 = vrot.lane.b32.xlu1 %v2682_v4, %s5216_s12  ;;  %v2681_v5 = vld [vmem:[#allocation2 + $0x121] sm:$0xff] }
 0x363   : > { %v2618_v42 = vld [vmem:[#allocation2 + $0x128] sm:$0xff]  ;;  %2585 = vst.msk [vmem:[#allocation2 + $0x139] sm:$0xff] %vm326_vm0, %v2553_v45  ;;  %2769 = vrot.lane.b32.xlu0 %v2681_v5, %s5216_s12  ;;  %v5085_v7 = vpop.f32.mrb[26].mxu0  ;;  %v2617_v8 = vld [vmem:[#allocation2 + $0x120] sm:$0xff] }
 0x364   : > { %2650 = vst.msk [vmem:[#allocation3 + $0xc8] sm:$0xff] %vm326_vm0, %v2618_v42  ;;  %v2485_v9 = vmul.f32 %v5085_v7, %v6425_v30  ;;  %v2422_v16 = vpop.f32.mrb[27].mxu0  ;;  %2649 = vst.msk [vmem:[#allocation3 + $0xc0] sm:$0xff] %vm326_vm0, %v2617_v8  ;;  %v2850_v7 = vld [vmem:[#allocation2 + $0xa] sm:$0xff] }
 0x365   : > { %v2484_v21 = vmul.f32 %v6425_v30, %v2422_v16 }
 0x366   : > { %v2524_v50 = vadd.f32 %v6432_v35, %v2485_v9  ;;  %v2849_v9 = vld [vmem:[#allocation2 + $0x2] sm:$0xff] }
 0x367   : > { %v2523_v57 = vadd.f32 %v6432_v35, %v2484_v21 }
 0x368   : > { %v2556_v22 = vmax.f32 %v2524_v50, 0.0  ;;  %v6687_v50 = vld [vmem:[#allocation2 + $0x22] sm:$0xff] }
 0x369   : > { %v2555_v39 = vmax.f32 %v2523_v57, 0.0  ;;  %v2684_v47 = vld [vmem:[#allocation2 + $0x141] sm:$0xff] }
 0x36a   : > { %2588 = vst.msk [vmem:[#allocation2 + $0x159] sm:$0xff] %vm326_vm0, %v2556_v22  ;;  %2775 = vrot.lane.b32.xlu1 %v2684_v47, %s5216_s12  ;;  %v2683_v51 = vld [vmem:[#allocation2 + $0x139] sm:$0xff] }
 0x36b   : > { %v2620_v0 = vld [vmem:[#allocation2 + $0x140] sm:$0xff]  ;;  %2587 = vst.msk [vmem:[#allocation2 + $0x151] sm:$0xff] %vm326_vm0, %v2555_v39  ;;  %2773 = vrot.lane.b32.xlu0 %v2683_v51, %s5216_s12  ;;  %v2619_v55 = vld [vmem:[#allocation2 + $0x138] sm:$0xff] }
 0x36c   : > { %2652 = vst.msk [vmem:[#allocation3 + $0xd8] sm:$0xff] %vm326_vm0, %v2620_v0  ;;  %2651 = vst.msk [vmem:[#allocation3 + $0xd0] sm:$0xff] %vm326_vm0, %v2619_v55  ;;  %v6692_v57 = vld [vmem:[#allocation2 + $0x1a] sm:$0xff]  ;;  %v6700_v39 = vld [vmem:[#allocation2 + $0x32] sm:$0xff] }
 0x36d   : > { %v6696_v22 = vld [vmem:[#allocation2 + $0x3a] sm:$0xff]  ;;  %v6705_v0 = vld [vmem:[#allocation2 + $0x52] sm:$0xff]  ;;  %v6710_v55 = vld [vmem:[#allocation2 + $0x4a] sm:$0xff] }
 0x36f   : > { %v5088_v60 = vpop.f32.mrb[28].mxu0 }
 0x370   : > { %v2487_v17 = vmul.f32 %v5088_v60, %v6425_v30  ;;  %v2432_v15 = vpop.f32.mrb[29].mxu0  ;;  %v6714_v60 = vld [vmem:[#allocation2 + $0x6a] sm:$0xff] }
 0x371   : > { %v2486_v19 = vmul.f32 %v6425_v30, %v2432_v15  ;;  %v2686_v13 = vld [vmem:[#allocation2 + $0x159] sm:$0xff] }
 0x372   : > { %v2526_v18 = vadd.f32 %v6432_v35, %v2487_v17  ;;  %2779 = vrot.lane.b32.xlu1 %v2686_v13, %s5216_s12  ;;  %v2685_v20 = vld [vmem:[#allocation2 + $0x151] sm:$0xff]  ;;  %v6718_v17 = vld [vmem:[#allocation2 + $0x62] sm:$0xff] }
 0x373   : > { %v2622_v33 = vld [vmem:[#allocation2 + $0x158] sm:$0xff]  ;;  %v2525_v32 = vadd.f32 %v6432_v35, %v2486_v19  ;;  %2777 = vrot.lane.b32.xlu0 %v2685_v20, %s5216_s12  ;;  %v2621_v34 = vld [vmem:[#allocation2 + $0x150] sm:$0xff]  ;;  %v6723_v13 = vld [vmem:[#allocation2 + $0x82] sm:$0xff] }
 0x374   : > { %2654 = vst.msk [vmem:[#allocation3 + $0xe8] sm:$0xff] %vm326_vm0, %v2622_v33  ;;  %v2558_v37 = vmax.f32 %v2526_v18, 0.0  ;;  %2653 = vst.msk [vmem:[#allocation3 + $0xe0] sm:$0xff] %vm326_vm0, %v2621_v34  ;;  %v6728_v18 = vld [vmem:[#allocation2 + $0x7a] sm:$0xff]  ;;  %v6736_v33 = vld [vmem:[#allocation2 + $0x92] sm:$0xff] }
 0x375   : > { %v2557_v61 = vmax.f32 %v2525_v32, 0.0  ;;  %v6732_v20 = vld [vmem:[#allocation2 + $0x9a] sm:$0xff] }
 0x376   : > { %2590 = vst.msk [vmem:[#allocation2 + $0x171] sm:$0xff] %vm326_vm0, %v2558_v37  ;;  %v6741_v37 = vld [vmem:[#allocation2 + $0xb2] sm:$0xff] }
 0x377   : > { %2589 = vst.msk [vmem:[#allocation2 + $0x169] sm:$0xff] %vm326_vm0, %v2557_v61  ;;  %v6746_v61 = vld [vmem:[#allocation2 + $0xaa] sm:$0xff] }
 0x37c   : > { %v2728_v3 = vpop.permute.xlu1 %2727 }
 0x37d   : > { %2820 = vst.msk [vmem:[#allocation3 + $0x18] sm:$0xff] %vm703_vm2, %v2728_v3  ;;  %v2726_v45 = vpop.permute.xlu0 %2725  ;;  %v2688_v4 = vld [vmem:[#allocation2 + $0x171] sm:$0xff] }
 0x37e   : > { %2819 = vst.msk [vmem:[#allocation3 + $0x10] sm:$0xff] %vm703_vm2, %v2726_v45  ;;  %2783 = vrot.lane.b32.xlu1 %v2688_v4, %s5216_s12  ;;  %v2687_v5 = vld [vmem:[#allocation2 + $0x169] sm:$0xff] }
 0x37f   : > { %v2624_v42 = vld [vmem:[#allocation2 + $0x170] sm:$0xff]  ;;  %2781 = vrot.lane.b32.xlu0 %v2687_v5, %s5216_s12  ;;  %v2623_v8 = vld [vmem:[#allocation2 + $0x168] sm:$0xff] }
 0x380   : > { %2656 = vst.msk [vmem:[#allocation3 + $0xf8] sm:$0xff] %vm326_vm0, %v2624_v42  ;;  %2655 = vst.msk [vmem:[#allocation3 + $0xf0] sm:$0xff] %vm326_vm0, %v2623_v8  ;;  %v6750_v3 = vld [vmem:[#allocation2 + $0xca] sm:$0xff]  ;;  %v6754_v45 = vld [vmem:[#allocation2 + $0xc2] sm:$0xff] }
 0x381   : > { %v6759_v42 = vld [vmem:[#allocation2 + $0xe2] sm:$0xff]  ;;  %v2870_v8 = vld [vmem:[#allocation2 + $0xfa] sm:$0xff] }
 0x382   : > { %2915 = vrot.lane.b32.xlu1 %v2850_v7, %s5217_s13  ;;  %v6764_v7 = vld [vmem:[#allocation2 + $0xda] sm:$0xff] }
 0x383   : > { %2913 = vrot.lane.b32.xlu0 %v2849_v9, %s5217_s13  ;;  %v2869_v9 = vld [vmem:[#allocation2 + $0xf2] sm:$0xff] }
 0x384   : > { %v2732_v16 = vpop.permute.xlu1 %2731 }
 0x385   : > { %2822 = vst.msk [vmem:[#allocation3 + $0x28] sm:$0xff] %vm703_vm2, %v2732_v16  ;;  %v2730_v21 = vpop.permute.xlu0 %2729 }
 0x386   : > { %2821 = vst.msk [vmem:[#allocation3 + $0x20] sm:$0xff] %vm703_vm2, %v2730_v21  ;;  %2919 = vrot.lane.b32.xlu1 %v6687_v50, %s5217_s13 }
 0x387   : > { %2917 = vrot.lane.b32.xlu0 %v6692_v57, %s5217_s13 }
 0x38a   : > { %2923 = vrot.lane.b32.xlu1 %v6696_v22, %s5217_s13 }
 0x38b   : > { %2921 = vrot.lane.b32.xlu0 %v6700_v39, %s5217_s13 }
 0x38c   : > { %v2736_v47 = vpop.permute.xlu1 %2735 }
 0x38d   : > { %2824 = vst.msk [vmem:[#allocation3 + $0x38] sm:$0xff] %vm703_vm2, %v2736_v47  ;;  %v2734_v51 = vpop.permute.xlu0 %2733  ;;  %v2872_v47 = vld [vmem:[#allocation2 + $0x112] sm:$0xff] }
 0x38e   : > { %2823 = vst.msk [vmem:[#allocation3 + $0x30] sm:$0xff] %vm703_vm2, %v2734_v51  ;;  %2927 = vrot.lane.b32.xlu1 %v6705_v0, %s5217_s13  ;;  %v2871_v51 = vld [vmem:[#allocation2 + $0x10a] sm:$0xff] }
 0x38f   : > { %2925 = vrot.lane.b32.xlu0 %v6710_v55, %s5217_s13 }
 0x392   : > { %2931 = vrot.lane.b32.xlu1 %v6714_v60, %s5217_s13 }
 0x393   : > { %2929 = vrot.lane.b32.xlu0 %v6718_v17, %s5217_s13 }
 0x394   : > { %v2740_v15 = vpop.permute.xlu1 %2739 }
 0x395   : > { %2826 = vst.msk [vmem:[#allocation3 + $0x48] sm:$0xff] %vm703_vm2, %v2740_v15  ;;  %v2738_v19 = vpop.permute.xlu0 %2737  ;;  %v2874_v15 = vld [vmem:[#allocation2 + $0x12a] sm:$0xff] }
 0x396   : > { %2825 = vst.msk [vmem:[#allocation3 + $0x40] sm:$0xff] %vm703_vm2, %v2738_v19  ;;  %2935 = vrot.lane.b32.xlu1 %v6723_v13, %s5217_s13  ;;  %v2873_v19 = vld [vmem:[#allocation2 + $0x122] sm:$0xff] }
 0x397   : > { %2933 = vrot.lane.b32.xlu0 %v6728_v18, %s5217_s13 }
 0x39a   : > { %2939 = vrot.lane.b32.xlu1 %v6732_v20, %s5217_s13 }
 0x39b   : > { %2937 = vrot.lane.b32.xlu0 %v6736_v33, %s5217_s13 }
 0x39c   : > { %v2744_v32 = vpop.permute.xlu1 %2743 }
 0x39d   : > { %2828 = vst.msk [vmem:[#allocation3 + $0x58] sm:$0xff] %vm703_vm2, %v2744_v32  ;;  %v2742_v34 = vpop.permute.xlu0 %2741 }
 0x39e   : > { %2827 = vst.msk [vmem:[#allocation3 + $0x50] sm:$0xff] %vm703_vm2, %v2742_v34  ;;  %2943 = vrot.lane.b32.xlu1 %v6741_v37, %s5217_s13 }
 0x39f   : > { %2941 = vrot.lane.b32.xlu0 %v6746_v61, %s5217_s13 }
 0x3a2   : > { %2947 = vrot.lane.b32.xlu1 %v6750_v3, %s5217_s13 }
 0x3a3   : > { %2945 = vrot.lane.b32.xlu0 %v6754_v45, %s5217_s13 }
 0x3a4   : > { %v2748_v4 = vpop.permute.xlu1 %2747 }
 0x3a5   : > { %2830 = vst.msk [vmem:[#allocation3 + $0x68] sm:$0xff] %vm703_vm2, %v2748_v4  ;;  %v2746_v5 = vpop.permute.xlu0 %2745  ;;  %v2876_v4 = vld [vmem:[#allocation2 + $0x142] sm:$0xff] }
 0x3a6   : > { %2829 = vst.msk [vmem:[#allocation3 + $0x60] sm:$0xff] %vm703_vm2, %v2746_v5  ;;  %2951 = vrot.lane.b32.xlu1 %v6759_v42, %s5217_s13  ;;  %v2875_v5 = vld [vmem:[#allocation2 + $0x13a] sm:$0xff] }
 0x3a7   : > { %2949 = vrot.lane.b32.xlu0 %v6764_v7, %s5217_s13 }
 0x3aa   : > { %2955 = vrot.lane.b32.xlu1 %v2870_v8, %s5217_s13  ;;  %v2878_v8 = vld [vmem:[#allocation2 + $0x15a] sm:$0xff] }
 0x3ab   : > { %2953 = vrot.lane.b32.xlu0 %v2869_v9, %s5217_s13  ;;  %v2877_v9 = vld [vmem:[#allocation2 + $0x152] sm:$0xff] }
 0x3ac   : > { %v2752_v16 = vpop.permute.xlu1 %2751 }
 0x3ad   : > { %2832 = vst.msk [vmem:[#allocation3 + $0x78] sm:$0xff] %vm703_vm2, %v2752_v16  ;;  %v2750_v21 = vpop.permute.xlu0 %2749 }
 0x3ae   : > { %2831 = vst.msk [vmem:[#allocation3 + $0x70] sm:$0xff] %vm703_vm2, %v2750_v21  ;;  %2959 = vrot.lane.b32.xlu1 %v2872_v47, %s5217_s13  ;;  %v2880_v47 = vld [vmem:[#allocation2 + $0x172] sm:$0xff] }
 0x3af   : > { %2957 = vrot.lane.b32.xlu0 %v2871_v51, %s5217_s13  ;;  %v2879_v51 = vld [vmem:[#allocation2 + $0x16a] sm:$0xff] }
 0x3b2   : > { %2963 = vrot.lane.b32.xlu1 %v2874_v15, %s5217_s13 }
 0x3b3   : > { %2961 = vrot.lane.b32.xlu0 %v2873_v19, %s5217_s13 }
 0x3b4   : > { %v2756_v32 = vpop.permute.xlu1 %2755 }
 0x3b5   : > { %2834 = vst.msk [vmem:[#allocation3 + $0x88] sm:$0xff] %vm703_vm2, %v2756_v32  ;;  %v2754_v34 = vpop.permute.xlu0 %2753 }
 0x3b6   : > { %2833 = vst.msk [vmem:[#allocation3 + $0x80] sm:$0xff] %vm703_vm2, %v2754_v34  ;;  %2967 = vrot.lane.b32.xlu1 %v2876_v4, %s5217_s13 }
 0x3b7   : > { %2965 = vrot.lane.b32.xlu0 %v2875_v5, %s5217_s13 }
 0x3ba   : > { %2971 = vrot.lane.b32.xlu1 %v2878_v8, %s5217_s13  ;;  %v4225_v8 = vld [vmem:[%s7594_s5] sm:$0xff] }
 0x3bb   : > { %2969 = vrot.lane.b32.xlu0 %v2877_v9, %s5217_s13  ;;  %v4226_v9 = vld [vmem:[%s7594_s5 + $0x8] sm:$0xff] }
 0x3bc   : > { %v2760_v16 = vpop.permute.xlu1 %2759 }
 0x3bd   : > { %2836 = vst.msk [vmem:[#allocation3 + $0x98] sm:$0xff] %vm703_vm2, %v2760_v16  ;;  %v2758_v21 = vpop.permute.xlu0 %2757  ;;  %v5174_v16 = vpack.c.bf16 %v4226_v9, %v4225_v8 }
 0x3be   : > { %2835 = vst.msk [vmem:[#allocation3 + $0x90] sm:$0xff] %vm703_vm2, %v2758_v21  ;;  %2975 = vrot.lane.b32.xlu1 %v2880_v47, %s5217_s13 }
 0x3bf   : > { %2973 = vrot.lane.b32.xlu0 %v2879_v51, %s5217_s13  ;;  %5175 = vmatprep.subr.bf16.mxu1 %v5174_v16 }
 0x3c0   : > { %5177 = vmatpush3.bf16.msra.mxu1 %v5174_v16 }
 0x3c2   : > { %3107 = vrot.lane.b32.xlu1 %v6453_v63, %s5218_s14 }
 0x3c3   : > { %3105 = vrot.lane.b32.xlu0 %v6455_v53, %s5218_s14 }
 0x3c4   : > { %v2764_v15 = vpop.permute.xlu1 %2763 }
 0x3c5   : > { %2838 = vst.msk [vmem:[#allocation3 + $0xa8] sm:$0xff] %vm703_vm2, %v2764_v15  ;;  %v2762_v19 = vpop.permute.xlu0 %2761  ;;  %v4230_v15 = vld [vmem:[%s7594_s5 + $0x28] sm:$0xff] }
 0x3c6   : > { %2837 = vst.msk [vmem:[#allocation3 + $0xa0] sm:$0xff] %vm703_vm2, %v2762_v19  ;;  %3111 = vrot.lane.b32.xlu1 %v6475_v43, %s5218_s14 }
 0x3c7   : > { %3109 = vrot.lane.b32.xlu0 %v6477_v44, %s5218_s14 }
 0x3ca   : > { %3115 = vrot.lane.b32.xlu1 %v6497_v1, %s5218_s14 }
 0x3cb   : > { %3113 = vrot.lane.b32.xlu0 %v6499_v56, %s5218_s14 }
 0x3cc   : > { %v2768_v63 = vpop.permute.xlu1 %2767 }
 0x3cd   : > { %2840 = vst.msk [vmem:[#allocation3 + $0xb8] sm:$0xff] %vm703_vm2, %v2768_v63  ;;  %v2766_v53 = vpop.permute.xlu0 %2765 }
 0x3ce   : > { %2839 = vst.msk [vmem:[#allocation3 + $0xb0] sm:$0xff] %vm703_vm2, %v2766_v53  ;;  %3119 = vrot.lane.b32.xlu1 %v6519_v27, %s5218_s14 }
 0x3cf   : > { %3117 = vrot.lane.b32.xlu0 %v6526_v29, %s5218_s14 }
 0x3d2   : > { %3123 = vrot.lane.b32.xlu1 %v6541_v62, %s5218_s14 }
 0x3d3   : > { %3121 = vrot.lane.b32.xlu0 %v6548_v38, %s5218_s14 }
 0x3d4   : > { %v2772_v32 = vpop.permute.xlu1 %2771 }
 0x3d5   : > { %2842 = vst.msk [vmem:[#allocation3 + $0xc8] sm:$0xff] %vm703_vm2, %v2772_v32  ;;  %v2770_v34 = vpop.permute.xlu0 %2769  ;;  %v4233_v32 = vld [vmem:[%s7594_s5 + $0x40] sm:$0xff] }
 0x3d6   : > { %2841 = vst.msk [vmem:[#allocation3 + $0xc0] sm:$0xff] %vm703_vm2, %v2770_v34  ;;  %3127 = vrot.lane.b32.xlu1 %v6558_v14, %s5218_s14 }
 0x3d7   : > { %3125 = vrot.lane.b32.xlu0 %v6564_v52, %s5218_s14 }
 0x3da   : > { %3131 = vrot.lane.b32.xlu1 %v6574_v59, %s5218_s14 }
 0x3db   : > { %3129 = vrot.lane.b32.xlu0 %v6580_v12, %s5218_s14 }
 0x3dc   : > { %v2776_v4 = vpop.permute.xlu1 %2775 }
 0x3dd   : > { %2844 = vst.msk [vmem:[#allocation3 + $0xd8] sm:$0xff] %vm703_vm2, %v2776_v4  ;;  %v2774_v5 = vpop.permute.xlu0 %2773 }
 0x3de   : > { %2843 = vst.msk [vmem:[#allocation3 + $0xd0] sm:$0xff] %vm703_vm2, %v2774_v5  ;;  %3135 = vrot.lane.b32.xlu1 %v6590_v26, %s5218_s14 }
 0x3df   : > { %3133 = vrot.lane.b32.xlu0 %v6596_v31, %s5218_s14 }
 0x3e2   : > { %3299 = vrot.lane.b32.xlu1 %v6446_v10, %s5219_s15  ;;  %v4227_v10 = vld [vmem:[%s7594_s5 + $0x10] sm:$0xff] }
 0x3e3   : > { %3297 = vrot.lane.b32.xlu0 %v6451_v46, %s5219_s15  ;;  %v4228_v46 = vld [vmem:[%s7594_s5 + $0x18] sm:$0xff] }
 0x3e4   : > { %v2780_v21 = vpop.permute.xlu1 %2779  ;;  %v5178_v51 = vpack.c.bf16 %v4228_v46, %v4227_v10 }
 0x3e5   : > { %2846 = vst.msk [vmem:[#allocation3 + $0xe8] sm:$0xff] %vm703_vm2, %v2780_v21  ;;  %v2778_v47 = vpop.permute.xlu0 %2777 }
 0x3e6   : > { %2845 = vst.msk [vmem:[#allocation3 + $0xe0] sm:$0xff] %vm703_vm2, %v2778_v47  ;;  %3491 = vrot.lane.b32.xlu1 %v6687_v50, %s5220_s16  ;;  %5179 = vmatprep.subr.bf16.mxu1 %v5178_v51  ;;  %v4229_v50 = vld [vmem:[%s7594_s5 + $0x20] sm:$0xff]  ;;  %v5091_v47 = vpop.f32.mrb[30].mxu0 }
 0x3e7   : > { %3489 = vrot.lane.b32.xlu0 %v6692_v57, %s5220_s16  ;;  %5181 = vmatpush3.bf16.msra.mxu1 %v5178_v51  ;;  %v5182_v19 = vpack.c.bf16 %v4230_v15, %v4229_v50  ;;  %v4232_v57 = vld [vmem:[%s7594_s5 + $0x38] sm:$0xff]  ;;  %v2489_v10 = vmul.f32 %v5091_v47, %v6425_v30  ;;  %v2442_v46 = vpop.f32.mrb[31].mxu0 }
 0x3e8   : > { %v2488_v51 = vmul.f32 %v6425_v30, %v2442_v46 }
 0x3e9   : > { %5183 = vmatprep.subr.bf16.mxu1 %v5182_v19  ;;  %v2528_v50 = vadd.f32 %v6432_v35, %v2489_v10 }
 0x3ea   : > { %3683 = vrot.lane.b32.xlu1 %v6475_v43, %s5221_s17  ;;  %v4231_v43 = vld [vmem:[%s7594_s5 + $0x30] sm:$0xff]  ;;  %v2527_v15 = vadd.f32 %v6432_v35, %v2488_v51 }
 0x3eb   : > { %3681 = vrot.lane.b32.xlu0 %v6477_v44, %s5221_s17  ;;  %5185 = vmatpush3.bf16.msra.mxu1 %v5182_v19  ;;  %v5186_v63 = vpack.c.bf16 %v4232_v57, %v4231_v43 }
 0x3ec   : > { %v2559_v43 = vmax.f32 %v2527_v15, 0.0 }
 0x3ed   : > { %5187 = vmatprep.subr.bf16.mxu1 %v5186_v63 }
 0x3ee   : > { %3301 = vrot.lane.b32.xlu1 %v6473_v11, %s5219_s15  ;;  %2591 = vst.msk [vmem:[#allocation2 + $0x181] sm:$0xff] %vm326_vm0, %v2559_v43 }
 0x3ef   : > { %3873 = vrot.lane.b32.xlu0 %v6473_v11, %s5222_s21  ;;  %5189 = vmatpush3.bf16.msra.mxu1 %v5186_v63 }
 0x3f0   : > { %v2784_v53 = vpop.permute.xlu1 %2783  ;;  %5108 = vmatprep.subr.mxu1 %v4233_v32 }
 0x3f1   : > { %2848 = vst.msk [vmem:[#allocation3 + $0xf8] sm:$0xff] %vm703_vm2, %v2784_v53  ;;  %v2782_v44 = vpop.permute.xlu0 %2781 }
 0x3f2   : > { %2847 = vst.msk [vmem:[#allocation3 + $0xf0] sm:$0xff] %vm703_vm2, %v2782_v44  ;;  %4065 = vrot.lane.b32.xlu1 %v6700_v39, %s5223_s24 }
 0x3f3   : > { %3875 = vrot.lane.b32.xlu0 %v6468_v40, %s5222_s21  ;;  %5109 = vmatpush3.msra.mxu1 %v4233_v32 }
 0x3f4   : > { %v2916_v11 = vpop.permute.xlu1 %2915 }
 0x3f5   : > { %3010 = vst.msk [vmem:[#allocation3 + $0x8] sm:$0xff] %vm896_vm3, %v2916_v11  ;;  %v2914_v34 = vpop.permute.xlu0 %2913 }
 0x3f6   : > { %3009 = vst.msk [vmem:[#allocation3] sm:$0xff] %vm896_vm3, %v2914_v34  ;;  %3493 = vrot.lane.b32.xlu1 %v6700_v39, %s5220_s16 }
 0x3f7   : > { %3303 = vrot.lane.b32.xlu0 %v6468_v40, %s5219_s15 }
 0x3f8   : > { %v2920_v4 = vpop.permute.xlu1 %2919 }
 0x3f9   : > { %3012 = vst.msk [vmem:[#allocation3 + $0x18] sm:$0xff] %vm896_vm3, %v2920_v4  ;;  %v2918_v5 = vpop.permute.xlu0 %2917 }
 0x3fa   : > { %3011 = vst.msk [vmem:[#allocation3 + $0x10] sm:$0xff] %vm896_vm3, %v2918_v5  ;;  %3495 = vrot.lane.b32.xlu1 %v6696_v22, %s5220_s16 }
 0x3fb   : > { %4067 = vrot.lane.b32.xlu0 %v6696_v22, %s5223_s24 }
 0x3fc   : > { %v2924_v8 = vpop.permute.xlu1 %2923 }
 0x3fd   : > { %3014 = vst.msk [vmem:[#allocation3 + $0x28] sm:$0xff] %vm896_vm3, %v2924_v8  ;;  %v2922_v39 = vpop.permute.xlu0 %2921  ;;  %v3243_v8 = vld [vmem:[#allocation2 + $0x91] sm:$0xff] }
 0x3fe   : > { %3013 = vst.msk [vmem:[#allocation3 + $0x20] sm:$0xff] %vm896_vm3, %v2922_v39  ;;  %3687 = vrot.lane.b32.xlu1 %v6497_v1, %s5221_s17 }
 0x3ff   : > { %3685 = vrot.lane.b32.xlu0 %v6499_v56, %s5221_s17 }
 0x400   : > { %v2928_v40 = vpop.permute.xlu1 %2927 }
 0x401   : > { %3016 = vst.msk [vmem:[#allocation3 + $0x38] sm:$0xff] %vm896_vm3, %v2928_v40  ;;  %v2926_v9 = vpop.permute.xlu0 %2925 }
 0x402   : > { %3015 = vst.msk [vmem:[#allocation3 + $0x30] sm:$0xff] %vm896_vm3, %v2926_v9  ;;  %3305 = vrot.lane.b32.xlu1 %v6495_v2, %s5219_s15 }
 0x403   : > { %3877 = vrot.lane.b32.xlu0 %v6495_v2, %s5222_s21 }
 0x404   : > { %v2932_v22 = vpop.permute.xlu1 %2931 }
 0x405   : > { %3018 = vst.msk [vmem:[#allocation3 + $0x48] sm:$0xff] %vm896_vm3, %v2932_v22  ;;  %v2930_v16 = vpop.permute.xlu0 %2929 }
 0x406   : > { %3017 = vst.msk [vmem:[#allocation3 + $0x40] sm:$0xff] %vm896_vm3, %v2930_v16  ;;  %4069 = vrot.lane.b32.xlu1 %v6710_v55, %s5223_s24 }
 0x407   : > { %3879 = vrot.lane.b32.xlu0 %v6490_v58, %s5222_s21 }
 0x408   : > { %v2936_v1 = vpop.permute.xlu1 %2935 }
 0x409   : > { %3020 = vst.msk [vmem:[#allocation3 + $0x58] sm:$0xff] %vm896_vm3, %v2936_v1  ;;  %v2934_v56 = vpop.permute.xlu0 %2933 }
 0x40a   : > { %3019 = vst.msk [vmem:[#allocation3 + $0x50] sm:$0xff] %vm896_vm3, %v2934_v56  ;;  %3497 = vrot.lane.b32.xlu1 %v6710_v55, %s5220_s16 }
 0x40b   : > { %3307 = vrot.lane.b32.xlu0 %v6490_v58, %s5219_s15 }
 0x40c   : > { %v2940_v2 = vpop.permute.xlu1 %2939 }
 0x40d   : > { %3022 = vst.msk [vmem:[#allocation3 + $0x68] sm:$0xff] %vm896_vm3, %v2940_v2  ;;  %v2938_v21 = vpop.permute.xlu0 %2937  ;;  %v3245_v2 = vld [vmem:[#allocation2 + $0xa9] sm:$0xff] }
 0x40e   : > { %3021 = vst.msk [vmem:[#allocation3 + $0x60] sm:$0xff] %vm896_vm3, %v2938_v21  ;;  %3499 = vrot.lane.b32.xlu1 %v6705_v0, %s5220_s16 }
 0x40f   : > { %4071 = vrot.lane.b32.xlu0 %v6705_v0, %s5223_s24  ;;  %v2560_v0 = vmax.f32 %v2528_v50, 0.0  ;;  %v3247_v50 = vld [vmem:[#allocation2 + $0xc1] sm:$0xff] }
 0x410   : > { %v2944_v55 = vpop.permute.xlu1 %2943 }
 0x411   : > { %3024 = vst.msk [vmem:[#allocation3 + $0x78] sm:$0xff] %vm896_vm3, %v2944_v55  ;;  %v2942_v58 = vpop.permute.xlu0 %2941 }
 0x412   : > { %3023 = vst.msk [vmem:[#allocation3 + $0x70] sm:$0xff] %vm896_vm3, %v2942_v58  ;;  %3691 = vrot.lane.b32.xlu1 %v6519_v27, %s5221_s17 }
 0x413   : > { %3689 = vrot.lane.b32.xlu0 %v6526_v29, %s5221_s17  ;;  %2592 = vst.msk [vmem:[#allocation2 + $0x189] sm:$0xff] %vm326_vm0, %v2560_v0 }
 0x414   : > { %v2948_v19 = vpop.permute.xlu1 %2947 }
 0x415   : > { %3026 = vst.msk [vmem:[#allocation3 + $0x88] sm:$0xff] %vm896_vm3, %v2948_v19  ;;  %v2946_v30 = vpop.permute.xlu0 %2945 }
 0x416   : > { %3025 = vst.msk [vmem:[#allocation3 + $0x80] sm:$0xff] %vm896_vm3, %v2946_v30  ;;  %3309 = vrot.lane.b32.xlu1 %v6517_v24, %s5219_s15 }
 0x417   : > { %3881 = vrot.lane.b32.xlu0 %v6517_v24, %s5222_s21 }
 0x418   : > { %v2952_v35 = vpop.permute.xlu1 %2951 }
 0x419   : > { %3028 = vst.msk [vmem:[#allocation3 + $0x98] sm:$0xff] %vm896_vm3, %v2952_v35  ;;  %v2950_v27 = vpop.permute.xlu0 %2949 }
 0x41a   : > { %3027 = vst.msk [vmem:[#allocation3 + $0x90] sm:$0xff] %vm896_vm3, %v2950_v27  ;;  %4073 = vrot.lane.b32.xlu1 %v6718_v17, %s5223_s24 }
 0x41b   : > { %3883 = vrot.lane.b32.xlu0 %v6512_v25, %s5222_s21 }
 0x41c   : > { %v2956_v29 = vpop.permute.xlu1 %2955 }
 0x41d   : > { %3030 = vst.msk [vmem:[#allocation3 + $0xa8] sm:$0xff] %vm896_vm3, %v2956_v29  ;;  %v2954_v57 = vpop.permute.xlu0 %2953 }
 0x41e   : > { %3029 = vst.msk [vmem:[#allocation3 + $0xa0] sm:$0xff] %vm896_vm3, %v2954_v57  ;;  %3501 = vrot.lane.b32.xlu1 %v6718_v17, %s5220_s16 }
 0x41f   : > { %3311 = vrot.lane.b32.xlu0 %v6512_v25, %s5219_s15 }
 0x420   : > { %v2960_v24 = vpop.permute.xlu1 %2959 }
 0x421   : > { %3032 = vst.msk [vmem:[#allocation3 + $0xb8] sm:$0xff] %vm896_vm3, %v2960_v24  ;;  %v2958_v63 = vpop.permute.xlu0 %2957 }
 0x422   : > { %3031 = vst.msk [vmem:[#allocation3 + $0xb0] sm:$0xff] %vm896_vm3, %v2958_v63  ;;  %3503 = vrot.lane.b32.xlu1 %v6714_v60, %s5220_s16 }
 0x423   : > { %4075 = vrot.lane.b32.xlu0 %v6714_v60, %s5223_s24 }
 0x424   : > { %v2964_v53 = vpop.permute.xlu1 %2963 }
 0x425   : > { %3034 = vst.msk [vmem:[#allocation3 + $0xc8] sm:$0xff] %vm896_vm3, %v2964_v53  ;;  %v2962_v44 = vpop.permute.xlu0 %2961 }
 0x426   : > { %3033 = vst.msk [vmem:[#allocation3 + $0xc0] sm:$0xff] %vm896_vm3, %v2962_v44  ;;  %3695 = vrot.lane.b32.xlu1 %v6541_v62, %s5221_s17 }
 0x427   : > { %3693 = vrot.lane.b32.xlu0 %v6548_v38, %s5221_s17 }
 0x428   : > { %v2968_v25 = vpop.permute.xlu1 %2967 }
 0x429   : > { %3036 = vst.msk [vmem:[#allocation3 + $0xd8] sm:$0xff] %vm896_vm3, %v2968_v25  ;;  %v2966_v17 = vpop.permute.xlu0 %2965  ;;  %v3824_v25 = vld [vmem:[#allocation2 + $0xe1] sm:$0xff] }
 0x42a   : > { %3035 = vst.msk [vmem:[#allocation3 + $0xd0] sm:$0xff] %vm896_vm3, %v2966_v17  ;;  %3313 = vrot.lane.b32.xlu1 %v6539_v41, %s5219_s15 }
 0x42b   : > { %3885 = vrot.lane.b32.xlu0 %v6539_v41, %s5222_s21  ;;  %v3242_v41 = vld [vmem:[#allocation2 + $0x81] sm:$0xff] }
 0x42c   : > { %v2972_v60 = vpop.permute.xlu1 %2971 }
 0x42d   : > { %3038 = vst.msk [vmem:[#allocation3 + $0xe8] sm:$0xff] %vm896_vm3, %v2972_v60  ;;  %v2970_v32 = vpop.permute.xlu0 %2969 }
 0x42e   : > { %3037 = vst.msk [vmem:[#allocation3 + $0xe0] sm:$0xff] %vm896_vm3, %v2970_v32  ;;  %4077 = vrot.lane.b32.xlu1 %v6728_v18, %s5223_s24 }
 0x42f   : > { %3887 = vrot.lane.b32.xlu0 %v6534_v36, %s5222_s21 }
 0x430   : > { %v2976_v62 = vpop.permute.xlu1 %2975 }
 0x431   : > { %3040 = vst.msk [vmem:[#allocation3 + $0xf8] sm:$0xff] %vm896_vm3, %v2976_v62  ;;  %v2974_v38 = vpop.permute.xlu0 %2973 }
 0x432   : > { %3039 = vst.msk [vmem:[#allocation3 + $0xf0] sm:$0xff] %vm896_vm3, %v2974_v38  ;;  %3505 = vrot.lane.b32.xlu1 %v6728_v18, %s5220_s16 }
 0x433   : > { %3315 = vrot.lane.b32.xlu0 %v3242_v41, %s5219_s15 }
 0x434   : > { %v3108_v11 = vpop.permute.xlu1 %3107 }
 0x435   : > { %3202 = vst.msk [vmem:[#allocation3 + $0x8] sm:$0xff] %vm1089_vm4, %v3108_v11  ;;  %v3106_v34 = vpop.permute.xlu0 %3105 }
 0x436   : > { %3201 = vst.msk [vmem:[#allocation3] sm:$0xff] %vm1089_vm4, %v3106_v34  ;;  %3507 = vrot.lane.b32.xlu1 %v6723_v13, %s5220_s16  ;;  %v3825_v34 = vld [vmem:[#allocation2 + $0xf1] sm:$0xff] }
 0x437   : > { %4079 = vrot.lane.b32.xlu0 %v6723_v13, %s5223_s24 }
 0x438   : > { %v3112_v36 = vpop.permute.xlu1 %3111 }
 0x439   : > { %3204 = vst.msk [vmem:[#allocation3 + $0x18] sm:$0xff] %vm1089_vm4, %v3112_v36  ;;  %v3110_v4 = vpop.permute.xlu0 %3109 }
 0x43a   : > { %3203 = vst.msk [vmem:[#allocation3 + $0x10] sm:$0xff] %vm1089_vm4, %v3110_v4  ;;  %3699 = vrot.lane.b32.xlu1 %v6558_v14, %s5221_s17  ;;  %v3818_v14 = vld [vmem:[#allocation2 + $0x99] sm:$0xff] }
 0x43b   : > { %3697 = vrot.lane.b32.xlu0 %v6564_v52, %s5221_s17 }
 0x43c   : > { %v3116_v18 = vpop.permute.xlu1 %3115 }
 0x43d   : > { %3206 = vst.msk [vmem:[#allocation3 + $0x28] sm:$0xff] %vm1089_vm4, %v3116_v18  ;;  %v3114_v5 = vpop.permute.xlu0 %3113 }
 0x43e   : > { %3205 = vst.msk [vmem:[#allocation3 + $0x20] sm:$0xff] %vm1089_vm4, %v3114_v5  ;;  %3317 = vrot.lane.b32.xlu1 %v3243_v8, %s5219_s15  ;;  %v4017_v5 = vld [vmem:[#allocation2 + $0xf2] sm:$0xff] }
 0x43f   : > { %3889 = vrot.lane.b32.xlu0 %v3243_v8, %s5222_s21  ;;  %v3826_v8 = vld [vmem:[#allocation2 + $0xf9] sm:$0xff] }
 0x440   : > { %v3120_v13 = vpop.permute.xlu1 %3119 }
 0x441   : > { %3208 = vst.msk [vmem:[#allocation3 + $0x38] sm:$0xff] %vm1089_vm4, %v3120_v13  ;;  %v3118_v39 = vpop.permute.xlu0 %3117 }
 0x442   : > { %3207 = vst.msk [vmem:[#allocation3 + $0x30] sm:$0xff] %vm1089_vm4, %v3118_v39  ;;  %4081 = vrot.lane.b32.xlu1 %v6736_v33, %s5223_s24 }
 0x443   : > { %3891 = vrot.lane.b32.xlu0 %v3818_v14, %s5222_s21 }
 0x444   : > { %v3124_v52 = vpop.permute.xlu1 %3123 }
 0x445   : > { %3210 = vst.msk [vmem:[#allocation3 + $0x48] sm:$0xff] %vm1089_vm4, %v3124_v52  ;;  %v3122_v40 = vpop.permute.xlu0 %3121 }
 0x446   : > { %3209 = vst.msk [vmem:[#allocation3 + $0x40] sm:$0xff] %vm1089_vm4, %v3122_v40  ;;  %3509 = vrot.lane.b32.xlu1 %v6736_v33, %s5220_s16  ;;  %v3444_v40 = vld [vmem:[#allocation2 + $0xfa] sm:$0xff] }
 0x447   : > { %3319 = vrot.lane.b32.xlu0 %v3818_v14, %s5219_s15 }
 0x448   : > { %v3128_v9 = vpop.permute.xlu1 %3127 }
 0x449   : > { %3212 = vst.msk [vmem:[#allocation3 + $0x58] sm:$0xff] %vm1089_vm4, %v3128_v9  ;;  %v3126_v22 = vpop.permute.xlu0 %3125 }
 0x44a   : > { %3211 = vst.msk [vmem:[#allocation3 + $0x50] sm:$0xff] %vm1089_vm4, %v3126_v22  ;;  %3511 = vrot.lane.b32.xlu1 %v6732_v20, %s5220_s16 }
 0x44b   : > { %4083 = vrot.lane.b32.xlu0 %v6732_v20, %s5223_s24 }
 0x44c   : > { %v3132_v16 = vpop.permute.xlu1 %3131 }
 0x44d   : > { %3214 = vst.msk [vmem:[#allocation3 + $0x68] sm:$0xff] %vm1089_vm4, %v3132_v16  ;;  %v3130_v1 = vpop.permute.xlu0 %3129 }
 0x44e   : > { %3213 = vst.msk [vmem:[#allocation3 + $0x60] sm:$0xff] %vm1089_vm4, %v3130_v1  ;;  %3703 = vrot.lane.b32.xlu1 %v6574_v59, %s5221_s17  ;;  %v3820_v59 = vld [vmem:[#allocation2 + $0xb1] sm:$0xff] }
 0x44f   : > { %3701 = vrot.lane.b32.xlu0 %v6580_v12, %s5221_s17 }
 0x450   : > { %v3136_v33 = vpop.permute.xlu1 %3135 }
 0x451   : > { %3216 = vst.msk [vmem:[#allocation3 + $0x78] sm:$0xff] %vm1089_vm4, %v3136_v33  ;;  %v3134_v56 = vpop.permute.xlu0 %3133 }
 0x452   : > { %3215 = vst.msk [vmem:[#allocation3 + $0x70] sm:$0xff] %vm1089_vm4, %v3134_v56  ;;  %3321 = vrot.lane.b32.xlu1 %v3245_v2, %s5219_s15  ;;  %v3827_v56 = vld [vmem:[#allocation2 + $0x109] sm:$0xff] }
 0x453   : > { %3893 = vrot.lane.b32.xlu0 %v3245_v2, %s5222_s21 }
 0x454   : > { %v3300_v20 = vpop.permute.xlu1 %3299 }
 0x455   : > { %3394 = vst.msk [vmem:[#allocation3 + $0x8] sm:$0xff] %vm1282_vm5, %v3300_v20  ;;  %v3298_v21 = vpop.permute.xlu0 %3297 }
 0x456   : > { %3393 = vst.msk [vmem:[#allocation3] sm:$0xff] %vm1282_vm5, %v3298_v21  ;;  %4085 = vrot.lane.b32.xlu1 %v6746_v61, %s5223_s24 }
 0x457   : > { %3895 = vrot.lane.b32.xlu0 %v3820_v59, %s5222_s21 }
 0x458   : > { %v3492_v12 = vpop.permute.xlu1 %3491 }
 0x459   : > { %3586 = vst.msk [vmem:[#allocation3 + $0x8] sm:$0xff] %vm1475_vm6, %v3492_v12  ;;  %v3490_v47 = vpop.permute.xlu0 %3489 }
 0x45a   : > { %3585 = vst.msk [vmem:[#allocation3] sm:$0xff] %vm1475_vm6, %v3490_v47  ;;  %3513 = vrot.lane.b32.xlu1 %v6746_v61, %s5220_s16  ;;  %v3828_v47 = vld [vmem:[#allocation2 + $0x111] sm:$0xff] }
 0x45b   : > { %3323 = vrot.lane.b32.xlu0 %v3820_v59, %s5219_s15  ;;  %v4019_v59 = vld [vmem:[#allocation2 + $0x10a] sm:$0xff] }
 0x45c   : > { %v3684_v10 = vpop.permute.xlu1 %3683 }
 0x45d   : > { %3778 = vst.msk [vmem:[#allocation3 + $0x8] sm:$0xff] %vm1669_vm7, %v3684_v10  ;;  %v3682_v46 = vpop.permute.xlu0 %3681 }
 0x45e   : > { %3777 = vst.msk [vmem:[#allocation3] sm:$0xff] %vm1669_vm7, %v3682_v46  ;;  %3515 = vrot.lane.b32.xlu1 %v6741_v37, %s5220_s16 }
 0x45f   : > { %4087 = vrot.lane.b32.xlu0 %v6741_v37, %s5223_s24 }
 0x460   : > { %v3302_v55 = vpop.permute.xlu1 %3301 }
 0x461   : > { %3395 = vst.msk [vmem:[#allocation3 + $0x10] sm:$0xff] %vm1282_vm5, %v3302_v55  ;;  %v3874_v51 = vpop.permute.xlu0 %3873 }
 0x462   : > { %3969 = vst.msk [vmem:[#allocation3] sm:$0xff] %vm1862_vm8, %v3874_v51  ;;  %3707 = vrot.lane.b32.xlu1 %v6590_v26, %s5221_s17  ;;  %v3822_v26 = vld [vmem:[#allocation2 + $0xc9] sm:$0xff]  ;;  %v3446_v51 = vld [vmem:[#allocation2 + $0x112] sm:$0xff] }
 0x463   : > { %3705 = vrot.lane.b32.xlu0 %v6596_v31, %s5221_s17 }
 0x464   : > { %v4066_v61 = vpop.permute.xlu1 %4065 }
 0x465   : > { %4161 = vst.msk [vmem:[#allocation3] sm:$0xff] %vm2055_vm9, %v4066_v61  ;;  %v3876_v58 = vpop.permute.xlu0 %3875 }
 0x466   : > { %3970 = vst.msk [vmem:[#allocation3 + $0x8] sm:$0xff] %vm1862_vm8, %v3876_v58  ;;  %3325 = vrot.lane.b32.xlu1 %v3247_v50, %s5219_s15 }
 0x467   : > { %3897 = vrot.lane.b32.xlu0 %v3247_v50, %s5222_s21 }
 0x468   : > { %v3494_v37 = vpop.permute.xlu1 %3493 }
 0x469   : > { %3587 = vst.msk [vmem:[#allocation3 + $0x10] sm:$0xff] %vm1475_vm6, %v3494_v37  ;;  %v3304_v15 = vpop.permute.xlu0 %3303  ;;  %v3063_v37 = vld [vmem:[#allocation2 + $0x120] sm:$0xff] }
 0x46a   : > { %3396 = vst.msk [vmem:[#allocation3 + $0x18] sm:$0xff] %vm1282_vm5, %v3304_v15  ;;  %4089 = vrot.lane.b32.xlu1 %v6754_v45, %s5223_s24 }
 0x46b   : > { %3899 = vrot.lane.b32.xlu0 %v3822_v26, %s5222_s21 }
 0x46c   : > { %v3496_v31 = vpop.permute.xlu1 %3495  ;;  %v4193_v0 = vld [vmem:[#allocation3] sm:$0xff] }
 0x46d   : > { %3588 = vst.msk [vmem:[#allocation3 + $0x18] sm:$0xff] %vm1475_vm6, %v3496_v31  ;;  %5110 = vmatprep.mubr.msk.f32.mxu1 %vm2129_vm10, %v4193_v0  ;;  %v4068_v19 = vpop.permute.xlu0 %4067  ;;  %v3829_v31 = vld [vmem:[#allocation2 + $0x121] sm:$0xff] }
 0x46e   : > { %4162 = vst.msk [vmem:[#allocation3 + $0x8] sm:$0xff] %vm2055_vm9, %v4068_v19  ;;  %3517 = vrot.lane.b32.xlu1 %v6754_v45, %s5220_s16  ;;  %v3638_v0 = vld [vmem:[#allocation2 + $0x128] sm:$0xff] }
 0x46f   : > { %3327 = vrot.lane.b32.xlu0 %v3822_v26, %s5219_s15 }
 0x470   : > { %v3688_v43 = vpop.permute.xlu1 %3687 }
 0x471   : > { %3780 = vst.msk [vmem:[#allocation3 + $0x18] sm:$0xff] %vm1669_vm7, %v3688_v43  ;;  %v3686_v30 = vpop.permute.xlu0 %3685 }
 0x472   : > { %3779 = vst.msk [vmem:[#allocation3 + $0x10] sm:$0xff] %vm1669_vm7, %v3686_v30  ;;  %3519 = vrot.lane.b32.xlu1 %v6750_v3, %s5220_s16 }
 0x473   : > { %4091 = vrot.lane.b32.xlu0 %v6750_v3, %s5223_s24  ;;  %v3823_v3 = vld [vmem:[#allocation2 + $0xd9] sm:$0xff] }
 0x474   : > { %v3306_v35 = vpop.permute.xlu1 %3305 }
 0x475   : > { %3397 = vst.msk [vmem:[#allocation3 + $0x20] sm:$0xff] %vm1282_vm5, %v3306_v35  ;;  %v3878_v27 = vpop.permute.xlu0 %3877  ;;  %v4194_v29 = vld [vmem:[#allocation3 + $0x8] sm:$0xff] }
 0x476   : > { %3971 = vst.msk [vmem:[#allocation3 + $0x10] sm:$0xff] %vm1862_vm8, %v3878_v27  ;;  %3137 = vrot.lane.b32.xlu1 %v6612_v49, %s5218_s14  ;;  %5111 = vmatmul.mubr.msk.f32.vlgmr.msra.gmra.mrb[0].mxu1 %vm2129_vm10, %v4194_v29  ;;  %v4021_v29 = vld [vmem:[#allocation2 + $0x122] sm:$0xff] }
 0x477   : > { %3709 = vrot.lane.b32.xlu0 %v6612_v49, %s5221_s17 }
 0x478   : > { %v4070_v45 = vpop.permute.xlu1 %4069 }
 0x479   : > { %4163 = vst.msk [vmem:[#allocation3 + $0x10] sm:$0xff] %vm2055_vm9, %v4070_v45  ;;  %v3880_v57 = vpop.permute.xlu0 %3879  ;;  %v3830_v45 = vld [vmem:[#allocation2 + $0x129] sm:$0xff] }
 0x47a   : > { %3972 = vst.msk [vmem:[#allocation3 + $0x18] sm:$0xff] %vm1862_vm8, %v3880_v57  ;;  %3901 = vrot.lane.b32.xlu1 %v3823_v3, %s5222_s21 }
 0x47b   : > { %3711 = vrot.lane.b32.xlu0 %v6606_v6, %s5221_s17 }
 0x47c   : > { %v3498_v24 = vpop.permute.xlu1 %3497 }
 0x47d   : > { %3589 = vst.msk [vmem:[#allocation3 + $0x20] sm:$0xff] %vm1475_vm6, %v3498_v24  ;;  %v3308_v63 = vpop.permute.xlu0 %3307 }
 0x47e   : > { %3398 = vst.msk [vmem:[#allocation3 + $0x28] sm:$0xff] %vm1282_vm5, %v3308_v63  ;;  %3329 = vrot.lane.b32.xlu1 %v3823_v3, %s5219_s15 }
 0x47f   : > { %3139 = vrot.lane.b32.xlu0 %v6606_v6, %s5218_s14 }
 0x480   : > { %v3500_v49 = vpop.permute.xlu1 %3499  ;;  %v4195_v53 = vld [vmem:[#allocation3 + $0x10] sm:$0xff] }
 0x481   : > { %3590 = vst.msk [vmem:[#allocation3 + $0x28] sm:$0xff] %vm1475_vm6, %v3500_v49  ;;  %5113 = vmatprep.mubr.msk.f32.mxu1 %vm2129_vm10, %v4195_v53  ;;  %v4072_v44 = vpop.permute.xlu0 %4071  ;;  %v3448_v53 = vld [vmem:[#allocation2 + $0x12a] sm:$0xff] }
 0x482   : > { %4164 = vst.msk [vmem:[#allocation3 + $0x18] sm:$0xff] %vm2055_vm9, %v4072_v44  ;;  %4093 = vrot.lane.b32.xlu1 %v6764_v7, %s5223_s24 }
 0x483   : > { %3903 = vrot.lane.b32.xlu0 %v3824_v25, %s5222_s21 }
 0x484   : > { %v3692_v17 = vpop.permute.xlu1 %3691 }
 0x485   : > { %3782 = vst.msk [vmem:[#allocation3 + $0x28] sm:$0xff] %vm1669_vm7, %v3692_v17  ;;  %v3690_v60 = vpop.permute.xlu0 %3689  ;;  %v3065_v17 = vld [vmem:[#allocation2 + $0x138] sm:$0xff] }
 0x486   : > { %3781 = vst.msk [vmem:[#allocation3 + $0x20] sm:$0xff] %vm1669_vm7, %v3690_v60  ;;  %3521 = vrot.lane.b32.xlu1 %v6764_v7, %s5220_s16 }
 0x487   : > { %3331 = vrot.lane.b32.xlu0 %v3824_v25, %s5219_s15 }
 0x488   : > { %v3310_v6 = vpop.permute.xlu1 %3309 }
 0x489   : > { %3399 = vst.msk [vmem:[#allocation3 + $0x30] sm:$0xff] %vm1282_vm5, %v3310_v6  ;;  %v3882_v32 = vpop.permute.xlu0 %3881  ;;  %v4196_v62 = vld [vmem:[#allocation3 + $0x18] sm:$0xff] }
 0x48a   : > { %3973 = vst.msk [vmem:[#allocation3 + $0x20] sm:$0xff] %vm1862_vm8, %v3882_v32  ;;  %3523 = vrot.lane.b32.xlu1 %v6759_v42, %s5220_s16  ;;  %5114 = vmatmul.mubr.msk.f32.gmra.mrb[2].mxu1 %vm2129_vm10, %v4196_v62  ;;  %v3831_v32 = vld [vmem:[#allocation2 + $0x139] sm:$0xff] }
 0x48b   : > { %4095 = vrot.lane.b32.xlu0 %v6759_v42, %s5223_s24 }
 0x48c   : > { %v4074_v38 = vpop.permute.xlu1 %4073 }
 0x48d   : > { %4165 = vst.msk [vmem:[#allocation3 + $0x20] sm:$0xff] %vm2055_vm9, %v4074_v38  ;;  %v3884_v7 = vpop.permute.xlu0 %3883  ;;  %v3640_v38 = vld [vmem:[#allocation2 + $0x140] sm:$0xff] }
 0x48e   : > { %3974 = vst.msk [vmem:[#allocation3 + $0x28] sm:$0xff] %vm1862_vm8, %v3884_v7  ;;  %3141 = vrot.lane.b32.xlu1 %v6628_v48, %s5218_s14 }
 0x48f   : > { %3713 = vrot.lane.b32.xlu0 %v6628_v48, %s5221_s17 }
 0x490   : > { %v3502_v41 = vpop.permute.xlu1 %3501 }
 0x491   : > { %3591 = vst.msk [vmem:[#allocation3 + $0x30] sm:$0xff] %vm1475_vm6, %v3502_v41  ;;  %v3312_v11 = vpop.permute.xlu0 %3311 }
 0x492   : > { %3400 = vst.msk [vmem:[#allocation3 + $0x38] sm:$0xff] %vm1282_vm5, %v3312_v11  ;;  %3905 = vrot.lane.b32.xlu1 %v3825_v34, %s5222_s21 }
 0x493   : > { %3715 = vrot.lane.b32.xlu0 %v6622_v54, %s5221_s17 }
 0x494   : > { %v3504_v42 = vpop.permute.xlu1 %3503  ;;  %v4197_v36 = vld [vmem:[#allocation3 + $0x20] sm:$0xff] }
 0x495   : > { %3592 = vst.msk [vmem:[#allocation3 + $0x38] sm:$0xff] %vm1475_vm6, %v3504_v42  ;;  %5116 = vmatprep.mubr.msk.f32.mxu1 %vm2129_vm10, %v4197_v36  ;;  %v4076_v4 = vpop.permute.xlu0 %4075  ;;  %v4023_v42 = vld [vmem:[#allocation2 + $0x13a] sm:$0xff] }
 0x496   : > { %4166 = vst.msk [vmem:[#allocation3 + $0x28] sm:$0xff] %vm2055_vm9, %v4076_v4  ;;  %3333 = vrot.lane.b32.xlu1 %v3825_v34, %s5219_s15  ;;  %v3832_v36 = vld [vmem:[#allocation2 + $0x141] sm:$0xff] }
 0x497   : > { %3143 = vrot.lane.b32.xlu0 %v6622_v54, %s5218_s14 }
 0x498   : > { %v3696_v48 = vpop.permute.xlu1 %3695 }
 0x499   : > { %3784 = vst.msk [vmem:[#allocation3 + $0x38] sm:$0xff] %vm1669_vm7, %v3696_v48  ;;  %v3694_v18 = vpop.permute.xlu0 %3693 }
 0x49a   : > { %3783 = vst.msk [vmem:[#allocation3 + $0x30] sm:$0xff] %vm1669_vm7, %v3694_v18  ;;  %4097 = vrot.lane.b32.xlu1 %v4017_v5, %s5223_s24 }
 0x49b   : > { %3907 = vrot.lane.b32.xlu0 %v3826_v8, %s5222_s21 }
 0x49c   : > { %v3314_v13 = vpop.permute.xlu1 %3313 }
 0x49d   : > { %3401 = vst.msk [vmem:[#allocation3 + $0x40] sm:$0xff] %vm1282_vm5, %v3314_v13  ;;  %v3886_v39 = vpop.permute.xlu0 %3885  ;;  %v4198_v14 = vld [vmem:[#allocation3 + $0x28] sm:$0xff]  ;;  %v3450_v13 = vld [vmem:[#allocation2 + $0x142] sm:$0xff] }
 0x49e   : > { %3975 = vst.msk [vmem:[#allocation3 + $0x30] sm:$0xff] %vm1862_vm8, %v3886_v39  ;;  %3525 = vrot.lane.b32.xlu1 %v4017_v5, %s5220_s16  ;;  %5117 = vmatmul.mubr.msk.f32.gmra.mrb[4].mxu1 %vm2129_vm10, %v4198_v14 }
 0x49f   : > { %3335 = vrot.lane.b32.xlu0 %v3826_v8, %s5219_s15 }
 0x4a0   : > { %v4078_v54 = vpop.permute.xlu1 %4077 }
 0x4a1   : > { %4167 = vst.msk [vmem:[#allocation3 + $0x30] sm:$0xff] %vm2055_vm9, %v4078_v54  ;;  %v3888_v52 = vpop.permute.xlu0 %3887  ;;  %v3067_v54 = vld [vmem:[#allocation2 + $0x150] sm:$0xff] }
 0x4a2   : > { %3976 = vst.msk [vmem:[#allocation3 + $0x38] sm:$0xff] %vm1862_vm8, %v3888_v52  ;;  %3527 = vrot.lane.b32.xlu1 %v3444_v40, %s5220_s16 }
 0x4a3   : > { %4099 = vrot.lane.b32.xlu0 %v3444_v40, %s5223_s24 }
 0x4a4   : > { %v3506_v9 = vpop.permute.xlu1 %3505 }
 0x4a5   : > { %3593 = vst.msk [vmem:[#allocation3 + $0x40] sm:$0xff] %vm1475_vm6, %v3506_v9  ;;  %v3316_v22 = vpop.permute.xlu0 %3315 }
 0x4a6   : > { %3402 = vst.msk [vmem:[#allocation3 + $0x48] sm:$0xff] %vm1282_vm5, %v3316_v22  ;;  %3145 = vrot.lane.b32.xlu1 %v6644_v28, %s5218_s14  ;;  %v3833_v22 = vld [vmem:[#allocation2 + $0x151] sm:$0xff] }
 0x4a7   : > { %3717 = vrot.lane.b32.xlu0 %v6644_v28, %s5221_s17 }
 0x4a8   : > { %v3508_v16 = vpop.permute.xlu1 %3507  ;;  %v4199_v1 = vld [vmem:[#allocation3 + $0x30] sm:$0xff] }
 0x4a9   : > { %3594 = vst.msk [vmem:[#allocation3 + $0x48] sm:$0xff] %vm1475_vm6, %v3508_v16  ;;  %5119 = vmatprep.mubr.msk.f32.mxu1 %vm2129_vm10, %v4199_v1  ;;  %v4080_v33 = vpop.permute.xlu0 %4079  ;;  %v3642_v16 = vld [vmem:[#allocation2 + $0x158] sm:$0xff] }
 0x4aa   : > { %4168 = vst.msk [vmem:[#allocation3 + $0x38] sm:$0xff] %vm2055_vm9, %v4080_v33  ;;  %3909 = vrot.lane.b32.xlu1 %v3827_v56, %s5222_s21 }
 0x4ab   : > { %3719 = vrot.lane.b32.xlu0 %v6638_v23, %s5221_s17 }
 0x4ac   : > { %v3700_v2 = vpop.permute.xlu1 %3699 }
 0x4ad   : > { %3786 = vst.msk [vmem:[#allocation3 + $0x48] sm:$0xff] %vm1669_vm7, %v3700_v2  ;;  %v3698_v20 = vpop.permute.xlu0 %3697 }
 0x4ae   : > { %3785 = vst.msk [vmem:[#allocation3 + $0x40] sm:$0xff] %vm1669_vm7, %v3698_v20  ;;  %3337 = vrot.lane.b32.xlu1 %v3827_v56, %s5219_s15  ;;  %v4025_v20 = vld [vmem:[#allocation2 + $0x152] sm:$0xff] }
 0x4af   : > { %3147 = vrot.lane.b32.xlu0 %v6638_v23, %s5218_s14 }
 0x4b0   : > { %v3318_v28 = vpop.permute.xlu1 %3317 }
 0x4b1   : > { %3403 = vst.msk [vmem:[#allocation3 + $0x50] sm:$0xff] %vm1282_vm5, %v3318_v28  ;;  %v3890_v21 = vpop.permute.xlu0 %3889  ;;  %v4200_v12 = vld [vmem:[#allocation3 + $0x38] sm:$0xff]  ;;  %v3834_v28 = vld [vmem:[#allocation2 + $0x159] sm:$0xff] }
 0x4b2   : > { %3977 = vst.msk [vmem:[#allocation3 + $0x40] sm:$0xff] %vm1862_vm8, %v3890_v21  ;;  %4101 = vrot.lane.b32.xlu1 %v4019_v59, %s5223_s24  ;;  %5120 = vmatmul.mubr.msk.f32.gmra.mrb[6].mxu1 %vm2129_vm10, %v4200_v12 }
 0x4b3   : > { %3911 = vrot.lane.b32.xlu0 %v3828_v47, %s5222_s21 }
 0x4b4   : > { %v4082_v10 = vpop.permute.xlu1 %4081 }
 0x4b5   : > { %4169 = vst.msk [vmem:[#allocation3 + $0x40] sm:$0xff] %vm2055_vm9, %v4082_v10  ;;  %v3892_v46 = vpop.permute.xlu0 %3891 }
 0x4b6   : > { %3978 = vst.msk [vmem:[#allocation3 + $0x48] sm:$0xff] %vm1862_vm8, %v3892_v46  ;;  %3529 = vrot.lane.b32.xlu1 %v4019_v59, %s5220_s16  ;;  %v3452_v46 = vld [vmem:[#allocation2 + $0x15a] sm:$0xff] }
 0x4b7   : > { %3339 = vrot.lane.b32.xlu0 %v3828_v47, %s5219_s15 }
 0x4b8   : > { %v3510_v23 = vpop.permute.xlu1 %3509 }
 0x4b9   : > { %3595 = vst.msk [vmem:[#allocation3 + $0x50] sm:$0xff] %vm1475_vm6, %v3510_v23  ;;  %v3320_v55 = vpop.permute.xlu0 %3319 }
 0x4ba   : > { %3404 = vst.msk [vmem:[#allocation3 + $0x58] sm:$0xff] %vm1282_vm5, %v3320_v55  ;;  %3531 = vrot.lane.b32.xlu1 %v3446_v51, %s5220_s16 }
 0x4bb   : > { %4103 = vrot.lane.b32.xlu0 %v3446_v51, %s5223_s24  ;;  %v3069_v51 = vld [vmem:[#allocation2 + $0x168] sm:$0xff] }
 0x4bc   : > { %v3512_v61 = vpop.permute.xlu1 %3511  ;;  %v4201_v58 = vld [vmem:[#allocation3 + $0x40] sm:$0xff] }
 0x4bd   : > { %3596 = vst.msk [vmem:[#allocation3 + $0x58] sm:$0xff] %vm1475_vm6, %v3512_v61  ;;  %5122 = vmatprep.mubr.msk.f32.mxu1 %vm2129_vm10, %v4201_v58  ;;  %v4084_v50 = vpop.permute.xlu0 %4083 }
 0x4be   : > { %4170 = vst.msk [vmem:[#allocation3 + $0x48] sm:$0xff] %vm2055_vm9, %v4084_v50  ;;  %3149 = vrot.lane.b32.xlu1 %v3063_v37, %s5218_s14 }
 0x4bf   : > { %3721 = vrot.lane.b32.xlu0 %v3063_v37, %s5221_s17  ;;  %v3835_v37 = vld [vmem:[#allocation2 + $0x169] sm:$0xff] }
 0x4c0   : > { %v3704_v15 = vpop.permute.xlu1 %3703 }
 0x4c1   : > { %3788 = vst.msk [vmem:[#allocation3 + $0x58] sm:$0xff] %vm1669_vm7, %v3704_v15  ;;  %v3702_v26 = vpop.permute.xlu0 %3701  ;;  %v3644_v15 = vld [vmem:[#allocation2 + $0x170] sm:$0xff] }
 0x4c2   : > { %3787 = vst.msk [vmem:[#allocation3 + $0x50] sm:$0xff] %vm1669_vm7, %v3702_v26  ;;  %3913 = vrot.lane.b32.xlu1 %v3829_v31, %s5222_s21 }
 0x4c3   : > { %3723 = vrot.lane.b32.xlu0 %v3638_v0, %s5221_s17 }
 0x4c4   : > { %v3322_v19 = vpop.permute.xlu1 %3321 }
 0x4c5   : > { %3405 = vst.msk [vmem:[#allocation3 + $0x60] sm:$0xff] %vm1282_vm5, %v3322_v19  ;;  %v3894_v43 = vpop.permute.xlu0 %3893  ;;  %v4202_v30 = vld [vmem:[#allocation3 + $0x48] sm:$0xff] }
 0x4c6   : > { %3979 = vst.msk [vmem:[#allocation3 + $0x50] sm:$0xff] %vm1862_vm8, %v3894_v43  ;;  %3341 = vrot.lane.b32.xlu1 %v3829_v31, %s5219_s15  ;;  %5123 = vmatmul.mubr.msk.f32.gmra.mrb[8].mxu1 %vm2129_vm10, %v4202_v30  ;;  %v4027_v43 = vld [vmem:[#allocation2 + $0x16a] sm:$0xff] }
 0x4c7   : > { %3151 = vrot.lane.b32.xlu0 %v3638_v0, %s5218_s14  ;;  %v3836_v30 = vld [vmem:[#allocation2 + $0x171] sm:$0xff] }
 0x4c8   : > { %v4086_v35 = vpop.permute.xlu1 %4085 }
 0x4c9   : > { %4171 = vst.msk [vmem:[#allocation3 + $0x50] sm:$0xff] %vm2055_vm9, %v4086_v35  ;;  %v3896_v27 = vpop.permute.xlu0 %3895 }
 0x4ca   : > { %3980 = vst.msk [vmem:[#allocation3 + $0x58] sm:$0xff] %vm1862_vm8, %v3896_v27  ;;  %4105 = vrot.lane.b32.xlu1 %v4021_v29, %s5223_s24 }
 0x4cb   : > { %3915 = vrot.lane.b32.xlu0 %v3830_v45, %s5222_s21 }
 0x4cc   : > { %v3514_v57 = vpop.permute.xlu1 %3513 }
 0x4cd   : > { %3597 = vst.msk [vmem:[#allocation3 + $0x60] sm:$0xff] %vm1475_vm6, %v3514_v57  ;;  %v3324_v3 = vpop.permute.xlu0 %3323 }
 0x4ce   : > { %3406 = vst.msk [vmem:[#allocation3 + $0x68] sm:$0xff] %vm1282_vm5, %v3324_v3  ;;  %3533 = vrot.lane.b32.xlu1 %v4021_v29, %s5220_s16  ;;  %v3454_v3 = vld [vmem:[#allocation2 + $0x172] sm:$0xff] }
 0x4cf   : > { %3343 = vrot.lane.b32.xlu0 %v3830_v45, %s5219_s15 }
 0x4d0   : > { %v3516_v24 = vpop.permute.xlu1 %3515  ;;  %v4203_v63 = vld [vmem:[#allocation3 + $0x50] sm:$0xff] }
 0x4d1   : > { %3598 = vst.msk [vmem:[#allocation3 + $0x68] sm:$0xff] %vm1475_vm6, %v3516_v24  ;;  %5125 = vmatprep.mubr.msk.f32.mxu1 %vm2129_vm10, %v4203_v63  ;;  %v4088_v49 = vpop.permute.xlu0 %4087 }
 0x4d2   : > { %4172 = vst.msk [vmem:[#allocation3 + $0x58] sm:$0xff] %vm2055_vm9, %v4088_v49  ;;  %3535 = vrot.lane.b32.xlu1 %v3448_v53, %s5220_s16 }
 0x4d3   : > { %4107 = vrot.lane.b32.xlu0 %v3448_v53, %s5223_s24  ;;  %v3071_v53 = vld [vmem:[#allocation2 + $0x180] sm:$0xff] }
 0x4d4   : > { %v3708_v44 = vpop.permute.xlu1 %3707 }
 0x4d5   : > { %3790 = vst.msk [vmem:[#allocation3 + $0x68] sm:$0xff] %vm1669_vm7, %v3708_v44  ;;  %v3706_v25 = vpop.permute.xlu0 %3705 }
 0x4d6   : > { %3789 = vst.msk [vmem:[#allocation3 + $0x60] sm:$0xff] %vm1669_vm7, %v3706_v25  ;;  %3153 = vrot.lane.b32.xlu1 %v3065_v17, %s5218_s14 }
 0x4d7   : > { %3725 = vrot.lane.b32.xlu0 %v3065_v17, %s5221_s17  ;;  %v3837_v17 = vld [vmem:[#allocation2 + $0x181] sm:$0xff] }
 0x4d8   : > { %v3326_v60 = vpop.permute.xlu1 %3325 }
 0x4d9   : > { %3407 = vst.msk [vmem:[#allocation3 + $0x70] sm:$0xff] %vm1282_vm5, %v3326_v60  ;;  %v3898_v6 = vpop.permute.xlu0 %3897  ;;  %v4204_v62 = vld [vmem:[#allocation3 + $0x58] sm:$0xff] }
 0x4da   : > { %3981 = vst.msk [vmem:[#allocation3 + $0x60] sm:$0xff] %vm1862_vm8, %v3898_v6  ;;  %3917 = vrot.lane.b32.xlu1 %v3831_v32, %s5222_s21  ;;  %5126 = vmatmul.mubr.msk.f32.gmra.mrb[10].mxu1 %vm2129_vm10, %v4204_v62  ;;  %v3646_v60 = vld [vmem:[#allocation2 + $0x188] sm:$0xff] }
 0x4db   : > { %3727 = vrot.lane.b32.xlu0 %v3640_v38, %s5221_s17 }
 0x4dc   : > { %v4090_v7 = vpop.permute.xlu1 %4089 }
 0x4dd   : > { %4173 = vst.msk [vmem:[#allocation3 + $0x60] sm:$0xff] %vm2055_vm9, %v4090_v7  ;;  %v3900_v41 = vpop.permute.xlu0 %3899  ;;  %v4029_v7 = vld [vmem:[#allocation2 + $0x182] sm:$0xff] }
 0x4de   : > { %3982 = vst.msk [vmem:[#allocation3 + $0x68] sm:$0xff] %vm1862_vm8, %v3900_v41  ;;  %3345 = vrot.lane.b32.xlu1 %v3831_v32, %s5219_s15  ;;  %v3838_v41 = vld [vmem:[#allocation2 + $0x189] sm:$0xff] }
 0x4df   : > { %3155 = vrot.lane.b32.xlu0 %v3640_v38, %s5218_s14 }
 0x4e0   : > { %v3518_v11 = vpop.permute.xlu1 %3517 }
 0x4e1   : > { %3599 = vst.msk [vmem:[#allocation3 + $0x70] sm:$0xff] %vm1475_vm6, %v3518_v11  ;;  %v3328_v34 = vpop.permute.xlu0 %3327 }
 0x4e2   : > { %3408 = vst.msk [vmem:[#allocation3 + $0x78] sm:$0xff] %vm1282_vm5, %v3328_v34  ;;  %4109 = vrot.lane.b32.xlu1 %v4023_v42, %s5223_s24 }
 0x4e3   : > { %3919 = vrot.lane.b32.xlu0 %v3832_v36, %s5222_s21 }
 0x4e4   : > { %v3520_v4 = vpop.permute.xlu1 %3519  ;;  %v4205_v48 = vld [vmem:[#allocation3 + $0x60] sm:$0xff] }
 0x4e5   : > { %3600 = vst.msk [vmem:[#allocation3 + $0x78] sm:$0xff] %vm1475_vm6, %v3520_v4  ;;  %5128 = vmatprep.mubr.msk.f32.mxu1 %vm2129_vm10, %v4205_v48  ;;  %v4092_v18 = vpop.permute.xlu0 %4091  ;;  %v3456_v48 = vld [vmem:[#allocation2 + $0x18a] sm:$0xff] }
 0x4e6   : > { %4174 = vst.msk [vmem:[#allocation3 + $0x68] sm:$0xff] %vm2055_vm9, %v4092_v18  ;;  %3537 = vrot.lane.b32.xlu1 %v4023_v42, %s5220_s16  ;;  %v3648_v18 = vld [vmem:[#allocation2 + $0x1a0] sm:$0xff] }
 0x4e7   : > { %3347 = vrot.lane.b32.xlu0 %v3832_v36, %s5219_s15 }
 0x4e8   : > { %v3138_v5 = vpop.permute.xlu1 %3137 }
 0x4e9   : > { %3217 = vst.msk [vmem:[#allocation3 + $0x80] sm:$0xff] %vm1089_vm4, %v3138_v5  ;;  %v3710_v8 = vpop.permute.xlu0 %3709 }
 0x4ea   : > { %3791 = vst.msk [vmem:[#allocation3 + $0x70] sm:$0xff] %vm1669_vm7, %v3710_v8  ;;  %3539 = vrot.lane.b32.xlu1 %v3450_v13, %s5220_s16  ;;  %v3647_v8 = vld [vmem:[#allocation2 + $0x198] sm:$0xff] }
 0x4eb   : > { %4111 = vrot.lane.b32.xlu0 %v3450_v13, %s5223_s24 }
 0x4ec   : > { %v3902_v39 = vpop.permute.xlu1 %3901 }
 0x4ed   : > { %3983 = vst.msk [vmem:[#allocation3 + $0x70] sm:$0xff] %vm1862_vm8, %v3902_v39  ;;  %v3712_v14 = vpop.permute.xlu0 %3711  ;;  %v4206_v52 = vld [vmem:[#allocation3 + $0x68] sm:$0xff] }
 0x4ee   : > { %3792 = vst.msk [vmem:[#allocation3 + $0x78] sm:$0xff] %vm1669_vm7, %v3712_v14  ;;  %3157 = vrot.lane.b32.xlu1 %v3067_v54, %s5218_s14  ;;  %5129 = vmatmul.mubr.msk.f32.gmra.mrb[12].mxu1 %vm2129_vm10, %v4206_v52  ;;  %v3840_v14 = vld [vmem:[#allocation2 + $0x1a1] sm:$0xff]  ;;  %v3839_v52 = vld [vmem:[#allocation2 + $0x199] sm:$0xff] }
 0x4ef   : > { %3729 = vrot.lane.b32.xlu0 %v3067_v54, %s5221_s17 }
 0x4f0   : > { %v3330_v40 = vpop.permute.xlu1 %3329 }
 0x4f1   : > { %3409 = vst.msk [vmem:[#allocation3 + $0x80] sm:$0xff] %vm1282_vm5, %v3330_v40  ;;  %v3140_v9 = vpop.permute.xlu0 %3139 }
 0x4f2   : > { %3218 = vst.msk [vmem:[#allocation3 + $0x88] sm:$0xff] %vm1089_vm4, %v3140_v9  ;;  %3921 = vrot.lane.b32.xlu1 %v3833_v22, %s5222_s21  ;;  %v4032_v9 = vld [vmem:[#allocation2 + $0x1a2] sm:$0xff] }
 0x4f3   : > { %3731 = vrot.lane.b32.xlu0 %v3642_v16, %s5221_s17 }
 0x4f4   : > { %v4094_v1 = vpop.permute.xlu1 %4093 }
 0x4f5   : > { %4175 = vst.msk [vmem:[#allocation3 + $0x70] sm:$0xff] %vm2055_vm9, %v4094_v1  ;;  %v3904_v33 = vpop.permute.xlu0 %3903 }
 0x4f6   : > { %3984 = vst.msk [vmem:[#allocation3 + $0x78] sm:$0xff] %vm1862_vm8, %v3904_v33  ;;  %3349 = vrot.lane.b32.xlu1 %v3833_v22, %s5219_s15 }
 0x4f7   : > { %3159 = vrot.lane.b32.xlu0 %v3642_v16, %s5218_s14  ;;  %v4031_v16 = vld [vmem:[#allocation2 + $0x19a] sm:$0xff] }
 0x4f8   : > { %v3522_v56 = vpop.permute.xlu1 %3521 }
 0x4f9   : > { %3601 = vst.msk [vmem:[#allocation3 + $0x80] sm:$0xff] %vm1475_vm6, %v3522_v56  ;;  %v3332_v2 = vpop.permute.xlu0 %3331 }
 0x4fa   : > { %3410 = vst.msk [vmem:[#allocation3 + $0x88] sm:$0xff] %vm1282_vm5, %v3332_v2  ;;  %4113 = vrot.lane.b32.xlu1 %v4025_v20, %s5223_s24 }
 0x4fb   : > { %3923 = vrot.lane.b32.xlu0 %v3834_v28, %s5222_s21 }
 0x4fc   : > { %v3524_v21 = vpop.permute.xlu1 %3523  ;;  %v4207_v59 = vld [vmem:[#allocation3 + $0x70] sm:$0xff] }
 0x4fd   : > { %3602 = vst.msk [vmem:[#allocation3 + $0x88] sm:$0xff] %vm1475_vm6, %v3524_v21  ;;  %5131 = vmatprep.mubr.msk.f32.mxu1 %vm2129_vm10, %v4207_v59  ;;  %v4096_v12 = vpop.permute.xlu0 %4095  ;;  %v7310_v21 = vld [vmem:[%s7595_s6] ss:$0 sm:$0xff] }
 0x4fe   : > { %4176 = vst.msk [vmem:[#allocation3 + $0x78] sm:$0xff] %vm2055_vm9, %v4096_v12  ;;  %3541 = vrot.lane.b32.xlu1 %v4025_v20, %s5220_s16 }
 0x4ff   : > { %3351 = vrot.lane.b32.xlu0 %v3834_v28, %s5219_s15 }
 0x500   : > { %v3142_v47 = vpop.permute.xlu1 %3141 }
 0x501   : > { %3219 = vst.msk [vmem:[#allocation3 + $0x90] sm:$0xff] %vm1089_vm4, %v3142_v47  ;;  %v3714_v10 = vpop.permute.xlu0 %3713  ;;  %v7316_v47 = vld [vmem:[%s7596_s7] ss:$0 sm:$0xff] }
 0x502   : > { %3793 = vst.msk [vmem:[#allocation3 + $0x80] sm:$0xff] %vm1669_vm7, %v3714_v10  ;;  %3543 = vrot.lane.b32.xlu1 %v3452_v46, %s5220_s16 }
 0x503   : > { %4115 = vrot.lane.b32.xlu0 %v3452_v46, %s5223_s24 }
 0x504   : > { %v3906_v23 = vpop.permute.xlu1 %3905 }
 0x505   : > { %3985 = vst.msk [vmem:[#allocation3 + $0x80] sm:$0xff] %vm1862_vm8, %v3906_v23  ;;  %v3716_v55 = vpop.permute.xlu0 %3715  ;;  %v4208_v61 = vld [vmem:[#allocation3 + $0x78] sm:$0xff] }
 0x506   : > { %3794 = vst.msk [vmem:[#allocation3 + $0x88] sm:$0xff] %vm1669_vm7, %v3716_v55  ;;  %3161 = vrot.lane.b32.xlu1 %v3069_v51, %s5218_s14  ;;  %5132 = vmatmul.mubr.msk.f32.gmra.mrb[14].mxu1 %vm2129_vm10, %v4208_v61  ;;  %v4634_v55 = vld [vmem:[%s5347_s11 + $0x8] sm:$0xff] }
 0x507   : > { %3733 = vrot.lane.b32.xlu0 %v3069_v51, %s5221_s17 }
 0x508   : > { %v3334_v58 = vpop.permute.xlu1 %3333 }
 0x509   : > { %3411 = vst.msk [vmem:[#allocation3 + $0x90] sm:$0xff] %vm1282_vm5, %v3334_v58  ;;  %v3144_v50 = vpop.permute.xlu0 %3143  ;;  %v4633_v58 = vld [vmem:[%s5347_s11] sm:$0xff] }
 0x50a   : > { %3220 = vst.msk [vmem:[#allocation3 + $0x98] sm:$0xff] %vm1089_vm4, %v3144_v50  ;;  %3925 = vrot.lane.b32.xlu1 %v3835_v37, %s5222_s21 }
 0x50b   : > { %3735 = vrot.lane.b32.xlu0 %v3644_v15, %s5221_s17 }
 0x50c   : > { %v4098_v26 = vpop.permute.xlu1 %4097 }
 0x50d   : > { %4177 = vst.msk [vmem:[#allocation3 + $0x80] sm:$0xff] %vm2055_vm9, %v4098_v26  ;;  %v3908_v31 = vpop.permute.xlu0 %3907 }
 0x50e   : > { %3986 = vst.msk [vmem:[#allocation3 + $0x88] sm:$0xff] %vm1862_vm8, %v3908_v31  ;;  %3353 = vrot.lane.b32.xlu1 %v3835_v37, %s5219_s15  ;;  %v4698_v37 = vld [vmem:[%s7322_s19 + $0x8] sm:$0xff] }
 0x50f   : > { %3163 = vrot.lane.b32.xlu0 %v3644_v15, %s5218_s14 }
 0x510   : > { %v3526_v0 = vpop.permute.xlu1 %3525 }
 0x511   : > { %3603 = vst.msk [vmem:[#allocation3 + $0x90] sm:$0xff] %vm1475_vm6, %v3526_v0  ;;  %v3336_v19 = vpop.permute.xlu0 %3335 }
 0x512   : > { %3412 = vst.msk [vmem:[#allocation3 + $0x98] sm:$0xff] %vm1282_vm5, %v3336_v19  ;;  %4117 = vrot.lane.b32.xlu1 %v4027_v43, %s5223_s24  ;;  %v4697_v19 = vld [vmem:[%s7322_s19] sm:$0xff] }
 0x513   : > { %3927 = vrot.lane.b32.xlu0 %v3836_v30, %s5222_s21 }
 0x514   : > { %v3528_v35 = vpop.permute.xlu1 %3527  ;;  %v4209_v27 = vld [vmem:[#allocation3 + $0x80] sm:$0xff] }
 0x515   : > { %3604 = vst.msk [vmem:[#allocation3 + $0x98] sm:$0xff] %vm1475_vm6, %v3528_v35  ;;  %5134 = vmatprep.mubr.msk.f32.mxu1 %vm2129_vm10, %v4209_v27  ;;  %v4100_v29 = vpop.permute.xlu0 %4099 }
 0x516   : > { %4178 = vst.msk [vmem:[#allocation3 + $0x88] sm:$0xff] %vm2055_vm9, %v4100_v29  ;;  %3545 = vrot.lane.b32.xlu1 %v4027_v43, %s5220_s16 }
 0x517   : > { %3355 = vrot.lane.b32.xlu0 %v3836_v30, %s5219_s15 }
 0x518   : > { %v3146_v45 = vpop.permute.xlu1 %3145 }
 0x519   : > { %3221 = vst.msk [vmem:[#allocation3 + $0xa0] sm:$0xff] %vm1089_vm4, %v3146_v45  ;;  %v3718_v57 = vpop.permute.xlu0 %3717 }
 0x51a   : > { %3795 = vst.msk [vmem:[#allocation3 + $0x90] sm:$0xff] %vm1669_vm7, %v3718_v57  ;;  %3547 = vrot.lane.b32.xlu1 %v3454_v3, %s5220_s16 }
 0x51b   : > { %4119 = vrot.lane.b32.xlu0 %v3454_v3, %s5223_s24 }
 0x51c   : > { %v3910_v24 = vpop.permute.xlu1 %3909 }
 0x51d   : > { %3987 = vst.msk [vmem:[#allocation3 + $0x90] sm:$0xff] %vm1862_vm8, %v3910_v24  ;;  %v3720_v63 = vpop.permute.xlu0 %3719  ;;  %v4210_v49 = vld [vmem:[#allocation3 + $0x88] sm:$0xff] }
 0x51e   : > { %3796 = vst.msk [vmem:[#allocation3 + $0x98] sm:$0xff] %vm1669_vm7, %v3720_v63  ;;  %5135 = vmatmul.mubr.msk.f32.gmra.mrb[16].mxu1 %vm2129_vm10, %v4210_v49  ;;  %3165 = vrot.lane.b32.xlu1 %v3071_v53, %s5218_s14 }
 0x51f   : > { %3737 = vrot.lane.b32.xlu0 %v3071_v53, %s5221_s17 }
 0x520   : > { %v3338_v44 = vpop.permute.xlu1 %3337 }
 0x521   : > { %3413 = vst.msk [vmem:[#allocation3 + $0xa0] sm:$0xff] %vm1282_vm5, %v3338_v44  ;;  %v3148_v25 = vpop.permute.xlu0 %3147 }
 0x522   : > { %3222 = vst.msk [vmem:[#allocation3 + $0xa8] sm:$0xff] %vm1089_vm4, %v3148_v25  ;;  %3929 = vrot.lane.b32.xlu1 %v3837_v17, %s5222_s21 }
 0x523   : > { %3739 = vrot.lane.b32.xlu0 %v3646_v60, %s5221_s17 }
 0x524   : > { %v4102_v6 = vpop.permute.xlu1 %4101 }
 0x525   : > { %4179 = vst.msk [vmem:[#allocation3 + $0x90] sm:$0xff] %vm2055_vm9, %v4102_v6  ;;  %v3912_v32 = vpop.permute.xlu0 %3911 }
 0x526   : > { %3988 = vst.msk [vmem:[#allocation3 + $0x98] sm:$0xff] %vm1862_vm8, %v3912_v32  ;;  %3357 = vrot.lane.b32.xlu1 %v3837_v17, %s5219_s15 }
 0x527   : > { %3167 = vrot.lane.b32.xlu0 %v3646_v60, %s5218_s14  ;;  %v4636_v60 = vld [vmem:[%s5347_s11 + $0x18] sm:$0xff] }
 0x528   : > { %v3530_v62 = vpop.permute.xlu1 %3529 }
 0x529   : > { %3605 = vst.msk [vmem:[#allocation3 + $0xa0] sm:$0xff] %vm1475_vm6, %v3530_v62  ;;  %v3340_v38 = vpop.permute.xlu0 %3339  ;;  %v4635_v62 = vld [vmem:[%s5347_s11 + $0x10] sm:$0xff] }
 0x52a   : > { %3414 = vst.msk [vmem:[#allocation3 + $0xa8] sm:$0xff] %vm1282_vm5, %v3340_v38  ;;  %4121 = vrot.lane.b32.xlu1 %v4029_v7, %s5223_s24 }
 0x52b   : > { %3931 = vrot.lane.b32.xlu0 %v3838_v41, %s5222_s21 }
 0x52c   : > { %v3532_v11 = vpop.permute.xlu1 %3531  ;;  %v4211_v34 = vld [vmem:[#allocation3 + $0x90] sm:$0xff] }
 0x52d   : > { %3606 = vst.msk [vmem:[#allocation3 + $0xa8] sm:$0xff] %vm1475_vm6, %v3532_v11  ;;  %5137 = vmatprep.mubr.msk.f32.mxu1 %vm2129_vm10, %v4211_v34  ;;  %v4104_v42 = vpop.permute.xlu0 %4103 }
 0x52e   : > { %4180 = vst.msk [vmem:[#allocation3 + $0x98] sm:$0xff] %vm2055_vm9, %v4104_v42  ;;  %3549 = vrot.lane.b32.xlu1 %v4029_v7, %s5220_s16  ;;  %v4700_v7 = vld [vmem:[%s7322_s19 + $0x18] sm:$0xff]  ;;  %v4699_v42 = vld [vmem:[%s7322_s19 + $0x10] sm:$0xff] }
 0x52f   : > { %3359 = vrot.lane.b32.xlu0 %v3838_v41, %s5219_s15 }
 0x530   : > { %v3150_v36 = vpop.permute.xlu1 %3149 }
 0x531   : > { %3223 = vst.msk [vmem:[#allocation3 + $0xb0] sm:$0xff] %vm1089_vm4, %v3150_v36  ;;  %v3722_v4 = vpop.permute.xlu0 %3721 }
 0x532   : > { %3797 = vst.msk [vmem:[#allocation3 + $0xa0] sm:$0xff] %vm1669_vm7, %v3722_v4  ;;  %3551 = vrot.lane.b32.xlu1 %v3456_v48, %s5220_s16 }
 0x533   : > { %4123 = vrot.lane.b32.xlu0 %v3456_v48, %s5223_s24 }
 0x534   : > { %v3914_v5 = vpop.permute.xlu1 %3913 }
 0x535   : > { %3989 = vst.msk [vmem:[#allocation3 + $0xa0] sm:$0xff] %vm1862_vm8, %v3914_v5  ;;  %v3724_v13 = vpop.permute.xlu0 %3723  ;;  %v4212_v39 = vld [vmem:[#allocation3 + $0x98] sm:$0xff] }
 0x536   : > { %3798 = vst.msk [vmem:[#allocation3 + $0xa8] sm:$0xff] %vm1669_vm7, %v3724_v13  ;;  %5138 = vmatmul.mubr.msk.f32.gmra.mrb[18].mxu1 %vm2129_vm10, %v4212_v39  ;;  %3743 = vrot.lane.b32.xlu1 %v3648_v18, %s5221_s17 }
 0x537   : > { %3741 = vrot.lane.b32.xlu0 %v3647_v8, %s5221_s17 }
 0x538   : > { %v3342_v54 = vpop.permute.xlu1 %3341 }
 0x539   : > { %3415 = vst.msk [vmem:[#allocation3 + $0xb0] sm:$0xff] %vm1282_vm5, %v3342_v54  ;;  %v3152_v40 = vpop.permute.xlu0 %3151 }
 0x53a   : > { %3224 = vst.msk [vmem:[#allocation3 + $0xb8] sm:$0xff] %vm1089_vm4, %v3152_v40  ;;  %3935 = vrot.lane.b32.xlu1 %v3840_v14, %s5222_s21 }
 0x53b   : > { %3933 = vrot.lane.b32.xlu0 %v3839_v52, %s5222_s21 }
 0x53c   : > { %v4106_v22 = vpop.permute.xlu1 %4105 }
 0x53d   : > { %4181 = vst.msk [vmem:[#allocation3 + $0xa0] sm:$0xff] %vm2055_vm9, %v4106_v22  ;;  %v3916_v1 = vpop.permute.xlu0 %3915 }
 0x53e   : > { %3990 = vst.msk [vmem:[#allocation3 + $0xa8] sm:$0xff] %vm1862_vm8, %v3916_v1  ;;  %4127 = vrot.lane.b32.xlu1 %v4032_v9, %s5223_s24  ;;  %v4638_v1 = vld [vmem:[%s5347_s11 + $0x28] sm:$0xff] }
 0x53f   : > { %4125 = vrot.lane.b32.xlu0 %v4031_v16, %s5223_s24 }
 0x540   : > { %v3534_v33 = vpop.permute.xlu1 %3533 }
 0x541   : > { %3607 = vst.msk [vmem:[#allocation3 + $0xb0] sm:$0xff] %vm1475_vm6, %v3534_v33  ;;  %v3344_v56 = vpop.permute.xlu0 %3343 }
 0x542   : > { %3416 = vst.msk [vmem:[#allocation3 + $0xb8] sm:$0xff] %vm1282_vm5, %v3344_v56 }
 0x544   : > { %v3536_v2 = vpop.permute.xlu1 %3535  ;;  %v4213_v20 = vld [vmem:[#allocation3 + $0xa0] sm:$0xff] }
 0x545   : > { %3608 = vst.msk [vmem:[#allocation3 + $0xb8] sm:$0xff] %vm1475_vm6, %v3536_v2  ;;  %5140 = vmatprep.mubr.msk.f32.mxu1 %vm2129_vm10, %v4213_v20  ;;  %v4108_v28 = vpop.permute.xlu0 %4107  ;;  %v4637_v2 = vld [vmem:[%s5347_s11 + $0x20] sm:$0xff] }
 0x546   : > { %4182 = vst.msk [vmem:[#allocation3 + $0xa8] sm:$0xff] %vm2055_vm9, %v4108_v28 }
 0x548   : > { %v3154_v59 = vpop.permute.xlu1 %3153 }
 0x549   : > { %3225 = vst.msk [vmem:[#allocation3 + $0xc0] sm:$0xff] %vm1089_vm4, %v3154_v59  ;;  %v5112_v12 = vpop.f32.mrb[0].mxu1  ;;  %v3726_v10 = vpop.permute.xlu0 %3725  ;;  %v4702_v59 = vld [vmem:[%s7322_s19 + $0x28] sm:$0xff] }
 0x54a   : > { %v4563_v46 = vmul.f32 %v5112_v12, %v7310_v21  ;;  %3799 = vst.msk [vmem:[#allocation3 + $0xb0] sm:$0xff] %vm1669_vm7, %v3726_v10  ;;  %v4396_v23 = vpop.f32.mrb[1].mxu1 }
 0x54b   : > { %v4562_v51 = vmul.f32 %v7310_v21, %v4396_v23  ;;  %v4701_v23 = vld [vmem:[%s7322_s19 + $0x20] sm:$0xff] }
 0x54c   : > { %v4602_v61 = vadd.f32 %v7316_v47, %v4563_v46  ;;  %v3918_v50 = vpop.permute.xlu1 %3917 }
 0x54d   : > { %v4601_v15 = vadd.f32 %v7316_v47, %v4562_v51  ;;  %3991 = vst.msk [vmem:[#allocation3 + $0xb0] sm:$0xff] %vm1862_vm8, %v3918_v50  ;;  %v3728_v26 = vpop.permute.xlu0 %3727  ;;  %v4214_v31 = vld [vmem:[#allocation3 + $0xa8] sm:$0xff] }
 0x54e   : > { %v4666_v0 = vadd.f32 %v4634_v55, %v4602_v61  ;;  %3800 = vst.msk [vmem:[#allocation3 + $0xb8] sm:$0xff] %vm1669_vm7, %v3728_v26  ;;  %5141 = vmatmul.mubr.msk.f32.gmra.mrb[20].mxu1 %vm2129_vm10, %v4214_v31 }
 0x54f   : > { %v4665_v43 = vadd.f32 %v4633_v58, %v4601_v15 }
 0x550   : > { %v4730_v30 = vadd.f32 %v4698_v37, %v4666_v0  ;;  %v3346_v35 = vpop.permute.xlu1 %3345 }
 0x551   : > { %v4729_v27 = vadd.f32 %v4697_v19, %v4665_v43  ;;  %3417 = vst.msk [vmem:[#allocation3 + $0xc0] sm:$0xff] %vm1282_vm5, %v3346_v35  ;;  %v3156_v29 = vpop.permute.xlu0 %3155 }
 0x552   : > { %4762 = vst.msk [vmem:[%s7340_s23 + $0x8] sm:$0xff] %vm326_vm0, %v4730_v30 }
 0x553   : > { %3226 = vst.msk [vmem:[#allocation3 + $0xc8] sm:$0xff] %vm1089_vm4, %v3156_v29  ;;  %v4640_v29 = vld [vmem:[%s5347_s11 + $0x38] sm:$0xff] }
 0x554   : > { %4761 = vst.msk [vmem:[%s7340_s23] sm:$0xff] %vm326_vm0, %v4729_v27  ;;  %v4110_v45 = vpop.permute.xlu1 %4109 }
 0x555   : > { %4183 = vst.msk [vmem:[#allocation3 + $0xb0] sm:$0xff] %vm2055_vm9, %v4110_v45  ;;  %v3920_v57 = vpop.permute.xlu0 %3919 }
 0x556   : > { %3992 = vst.msk [vmem:[#allocation3 + $0xb8] sm:$0xff] %vm1862_vm8, %v3920_v57 }
 0x558   : > { %v3538_v3 = vpop.permute.xlu1 %3537 }
 0x559   : > { %3609 = vst.msk [vmem:[#allocation3 + $0xc0] sm:$0xff] %vm1475_vm6, %v3538_v3  ;;  %v3348_v24 = vpop.permute.xlu0 %3347  ;;  %v4639_v3 = vld [vmem:[%s5347_s11 + $0x30] sm:$0xff] }
 0x55a   : > { %3418 = vst.msk [vmem:[#allocation3 + $0xc8] sm:$0xff] %vm1282_vm5, %v3348_v24 }
 0x55c   : > { %v3540_v63 = vpop.permute.xlu1 %3539  ;;  %v4215_v49 = vld [vmem:[#allocation3 + $0xb0] sm:$0xff] }
 0x55d   : > { %3610 = vst.msk [vmem:[#allocation3 + $0xc8] sm:$0xff] %vm1475_vm6, %v3540_v63  ;;  %v5115_v53 = vpop.f32.mrb[2].mxu1  ;;  %5143 = vmatprep.mubr.msk.f32.mxu1 %vm2129_vm10, %v4215_v49  ;;  %v4112_v44 = vpop.permute.xlu0 %4111  ;;  %v4704_v63 = vld [vmem:[%s7322_s19 + $0x38] sm:$0xff] }
 0x55e   : > { %v4565_v25 = vmul.f32 %v5115_v53, %v7310_v21  ;;  %4184 = vst.msk [vmem:[#allocation3 + $0xb8] sm:$0xff] %vm2055_vm9, %v4112_v44  ;;  %v4406_v17 = vpop.f32.mrb[3].mxu1 }
 0x55f   : > { %v4564_v6 = vmul.f32 %v7310_v21, %v4406_v17 }
 0x560   : > { %v4604_v32 = vadd.f32 %v7316_v47, %v4565_v25  ;;  %v3158_v38 = vpop.permute.xlu1 %3157  ;;  %v4703_v25 = vld [vmem:[%s7322_s19 + $0x30] sm:$0xff] }
 0x561   : > { %v4603_v41 = vadd.f32 %v7316_v47, %v4564_v6  ;;  %3227 = vst.msk [vmem:[#allocation3 + $0xd0] sm:$0xff] %vm1089_vm4, %v3158_v38  ;;  %v3730_v11 = vpop.permute.xlu0 %3729 }
 0x562   : > { %v4668_v34 = vadd.f32 %v4636_v60, %v4604_v32  ;;  %3801 = vst.msk [vmem:[#allocation3 + $0xc0] sm:$0xff] %vm1669_vm7, %v3730_v11 }
 0x563   : > { %v4667_v36 = vadd.f32 %v4635_v62, %v4603_v41 }
 0x564   : > { %v4732_v4 = vadd.f32 %v4700_v7, %v4668_v34  ;;  %v3922_v48 = vpop.permute.xlu1 %3921 }
 0x565   : > { %v4731_v18 = vadd.f32 %v4699_v42, %v4667_v36  ;;  %3993 = vst.msk [vmem:[#allocation3 + $0xc0] sm:$0xff] %vm1862_vm8, %v3922_v48  ;;  %v3732_v5 = vpop.permute.xlu0 %3731  ;;  %v4216_v8 = vld [vmem:[#allocation3 + $0xb8] sm:$0xff] }
 0x566   : > { %4764 = vst.msk [vmem:[%s7340_s23 + $0x18] sm:$0xff] %vm326_vm0, %v4732_v4  ;;  %5144 = vmatmul.mubr.msk.f32.gmra.mrb[22].mxu1 %vm2129_vm10, %v4216_v8  ;;  %v4642_v8 = vld [vmem:[%s5347_s11 + $0x48] sm:$0xff] }
 0x567   : > { %3802 = vst.msk [vmem:[#allocation3 + $0xc8] sm:$0xff] %vm1669_vm7, %v3732_v5 }
 0x568   : > { %4763 = vst.msk [vmem:[%s7340_s23 + $0x10] sm:$0xff] %vm326_vm0, %v4731_v18  ;;  %v3350_v13 = vpop.permute.xlu1 %3349 }
 0x569   : > { %3419 = vst.msk [vmem:[#allocation3 + $0xd0] sm:$0xff] %vm1282_vm5, %v3350_v13  ;;  %v3160_v39 = vpop.permute.xlu0 %3159 }
 0x56a   : > { %3228 = vst.msk [vmem:[#allocation3 + $0xd8] sm:$0xff] %vm1089_vm4, %v3160_v39 }
 0x56c   : > { %v4114_v14 = vpop.permute.xlu1 %4113 }
 0x56d   : > { %4185 = vst.msk [vmem:[#allocation3 + $0xc0] sm:$0xff] %vm2055_vm9, %v4114_v14  ;;  %v3924_v54 = vpop.permute.xlu0 %3923  ;;  %v4641_v14 = vld [vmem:[%s5347_s11 + $0x40] sm:$0xff] }
 0x56e   : > { %3994 = vst.msk [vmem:[#allocation3 + $0xc8] sm:$0xff] %vm1862_vm8, %v3924_v54 }
 0x570   : > { %v3542_v52 = vpop.permute.xlu1 %3541 }
 0x571   : > { %3611 = vst.msk [vmem:[#allocation3 + $0xd0] sm:$0xff] %vm1475_vm6, %v3542_v52  ;;  %v5118_v40 = vpop.f32.mrb[4].mxu1  ;;  %v3352_v9 = vpop.permute.xlu0 %3351  ;;  %v4706_v52 = vld [vmem:[%s7322_s19 + $0x48] sm:$0xff] }
 0x572   : > { %v4567_v22 = vmul.f32 %v5118_v40, %v7310_v21  ;;  %3420 = vst.msk [vmem:[#allocation3 + $0xd8] sm:$0xff] %vm1282_vm5, %v3352_v9  ;;  %v4416_v16 = vpop.f32.mrb[5].mxu1 }
 0x573   : > { %v4566_v33 = vmul.f32 %v7310_v21, %v4416_v16  ;;  %v4705_v16 = vld [vmem:[%s7322_s19 + $0x40] sm:$0xff] }
 0x574   : > { %v4606_v56 = vadd.f32 %v7316_v47, %v4567_v22  ;;  %v3544_v20 = vpop.permute.xlu1 %3543  ;;  %v4217_v28 = vld [vmem:[#allocation3 + $0xc0] sm:$0xff] }
 0x575   : > { %v4605_v12 = vadd.f32 %v7316_v47, %v4566_v33  ;;  %3612 = vst.msk [vmem:[#allocation3 + $0xd8] sm:$0xff] %vm1475_vm6, %v3544_v20  ;;  %5146 = vmatprep.mubr.msk.f32.mxu1 %vm2129_vm10, %v4217_v28  ;;  %v4116_v10 = vpop.permute.xlu0 %4115 }
 0x576   : > { %v4670_v46 = vadd.f32 %v4638_v1, %v4606_v56  ;;  %4186 = vst.msk [vmem:[#allocation3 + $0xc8] sm:$0xff] %vm2055_vm9, %v4116_v10 }
 0x577   : > { %v4669_v55 = vadd.f32 %v4637_v2, %v4605_v12 }
 0x578   : > { %v4734_v51 = vadd.f32 %v4702_v59, %v4670_v46  ;;  %v3162_v61 = vpop.permute.xlu1 %3161 }
 0x579   : > { %v4733_v58 = vadd.f32 %v4701_v23, %v4669_v55  ;;  %3229 = vst.msk [vmem:[#allocation3 + $0xe0] sm:$0xff] %vm1089_vm4, %v3162_v61  ;;  %v3734_v50 = vpop.permute.xlu0 %3733 }
 0x57a   : > { %4766 = vst.msk [vmem:[%s7340_s23 + $0x28] sm:$0xff] %vm326_vm0, %v4734_v51 }
 0x57b   : > { %3803 = vst.msk [vmem:[#allocation3 + $0xd0] sm:$0xff] %vm1669_vm7, %v3734_v50 }
 0x57c   : > { %4765 = vst.msk [vmem:[%s7340_s23 + $0x20] sm:$0xff] %vm326_vm0, %v4733_v58  ;;  %v3926_v37 = vpop.permute.xlu1 %3925 }
 0x57d   : > { %3995 = vst.msk [vmem:[#allocation3 + $0xd0] sm:$0xff] %vm1862_vm8, %v3926_v37  ;;  %v3736_v15 = vpop.permute.xlu0 %3735  ;;  %v4218_v26 = vld [vmem:[#allocation3 + $0xc8] sm:$0xff] }
 0x57e   : > { %3804 = vst.msk [vmem:[#allocation3 + $0xd8] sm:$0xff] %vm1669_vm7, %v3736_v15  ;;  %5147 = vmatmul.mubr.msk.f32.gmra.mrb[24].mxu1 %vm2129_vm10, %v4218_v26  ;;  %v4644_v37 = vld [vmem:[%s5347_s11 + $0x58] sm:$0xff] }
 0x580   : > { %v3354_v31 = vpop.permute.xlu1 %3353 }
 0x581   : > { %3421 = vst.msk [vmem:[#allocation3 + $0xe0] sm:$0xff] %vm1282_vm5, %v3354_v31  ;;  %v3164_v0 = vpop.permute.xlu0 %3163  ;;  %v4643_v31 = vld [vmem:[%s5347_s11 + $0x50] sm:$0xff] }
 0x582   : > { %3230 = vst.msk [vmem:[#allocation3 + $0xe8] sm:$0xff] %vm1089_vm4, %v3164_v0 }
 0x584   : > { %v4118_v19 = vpop.permute.xlu1 %4117 }
 0x585   : > { %4187 = vst.msk [vmem:[#allocation3 + $0xd0] sm:$0xff] %vm2055_vm9, %v4118_v19  ;;  %v5121_v43 = vpop.f32.mrb[6].mxu1  ;;  %v3928_v30 = vpop.permute.xlu0 %3927  ;;  %v4708_v19 = vld [vmem:[%s7322_s19 + $0x58] sm:$0xff] }
 0x586   : > { %v4569_v35 = vmul.f32 %v5121_v43, %v7310_v21  ;;  %3996 = vst.msk [vmem:[#allocation3 + $0xd8] sm:$0xff] %vm1862_vm8, %v3928_v30  ;;  %v4426_v27 = vpop.f32.mrb[7].mxu1 }
 0x587   : > { %v4568_v45 = vmul.f32 %v7310_v21, %v4426_v27  ;;  %v4707_v27 = vld [vmem:[%s7322_s19 + $0x50] sm:$0xff] }
 0x588   : > { %v4608_v57 = vadd.f32 %v7316_v47, %v4569_v35  ;;  %v3546_v24 = vpop.permute.xlu1 %3545 }
 0x589   : > { %v4607_v49 = vadd.f32 %v7316_v47, %v4568_v45  ;;  %3613 = vst.msk [vmem:[#allocation3 + $0xe0] sm:$0xff] %vm1475_vm6, %v3546_v24  ;;  %v3356_v53 = vpop.permute.xlu0 %3355 }
 0x58a   : > { %v4672_v44 = vadd.f32 %v4640_v29, %v4608_v57  ;;  %3422 = vst.msk [vmem:[#allocation3 + $0xe8] sm:$0xff] %vm1282_vm5, %v3356_v53 }
 0x58b   : > { %v4671_v17 = vadd.f32 %v4639_v3, %v4607_v49 }
 0x58c   : > { %v4736_v60 = vadd.f32 %v4704_v63, %v4672_v44  ;;  %v3548_v6 = vpop.permute.xlu1 %3547  ;;  %v4219_v32 = vld [vmem:[#allocation3 + $0xd0] sm:$0xff]  ;;  %v4646_v44 = vld [vmem:[%s5347_s11 + $0x68] sm:$0xff] }
 0x58d   : > { %v4735_v62 = vadd.f32 %v4703_v25, %v4671_v17  ;;  %3614 = vst.msk [vmem:[#allocation3 + $0xe8] sm:$0xff] %vm1475_vm6, %v3548_v6  ;;  %5149 = vmatprep.mubr.msk.f32.mxu1 %vm2129_vm10, %v4219_v32  ;;  %v4120_v38 = vpop.permute.xlu0 %4119  ;;  %v4710_v6 = vld [vmem:[%s7322_s19 + $0x68] sm:$0xff] }
 0x58e   : > { %4768 = vst.msk [vmem:[%s7340_s23 + $0x38] sm:$0xff] %vm326_vm0, %v4736_v60  ;;  %v4645_v60 = vld [vmem:[%s5347_s11 + $0x60] sm:$0xff] }
 0x58f   : > { %4188 = vst.msk [vmem:[#allocation3 + $0xd8] sm:$0xff] %vm2055_vm9, %v4120_v38  ;;  %v4709_v38 = vld [vmem:[%s7322_s19 + $0x60] sm:$0xff] }
 0x590   : > { %4767 = vst.msk [vmem:[%s7340_s23 + $0x30] sm:$0xff] %vm326_vm0, %v4735_v62  ;;  %v3166_v7 = vpop.permute.xlu1 %3165 }
 0x591   : > { %3231 = vst.msk [vmem:[#allocation3 + $0xf0] sm:$0xff] %vm1089_vm4, %v3166_v7  ;;  %v3738_v41 = vpop.permute.xlu0 %3737 }
 0x592   : > { %3805 = vst.msk [vmem:[#allocation3 + $0xe0] sm:$0xff] %vm1669_vm7, %v3738_v41 }
 0x594   : > { %v3930_v11 = vpop.permute.xlu1 %3929 }
 0x595   : > { %3997 = vst.msk [vmem:[#allocation3 + $0xe0] sm:$0xff] %vm1862_vm8, %v3930_v11  ;;  %v3740_v34 = vpop.permute.xlu0 %3739 }
 0x596   : > { %v4220_v42 = vld [vmem:[#allocation3 + $0xd8] sm:$0xff]  ;;  %3806 = vst.msk [vmem:[#allocation3 + $0xe8] sm:$0xff] %vm1669_vm7, %v3740_v34 }
 0x597   : > { %5150 = vmatmul.mubr.msk.f32.gmra.mrb[26].mxu1 %vm2129_vm10, %v4220_v42 }
 0x598   : > { %v3358_v36 = vpop.permute.xlu1 %3357 }
 0x599   : > { %3423 = vst.msk [vmem:[#allocation3 + $0xf0] sm:$0xff] %vm1282_vm5, %v3358_v36  ;;  %v5124_v4 = vpop.f32.mrb[8].mxu1  ;;  %v3168_v48 = vpop.permute.xlu0 %3167 }
 0x59a   : > { %v4571_v18 = vmul.f32 %v5124_v4, %v7310_v21  ;;  %3232 = vst.msk [vmem:[#allocation3 + $0xf8] sm:$0xff] %vm1089_vm4, %v3168_v48  ;;  %v4436_v5 = vpop.f32.mrb[9].mxu1  ;;  %v4648_v4 = vld [vmem:[%s5347_s11 + $0x78] sm:$0xff] }
 0x59b   : > { %v4570_v13 = vmul.f32 %v7310_v21, %v4436_v5  ;;  %v4647_v5 = vld [vmem:[%s5347_s11 + $0x70] sm:$0xff] }
 0x59c   : > { %v4610_v39 = vadd.f32 %v7316_v47, %v4571_v18  ;;  %v4122_v54 = vpop.permute.xlu1 %4121 }
 0x59d   : > { %v4609_v40 = vadd.f32 %v7316_v47, %v4570_v13  ;;  %4189 = vst.msk [vmem:[#allocation3 + $0xe0] sm:$0xff] %vm2055_vm9, %v4122_v54  ;;  %v3932_v9 = vpop.permute.xlu0 %3931 }
 0x59e   : > { %v4674_v22 = vadd.f32 %v4642_v8, %v4610_v39  ;;  %3998 = vst.msk [vmem:[#allocation3 + $0xe8] sm:$0xff] %vm1862_vm8, %v3932_v9  ;;  %v4712_v8 = vld [vmem:[%s7322_s19 + $0x78] sm:$0xff] }
 0x59f   : > { %v4673_v1 = vadd.f32 %v4641_v14, %v4609_v40  ;;  %v4711_v14 = vld [vmem:[%s7322_s19 + $0x70] sm:$0xff] }
 0x5a0   : > { %v4738_v33 = vadd.f32 %v4706_v52, %v4674_v22  ;;  %v3550_v56 = vpop.permute.xlu1 %3549 }
 0x5a1   : > { %v4737_v2 = vadd.f32 %v4705_v16, %v4673_v1  ;;  %3615 = vst.msk [vmem:[#allocation3 + $0xf0] sm:$0xff] %vm1475_vm6, %v3550_v56  ;;  %v3360_v20 = vpop.permute.xlu0 %3359  ;;  %v4650_v1 = vld [vmem:[%s5347_s11 + $0x88] sm:$0xff] }
 0x5a2   : > { %4770 = vst.msk [vmem:[%s7340_s23 + $0x48] sm:$0xff] %vm326_vm0, %v4738_v33 }
 0x5a3   : > { %3424 = vst.msk [vmem:[#allocation3 + $0xf8] sm:$0xff] %vm1282_vm5, %v3360_v20  ;;  %v4714_v20 = vld [vmem:[%s7322_s19 + $0x88] sm:$0xff] }
 0x5a4   : > { %4769 = vst.msk [vmem:[%s7340_s23 + $0x40] sm:$0xff] %vm326_vm0, %v4737_v2  ;;  %v3552_v28 = vpop.permute.xlu1 %3551  ;;  %v4221_v59 = vld [vmem:[#allocation3 + $0xe0] sm:$0xff]  ;;  %v4649_v2 = vld [vmem:[%s5347_s11 + $0x80] sm:$0xff] }
 0x5a5   : > { %3616 = vst.msk [vmem:[#allocation3 + $0xf8] sm:$0xff] %vm1475_vm6, %v3552_v28  ;;  %v4124_v12 = vpop.permute.xlu0 %4123  ;;  %5152 = vmatprep.mubr.msk.f32.mxu1 %vm2129_vm10, %v4221_v59 }
 0x5a6   : > { %4190 = vst.msk [vmem:[#allocation3 + $0xe8] sm:$0xff] %vm2055_vm9, %v4124_v12  ;;  %v4713_v12 = vld [vmem:[%s7322_s19 + $0x80] sm:$0xff] }
 0x5a8   : > { %v3744_v10 = vpop.permute.xlu1 %3743 }
 0x5a9   : > { %v3742_v46 = vpop.permute.xlu0 %3741  ;;  %3808 = vst.msk [vmem:[#allocation3 + $0xf8] sm:$0xff] %vm1669_vm7, %v3744_v10 }
 0x5aa   : > { %3807 = vst.msk [vmem:[#allocation3 + $0xf0] sm:$0xff] %vm1669_vm7, %v3742_v46 }
 0x5ac   : > { %v3936_v23 = vpop.permute.xlu1 %3935 }
 0x5ad   : > { %v5127_v55 = vpop.f32.mrb[10].mxu1  ;;  %v3934_v51 = vpop.permute.xlu0 %3933  ;;  %v4222_v61 = vld [vmem:[#allocation3 + $0xe8] sm:$0xff]  ;;  %4000 = vst.msk [vmem:[#allocation3 + $0xf8] sm:$0xff] %vm1862_vm8, %v3936_v23 }
 0x5ae   : > { %v4573_v58 = vmul.f32 %v5127_v55, %v7310_v21  ;;  %3999 = vst.msk [vmem:[#allocation3 + $0xf0] sm:$0xff] %vm1862_vm8, %v3934_v51  ;;  %v4446_v50 = vpop.f32.mrb[11].mxu1  ;;  %5153 = vmatmul.mubr.msk.f32.gmra.mrb[28].mxu1 %vm2129_vm10, %v4222_v61 }
 0x5af   : > { %v4572_v15 = vmul.f32 %v7310_v21, %v4446_v50 }
 0x5b0   : > { %v4612_v26 = vadd.f32 %v7316_v47, %v4573_v58  ;;  %v4128_v0 = vpop.permute.xlu1 %4127  ;;  %v4652_v58 = vld [vmem:[%s5347_s11 + $0x98] sm:$0xff] }
 0x5b1   : > { %v4611_v43 = vadd.f32 %v7316_v47, %v4572_v15  ;;  %v4126_v30 = vpop.permute.xlu0 %4125  ;;  %4192 = vst.msk [vmem:[#allocation3 + $0xf8] sm:$0xff] %vm2055_vm9, %v4128_v0  ;;  %v4651_v15 = vld [vmem:[%s5347_s11 + $0x90] sm:$0xff] }
 0x5b2   : > { %v4676_v35 = vadd.f32 %v4644_v37, %v4612_v26  ;;  %4191 = vst.msk [vmem:[#allocation3 + $0xf0] sm:$0xff] %vm2055_vm9, %v4126_v30  ;;  %v4716_v26 = vld [vmem:[%s7322_s19 + $0x98] sm:$0xff] }
 0x5b3   : > { %v4675_v29 = vadd.f32 %v4643_v31, %v4611_v43 }
 0x5b4   : > { %v4740_v45 = vadd.f32 %v4708_v19, %v4676_v35  ;;  %v4715_v19 = vld [vmem:[%s7322_s19 + $0x90] sm:$0xff] }
 0x5b5   : > { %v4739_v57 = vadd.f32 %v4707_v27, %v4675_v29 }
 0x5b6   : > { %4772 = vst.msk [vmem:[%s7340_s23 + $0x58] sm:$0xff] %vm326_vm0, %v4740_v45 }
 0x5b7   : > { %4771 = vst.msk [vmem:[%s7340_s23 + $0x50] sm:$0xff] %vm326_vm0, %v4739_v57  ;;  %v4654_v57 = vld [vmem:[%s5347_s11 + $0xa8] sm:$0xff] }
 0x5b8   : > { %v4224_v3 = vld [vmem:[#allocation3 + $0xf8] sm:$0xff] }
 0x5b9   : > { %v4223_v24 = vld [vmem:[#allocation3 + $0xf0] sm:$0xff] }
 0x5ba   : > { %5155 = vmatprep.mubr.msk.f32.mxu1 %vm2129_vm10, %v4223_v24 }
 0x5bb   : > { %5156 = vmatmul.mubr.msk.f32.gmra.mrb[30].mxu1 %vm2129_vm10, %v4224_v3 }
 0x5c1   : > { %v5130_v63 = vpop.f32.mrb[12].mxu1 }
 0x5c2   : > { %v4575_v49 = vmul.f32 %v5130_v63, %v7310_v21  ;;  %v4456_v53 = vpop.f32.mrb[13].mxu1  ;;  %v4653_v63 = vld [vmem:[%s5347_s11 + $0xa0] sm:$0xff] }
 0x5c3   : > { %v4574_v25 = vmul.f32 %v7310_v21, %v4456_v53 }
 0x5c4   : > { %v4614_v17 = vadd.f32 %v7316_v47, %v4575_v49  ;;  %v4718_v49 = vld [vmem:[%s7322_s19 + $0xa8] sm:$0xff] }
 0x5c5   : > { %v4613_v32 = vadd.f32 %v7316_v47, %v4574_v25  ;;  %v4717_v25 = vld [vmem:[%s7322_s19 + $0xa0] sm:$0xff] }
 0x5c6   : > { %v4678_v62 = vadd.f32 %v4646_v44, %v4614_v17 }
 0x5c7   : > { %v4677_v7 = vadd.f32 %v4645_v60, %v4613_v32 }
 0x5c8   : > { %v4742_v41 = vadd.f32 %v4710_v6, %v4678_v62 }
 0x5c9   : > { %v4741_v11 = vadd.f32 %v4709_v38, %v4677_v7  ;;  %v4656_v7 = vld [vmem:[%s5347_s11 + $0xb8] sm:$0xff] }
 0x5ca   : > { %4774 = vst.msk [vmem:[%s7340_s23 + $0x68] sm:$0xff] %vm326_vm0, %v4742_v41 }
 0x5cb   : > { %4773 = vst.msk [vmem:[%s7340_s23 + $0x60] sm:$0xff] %vm326_vm0, %v4741_v11 }
 0x5d9   : > { %v5133_v34 = vpop.f32.mrb[14].mxu1 }
 0x5da   : > { %v4577_v42 = vmul.f32 %v5133_v34, %v7310_v21  ;;  %v4466_v36 = vpop.f32.mrb[15].mxu1  ;;  %v4655_v34 = vld [vmem:[%s5347_s11 + $0xb0] sm:$0xff] }
 0x5db   : > { %v4576_v48 = vmul.f32 %v7310_v21, %v4466_v36 }
 0x5dc   : > { %v4616_v18 = vadd.f32 %v7316_v47, %v4577_v42  ;;  %v4720_v42 = vld [vmem:[%s7322_s19 + $0xb8] sm:$0xff] }
 0x5dd   : > { %v4615_v13 = vadd.f32 %v7316_v47, %v4576_v48  ;;  %v4719_v48 = vld [vmem:[%s7322_s19 + $0xb0] sm:$0xff] }
 0x5de   : > { %v4680_v39 = vadd.f32 %v4648_v4, %v4616_v18 }
 0x5df   : > { %v4679_v54 = vadd.f32 %v4647_v5, %v4615_v13 }
 0x5e0   : > { %v4744_v52 = vadd.f32 %v4712_v8, %v4680_v39 }
 0x5e1   : > { %v4743_v40 = vadd.f32 %v4711_v14, %v4679_v54  ;;  %v4658_v54 = vld [vmem:[%s5347_s11 + $0xc8] sm:$0xff] }
 0x5e2   : > { %4776 = vst.msk [vmem:[%s7340_s23 + $0x78] sm:$0xff] %vm326_vm0, %v4744_v52 }
 0x5e3   : > { %4775 = vst.msk [vmem:[%s7340_s23 + $0x70] sm:$0xff] %vm326_vm0, %v4743_v40 }
 0x5f1   : > { %v5136_v9 = vpop.f32.mrb[16].mxu1 }
 0x5f2   : > { %v4579_v22 = vmul.f32 %v5136_v9, %v7310_v21  ;;  %v4476_v16 = vpop.f32.mrb[17].mxu1  ;;  %v4657_v9 = vld [vmem:[%s5347_s11 + $0xc0] sm:$0xff] }
 0x5f3   : > { %v4578_v33 = vmul.f32 %v7310_v21, %v4476_v16 }
 0x5f4   : > { %v4618_v56 = vadd.f32 %v7316_v47, %v4579_v22  ;;  %v4722_v22 = vld [vmem:[%s7322_s19 + $0xc8] sm:$0xff] }
 0x5f5   : > { %v4617_v28 = vadd.f32 %v7316_v47, %v4578_v33  ;;  %v4721_v33 = vld [vmem:[%s7322_s19 + $0xc0] sm:$0xff] }
 0x5f6   : > { %v4682_v59 = vadd.f32 %v4650_v1, %v4618_v56 }
 0x5f7   : > { %v4681_v10 = vadd.f32 %v4649_v2, %v4617_v28 }
 0x5f8   : > { %v4746_v46 = vadd.f32 %v4714_v20, %v4682_v59 }
 0x5f9   : > { %v4745_v23 = vadd.f32 %v4713_v12, %v4681_v10  ;;  %v4660_v10 = vld [vmem:[%s5347_s11 + $0xd8] sm:$0xff] }
 0x5fa   : > { %4778 = vst.msk [vmem:[%s7340_s23 + $0x88] sm:$0xff] %vm326_vm0, %v4746_v46 }
 0x5fb   : > { %4777 = vst.msk [vmem:[%s7340_s23 + $0x80] sm:$0xff] %vm326_vm0, %v4745_v23 }
 0x609   : > { %v5139_v55 = vpop.f32.mrb[18].mxu1 }
 0x60a   : > { %v4581_v51 = vmul.f32 %v5139_v55, %v7310_v21  ;;  %v4486_v61 = vpop.f32.mrb[19].mxu1  ;;  %v4659_v55 = vld [vmem:[%s5347_s11 + $0xd0] sm:$0xff] }
 0x60b   : > { %v4580_v50 = vmul.f32 %v7310_v21, %v4486_v61 }
 0x60c   : > { %v4620_v37 = vadd.f32 %v7316_v47, %v4581_v51  ;;  %v4724_v51 = vld [vmem:[%s7322_s19 + $0xd8] sm:$0xff] }
 0x60d   : > { %v4619_v31 = vadd.f32 %v7316_v47, %v4580_v50  ;;  %v4723_v50 = vld [vmem:[%s7322_s19 + $0xd0] sm:$0xff] }
 0x60e   : > { %v4684_v0 = vadd.f32 %v4652_v58, %v4620_v37 }
 0x60f   : > { %v4683_v43 = vadd.f32 %v4651_v15, %v4619_v31 }
 0x610   : > { %v4748_v30 = vadd.f32 %v4716_v26, %v4684_v0 }
 0x611   : > { %v4747_v35 = vadd.f32 %v4715_v19, %v4683_v43  ;;  %v4662_v43 = vld [vmem:[%s5347_s11 + $0xe8] sm:$0xff] }
 0x612   : > { %4780 = vst.msk [vmem:[%s7340_s23 + $0x98] sm:$0xff] %vm326_vm0, %v4748_v30 }
 0x613   : > { %4779 = vst.msk [vmem:[%s7340_s23 + $0x90] sm:$0xff] %vm326_vm0, %v4747_v35 }
 0x621   : > { %v5142_v27 = vpop.f32.mrb[20].mxu1 }
 0x622   : > { %v4583_v29 = vmul.f32 %v5142_v27, %v7310_v21  ;;  %v4496_v45 = vpop.f32.mrb[21].mxu1  ;;  %v4661_v27 = vld [vmem:[%s5347_s11 + $0xe0] sm:$0xff] }
 0x623   : > { %v4582_v3 = vmul.f32 %v7310_v21, %v4496_v45 }
 0x624   : > { %v4622_v24 = vadd.f32 %v7316_v47, %v4583_v29  ;;  %v4726_v29 = vld [vmem:[%s7322_s19 + $0xe8] sm:$0xff] }
 0x625   : > { %v4621_v53 = vadd.f32 %v7316_v47, %v4582_v3  ;;  %v4725_v3 = vld [vmem:[%s7322_s19 + $0xe0] sm:$0xff] }
 0x626   : > { %v4686_v44 = vadd.f32 %v4654_v57, %v4622_v24 }
 0x627   : > { %v4685_v17 = vadd.f32 %v4653_v63, %v4621_v53 }
 0x628   : > { %v4750_v60 = vadd.f32 %v4718_v49, %v4686_v44 }
 0x629   : > { %v4749_v6 = vadd.f32 %v4717_v25, %v4685_v17  ;;  %v4664_v17 = vld [vmem:[%s5347_s11 + $0xf8] sm:$0xff] }
 0x62a   : > { %4782 = vst.msk [vmem:[%s7340_s23 + $0xa8] sm:$0xff] %vm326_vm0, %v4750_v60 }
 0x62b   : > { %4781 = vst.msk [vmem:[%s7340_s23 + $0xa0] sm:$0xff] %vm326_vm0, %v4749_v6 }
 0x639   : > { %v5145_v32 = vpop.f32.mrb[22].mxu1 }
 0x63a   : > { %v4585_v62 = vmul.f32 %v5145_v32, %v7310_v21  ;;  %v4506_v38 = vpop.f32.mrb[23].mxu1  ;;  %v4663_v32 = vld [vmem:[%s5347_s11 + $0xf0] sm:$0xff] }
 0x63b   : > { %v4584_v41 = vmul.f32 %v7310_v21, %v4506_v38 }
 0x63c   : > { %v4624_v11 = vadd.f32 %v7316_v47, %v4585_v62  ;;  %v4728_v62 = vld [vmem:[%s7322_s19 + $0xf8] sm:$0xff] }
 0x63d   : > { %v4623_v36 = vadd.f32 %v7316_v47, %v4584_v41  ;;  %v4727_v41 = vld [vmem:[%s7322_s19 + $0xf0] sm:$0xff] }
 0x63e   : > { %v4688_v4 = vadd.f32 %v4656_v7, %v4624_v11 }
 0x63f   : > { %v4687_v18 = vadd.f32 %v4655_v34, %v4623_v36 }
 0x640   : > { %v4752_v5 = vadd.f32 %v4720_v42, %v4688_v4 }
 0x641   : > { %v4751_v8 = vadd.f32 %v4719_v48, %v4687_v18 }
 0x642   : > { %4784 = vst.msk [vmem:[%s7340_s23 + $0xb8] sm:$0xff] %vm326_vm0, %v4752_v5 }
 0x643   : > { %4783 = vst.msk [vmem:[%s7340_s23 + $0xb0] sm:$0xff] %vm326_vm0, %v4751_v8 }
 0x651   : > { %v5148_v13 = vpop.f32.mrb[24].mxu1 }
 0x652   : > { %v4587_v39 = vmul.f32 %v5148_v13, %v7310_v21  ;;  %v4516_v14 = vpop.f32.mrb[25].mxu1 }
 0x653   : > { %v4586_v52 = vmul.f32 %v7310_v21, %v4516_v14 }
 0x654   : > { %v4626_v40 = vadd.f32 %v7316_v47, %v4587_v39 }
 0x655   : > { %v4625_v16 = vadd.f32 %v7316_v47, %v4586_v52 }
 0x656   : > { %v4690_v1 = vadd.f32 %v4658_v54, %v4626_v40 }
 0x657   : > { %v4689_v56 = vadd.f32 %v4657_v9, %v4625_v16 }
 0x658   : > { %v4754_v2 = vadd.f32 %v4722_v22, %v4690_v1 }
 0x659   : > { %v4753_v20 = vadd.f32 %v4721_v33, %v4689_v56 }
 0x65a   : > { %4786 = vst.msk [vmem:[%s7340_s23 + $0xc8] sm:$0xff] %vm326_vm0, %v4754_v2 }
 0x65b   : > { %4785 = vst.msk [vmem:[%s7340_s23 + $0xc0] sm:$0xff] %vm326_vm0, %v4753_v20 }
 0x66a   : > { %v5151_v28 = vpop.f32.mrb[26].mxu1 }
 0x66b   : > { %v4589_v59 = vmul.f32 %v5151_v28, %v7310_v21  ;;  %v4526_v12 = vpop.f32.mrb[27].mxu1 }
 0x66c   : > { %v4588_v46 = vmul.f32 %v7310_v21, %v4526_v12 }
 0x66d   : > { %v4628_v23 = vadd.f32 %v7316_v47, %v4589_v59 }
 0x66e   : > { %v4627_v61 = vadd.f32 %v7316_v47, %v4588_v46 }
 0x66f   : > { %v4692_v58 = vadd.f32 %v4660_v10, %v4628_v23 }
 0x670   : > { %v4691_v37 = vadd.f32 %v4659_v55, %v4627_v61 }
 0x671   : > { %v4756_v15 = vadd.f32 %v4724_v51, %v4692_v58 }
 0x672   : > { %v4755_v26 = vadd.f32 %v4723_v50, %v4691_v37 }
 0x673   : > { %4788 = vst.msk [vmem:[%s7340_s23 + $0xd8] sm:$0xff] %vm326_vm0, %v4756_v15 }
 0x674   : > { %4787 = vst.msk [vmem:[%s7340_s23 + $0xd0] sm:$0xff] %vm326_vm0, %v4755_v26 }
 0x681   : > { %v5154_v31 = vpop.f32.mrb[28].mxu1 }
 0x682   : > { %v4591_v0 = vmul.f32 %v5154_v31, %v7310_v21  ;;  %v4536_v19 = vpop.f32.mrb[29].mxu1 }
 0x683   : > { %v4590_v30 = vmul.f32 %v7310_v21, %v4536_v19 }
 0x684   : > { %v4630_v35 = vadd.f32 %v7316_v47, %v4591_v0 }
 0x685   : > { %v4629_v45 = vadd.f32 %v7316_v47, %v4590_v30 }
 0x686   : > { %v4694_v57 = vadd.f32 %v4662_v43, %v4630_v35 }
 0x687   : > { %v4693_v24 = vadd.f32 %v4661_v27, %v4629_v45 }
 0x688   : > { %v4758_v63 = vadd.f32 %v4726_v29, %v4694_v57 }
 0x689   : > { %v4757_v49 = vadd.f32 %v4725_v3, %v4693_v24 }
 0x68a   : > { %4790 = vst.msk [vmem:[%s7340_s23 + $0xe8] sm:$0xff] %vm326_vm0, %v4758_v63 }
 0x68b   : > { %4789 = vst.msk [vmem:[%s7340_s23 + $0xe0] sm:$0xff] %vm326_vm0, %v4757_v49 }
 0x68e   : > { %v5157_v53 = vpop.f32.mrb[30].mxu1 }
 0x68f   : > { %v4593_v44 = vmul.f32 %v5157_v53, %v7310_v21  ;;  %v4546_v25 = vpop.f32.mrb[31].mxu1 }
 0x690   : > { %v4592_v60 = vmul.f32 %v7310_v21, %v4546_v25 }
 0x691   : > { %v4632_v6 = vadd.f32 %v7316_v47, %v4593_v44 }
 0x692   : > { %v4631_v38 = vadd.f32 %v7316_v47, %v4592_v60 }
 0x693   : > { %v4696_v7 = vadd.f32 %v4664_v17, %v4632_v6 }
 0x694   : > { %v4695_v11 = vadd.f32 %v4663_v32, %v4631_v38 }
 0x695   : > { %v4760_v34 = vadd.f32 %v4728_v62, %v4696_v7 }
 0x696   : > { %v4759_v42 = vadd.f32 %v4727_v41, %v4695_v11 }
 0x697   : > { %4792 = vst.msk [vmem:[%s7340_s23 + $0xf8] sm:$0xff] %vm326_vm0, %v4760_v34 }
 0x698   : > { %4791 = vst.msk [vmem:[%s7340_s23 + $0xf0] sm:$0xff] %vm326_vm0, %v4759_v42 }
 0x699 PF: > { %s18_s27 = sadd.s32 1, %s5213_s27  }
 0x69a   : > { %p15_p4 = scmp.ge.s32.totalorder %s18_s27, 4  }
 0x69c   :  { %17 = sbr.rel (!%p15_p4) target bundleno = 1 (0x1), region = 87 }

</bundles_post_ra>
